<compile_context>
chip_gen: v7x
topology: tpu7x:2x2x1
jax: 0.10.0
libtpu: 0.0.40
codegen_flags: <defaults>
</compile_context>

<pallas_src>
import functools

import jax
import jax.numpy as jnp
from jax.experimental import pallas as pl
from jax.experimental.pallas import tpu as pltpu


def _gru_kernel(num_layers, num_passes, x_ref, h0_ref, wih0_ref, whh0_ref, *rest):
    """One grid step = one model: full multi-layer GRU over the sequence.

    Passes are folded into the batch dimension (PB = num_passes * batch).
    Ref shapes (per grid step / model):
      x_ref   : (seq, B, I)            shared input (NOT pass-tiled)
      h0_ref  : (P, L, B, H)           initial hidden, pass-major
      wih0/whh0: (I, 3H) / (H, 3H)     layer-0 weights (bf16)
      wihr/whhr: (L-1, H, 3H)          layer 1.. weights (bf16, only when L > 1)
      bih/bhh : (L, 3H)                biases (f32)
      out_ref : (P, seq, B, H)         last-layer output sequence (final layout)
      hout_ref: (P, L, B, H)           final hidden state (final layout)
      gi_ref  : (seq, P*B, 3H) VMEM    hoisted per-layer input projections
      act_ref : (seq, P*B, H)  VMEM    inter-layer / output staging
    """
    L = num_layers
    P = num_passes
    if L > 1:
        (wihr_ref, whhr_ref, bih_ref, bhh_ref,
         out_ref, hout_ref, gi_ref, act_ref) = rest
    else:
        (bih_ref, bhh_ref, out_ref, hout_ref, gi_ref, act_ref) = rest
        wihr_ref = whhr_ref = None

    seq, B, I = x_ref.shape
    H = h0_ref.shape[-1]
    PB = P * B
    H3 = 3 * H

    def project_into_gi(inp_2d, w, l):
        # Hoisted input projection for a whole layer: ONE MXU matmul for all timesteps.
        # (At production seq/B this slab should be seq-chunked and/or stored bf16 to fit
        #  v7x's 64 MiB VMEM; at these shapes it is tiny, keep full-sequence f32.)
        gi = jnp.dot(inp_2d, w, preferred_element_type=jnp.float32) + bih_ref[l:l + 1, :]
        gi_ref[...] = gi.reshape(seq, PB, H3)

    def recurrence(l, whh, is_last):
        # Hoist the hidden-bias broadcast out of the loop (JAX does not CSE broadcasts).
        bhh_b = jnp.broadcast_to(bhh_ref[l:l + 1, :], (PB, H3))
        # Fold (P, B, H) -> (P*B, H) with pass-major row order (row = p*B + b).
        h0 = jnp.concatenate([h0_ref[p, l] for p in range(P)], axis=0)

        # TODO(synk): W_hh is loop-invariant; if the bundle dump shows a per-timestep MXU
        # weight push, switch to explicit pltpu.matmul_push_rhs / matmul_acc_lhs staging.
        def body(t, h):
            g = gi_ref[t]                                                   # (PB, 3H)
            gh = jnp.dot(h.astype(whh.dtype), whh,
                         preferred_element_type=jnp.float32) + bhh_b
            # Gate slices keep the [r|z|n] concatenation so the recurrence is ONE MXU
            # matmul per step.  At production sizes require H % 128 == 0 so these slices
            # (and the output lane dim) are lane-tile aligned; at toy H=32 they are
            # in-vreg selects.
            r = jax.nn.sigmoid(g[:, 0:H] + gh[:, 0:H])
            z = jax.nn.sigmoid(g[:, H:2 * H] + gh[:, H:2 * H])
            n = jnp.tanh(g[:, 2 * H:] + r * gh[:, 2 * H:])
            h_new = n + z * (h - n)            # == (1 - z)*n + z*h, one fewer VALU op
            act_ref[t] = h_new                 # VMEM staging scratch, not the output block
            return h_new

        # seq is static and small: fully unroll so the LLO scheduler can overlap the next
        # step's hidden matmul with the EUP (sigmoid/tanh) work of the current one.
        h_last = jax.lax.fori_loop(0, seq, body, h0, unroll=True)

        for p in range(P):                     # final hidden, already in (P, L, B, H) order
            hout_ref[p, l] = h_last[p * B:(p + 1) * B, :]
        if is_last:
            # Single bulk writeback of the last layer's sequence, already in the final
            # (pass, seq, batch, hidden) order -> no wrapper-side transpose, and the
            # output block is written once instead of per-timestep.
            for p in range(P):
                out_ref[p] = act_ref[:, p * B:(p + 1) * B, :]

    # ---- layer 0: the input sequence is shared across passes.  Project only B rows per
    #      timestep (P x fewer MXU FLOPs, no pass-tiled x in HBM) and replicate the result
    #      across the folded pass dimension once, outside the time loop. ----
    x2 = x_ref[...].reshape(seq * B, I).astype(wih0_ref.dtype)
    gi0 = jnp.dot(x2, wih0_ref[...], preferred_element_type=jnp.float32) + bih_ref[0:1, :]
    gi0 = gi0.reshape(seq, B, H3)
    for p in range(P):
        gi_ref[:, p * B:(p + 1) * B, :] = gi0
    recurrence(0, whh0_ref[...], is_last=(L == 1))

    # ---- layers 1..L-1: previous layer's activations (VMEM staging) are the input ----
    # TODO(synk): inter-layer MC dropout (dropout_prob > 0 in training mode) is not applied;
    # when added, each folded pass needs an independent pltpu.prng_seed mask here.
    for l in range(1, L):
        prev = act_ref[...].reshape(seq * PB, H).astype(wihr_ref.dtype)
        project_into_gi(prev, wihr_ref[l - 1], l)
        recurrence(l, whhr_ref[l - 1], is_last=(l == L - 1))


def uncertainty_gru_forward(x, hidden, params, num_models, num_passes):
    """Shared-input forward of UncertaintyGRU (all models x passes in one pallas_call)."""
    seq, B, I = x.shape
    MP, L, B2, H = hidden.shape
    M, P = num_models, num_passes
    assert MP == M * P and B2 == B
    PB = P * B

    wdt = jnp.bfloat16                      # weight storage dtype (single-pass MXU, half DMA)
    wih0 = params["wih0"].astype(wdt)
    whh0 = params["whh0"].astype(wdt)
    bih = params["bih"].astype(jnp.float32)
    bhh = params["bhh"].astype(jnp.float32)

    # Free reshape only: replica index m*P + p -> (m, p).  No wrapper transposes anywhere.
    h5 = hidden.reshape(M, P, L, B, H)

    in_specs = [
        pl.BlockSpec((seq, B, I), lambda m: (0, 0, 0)),                  # x (shared)
        pl.BlockSpec((None, P, L, B, H), lambda m: (m, 0, 0, 0, 0)),     # h0 (pass-major)
        pl.BlockSpec((None, I, 3 * H), lambda m: (m, 0, 0)),             # W_ih layer 0
        pl.BlockSpec((None, H, 3 * H), lambda m: (m, 0, 0)),             # W_hh layer 0
    ]
    inputs = [x, h5, wih0, whh0]
    if L > 1:                                                            # no dummy slabs for L == 1
        in_specs += [
            pl.BlockSpec((None, L - 1, H, 3 * H), lambda m: (m, 0, 0, 0)),  # W_ih layers 1..
            pl.BlockSpec((None, L - 1, H, 3 * H), lambda m: (m, 0, 0, 0)),  # W_hh layers 1..
        ]
        inputs += [params["wihr"].astype(wdt), params["whhr"].astype(wdt)]
    in_specs += [
        pl.BlockSpec((None, L, 3 * H), lambda m: (m, 0, 0)),             # b_ih all layers
        pl.BlockSpec((None, L, 3 * H), lambda m: (m, 0, 0)),             # b_hh all layers
    ]
    inputs += [bih, bhh]

    # Outputs come out of the kernel already in the final replica-major order, so the only
    # post-processing is a free reshape.
    out_specs = (
        pl.BlockSpec((None, P, seq, B, H), lambda m: (m, 0, 0, 0, 0)),   # output sequence
        pl.BlockSpec((None, P, L, B, H), lambda m: (m, 0, 0, 0, 0)),     # final hidden
    )
    out_shape = (
        jax.ShapeDtypeStruct((M, P, seq, B, H), jnp.float32),
        jax.ShapeDtypeStruct((M, P, L, B, H), jnp.float32),
    )

    # grid=(M,): one step per model.  On v7x the "parallel" axis spans both TensorCores;
    # on single-TC v5e/v6e with small M the models could additionally be folded into one
    # grid step (concatenated W_ih columns) to drop per-step overhead -- not needed here.
    grid_spec = pltpu.PrefetchScalarGridSpec(
        num_scalar_prefetch=0,
        grid=(M,),
        in_specs=in_specs,
        out_specs=out_specs,
        scratch_shapes=[
            # Hoisted per-layer gate projections gi = layer_in @ W_ih + b_ih (all timesteps).
            pltpu.VMEM((seq, PB, 3 * H), jnp.float32),
            # Inter-layer activation / last-layer output staging.
            pltpu.VMEM((seq, PB, H), jnp.float32),
        ],
    )

    kernel = functools.partial(_gru_kernel, L, P)
    out5, hout5 = pl.pallas_call(
        kernel,
        out_shape=out_shape,
        grid_spec=grid_spec,
        compiler_params=pltpu.CompilerParams(
            dimension_semantics=("parallel",),
            vmem_limit_bytes=64 * 1024 * 1024,
        ),
    )(*inputs)

    return out5.reshape(MP, seq, B, H), hout5.reshape(MP, L, B, H)


def init_params(key, input_size, hidden_size, num_layers, num_models):
    """Deterministic 'rl' initialization: orthogonal weights, zero biases."""
    I, H, L, M = input_size, hidden_size, num_layers, num_models
    orth = jax.nn.initializers.orthogonal()
    keys = jax.random.split(key, M * L * 2)
    kidx = 0
    wih0, whh0, wihr, whhr, bih, bhh = [], [], [], [], [], []
    for _ in range(M):
        wihr_m, whhr_m = [], []
        for l in range(L):
            in_dim = I if l == 0 else H
            w_ih = orth(keys[kidx], (3 * H, in_dim), jnp.float32); kidx += 1
            w_hh = orth(keys[kidx], (3 * H, H), jnp.float32); kidx += 1
            if l == 0:
                wih0.append(w_ih.T); whh0.append(w_hh.T)
            else:
                wihr_m.append(w_ih.T); whhr_m.append(w_hh.T)
        if L > 1:
            wihr.append(jnp.stack(wihr_m)); whhr.append(jnp.stack(whhr_m))
        bih.append(jnp.zeros((L, 3 * H), jnp.float32))   # 'rl' init -> zero biases
        bhh.append(jnp.zeros((L, 3 * H), jnp.float32))
    params = {"wih0": jnp.stack(wih0), "whh0": jnp.stack(whh0),
              "bih": jnp.stack(bih), "bhh": jnp.stack(bhh)}
    if L > 1:
        params["wihr"] = jnp.stack(wihr)
        params["whhr"] = jnp.stack(whhr)
    return params


def gru_reference(x, hidden, params, num_models, num_passes):
    """Pure-JAX f32 (HIGHEST-precision) reference matching PyTorch nn.GRU (no dropout)."""
    seq, B, _ = x.shape
    MP, L, _, H = hidden.shape
    dot = functools.partial(jnp.dot, precision=jax.lax.Precision.HIGHEST)
    outs, houts = [], []
    for m in range(MP):
        mi = m // num_passes
        layer_in = x
        h_layers = []
        for l in range(L):
            wih = params["wih0"][mi] if l == 0 else params["wihr"][mi, l - 1]
            whh = params["whh0"][mi] if l == 0 else params["whhr"][mi, l - 1]
            b_ih = params["bih"][mi, l]
            b_hh = params["bhh"][mi, l]
            h = hidden[m, l]
            ys = []
            for t in range(seq):
                gi = dot(layer_in[t], wih) + b_ih
                gh = dot(h, whh) + b_hh
                r = jax.nn.sigmoid(gi[:, :H] + gh[:, :H])
                z = jax.nn.sigmoid(gi[:, H:2 * H] + gh[:, H:2 * H])
                n = jnp.tanh(gi[:, 2 * H:] + r * gh[:, 2 * H:])
                h = (1.0 - z) * n + z * h
                ys.append(h)
            layer_in = jnp.stack(ys, 0)
            h_layers.append(h)
        outs.append(layer_in)
        houts.append(jnp.stack(h_layers, 0))
    return jnp.stack(outs, 0), jnp.stack(houts, 0)


if __name__ == "__main__":
    key = jax.random.PRNGKey(0)
    input_size, hidden_size, num_layers = 8, 32, 2
    num_models, num_passes = 2, 2
    seq, batch = 8, 4
    MP = num_models * num_passes

    k_p, k_x, k_h = jax.random.split(key, 3)
    params = init_params(k_p, input_size, hidden_size, num_layers, num_models)
    x = jax.random.normal(k_x, (seq, batch, input_size), jnp.float32)
    # init_hidden() would give zeros; use O(1) random values so each pass replica differs
    # and the pass<->batch fold ordering is actually exercised by the check.
    hidden = jax.random.normal(k_h, (MP, num_layers, batch, hidden_size), jnp.float32)

    out, hout = uncertainty_gru_forward(x, hidden, params, num_models, num_passes)
    out, hout = jax.block_until_ready((out, hout))

    assert out.shape == (MP, seq, batch, hidden_size)
    assert hout.shape == hidden.shape

    ref_out, ref_hout = gru_reference(x, hidden, params, num_models, num_passes)
    # Kernel matmuls run on the MXU in single-pass bf16; compare against the f32
    # (HIGHEST-precision) reference with a correspondingly relaxed tolerance.
    assert jnp.allclose(out, ref_out, atol=3e-2, rtol=3e-2), \
        float(jnp.max(jnp.abs(out - ref_out)))
    assert jnp.allclose(hout, ref_hout, atol=3e-2, rtol=3e-2), \
        float(jnp.max(jnp.abs(hout - ref_hout)))

    print("KERNEL_OK")
</pallas_src>

<mosaic_0001>
module attributes {stable_mosaic.version = 11 : i64} {
  func.func @_gru_kernel(%arg0: i32, %arg1: memref<8x4x8xf32, #tpu.memory_space<vmem>>, %arg2: memref<1x2x2x4x32xf32, #tpu.memory_space<vmem>>, %arg3: memref<1x8x96xbf16, #tpu.memory_space<vmem>>, %arg4: memref<1x32x96xbf16, #tpu.memory_space<vmem>>, %arg5: memref<1x1x32x96xbf16, #tpu.memory_space<vmem>>, %arg6: memref<1x1x32x96xbf16, #tpu.memory_space<vmem>>, %arg7: memref<1x2x96xf32, #tpu.memory_space<vmem>>, %arg8: memref<1x2x96xf32, #tpu.memory_space<vmem>>, %arg9: memref<1x2x8x4x32xf32, #tpu.memory_space<vmem>>, %arg10: memref<1x2x2x4x32xf32, #tpu.memory_space<vmem>>, %arg11: memref<8x8x96xf32, #tpu.memory_space<vmem>>, %arg12: memref<8x8x32xf32, #tpu.memory_space<vmem>>) attributes {dimension_semantics = [#tpu.dimension_semantics<parallel>], iteration_bounds = array<i64: 2>, scalar_prefetch = 0 : i64, scratch_operands = 2 : i64, tpu.core_type = #tpu.core_type<tc>, window_params = [{pipeline_mode = #tpu.pipeline_mode<synchronous>, transform_indices = @transform_0, window_bounds = array<i64: 8, 4, 8>}, {transform_indices = @transform_1, window_bounds = array<i64: 1, 2, 2, 4, 32>}, {transform_indices = @transform_2, window_bounds = array<i64: 1, 8, 96>}, {transform_indices = @transform_3, window_bounds = array<i64: 1, 32, 96>}, {transform_indices = @transform_4, window_bounds = array<i64: 1, 1, 32, 96>}, {transform_indices = @transform_5, window_bounds = array<i64: 1, 1, 32, 96>}, {transform_indices = @transform_6, window_bounds = array<i64: 1, 2, 96>}, {transform_indices = @transform_7, window_bounds = array<i64: 1, 2, 96>}, {transform_indices = @transform_8, window_bounds = array<i64: 1, 2, 8, 4, 32>}, {transform_indices = @transform_9, window_bounds = array<i64: 1, 2, 2, 4, 32>}]} {
    %c0 = arith.constant 0 : index
    %c0_0 = arith.constant 0 : index
    %c0_1 = arith.constant 0 : index
    %0 = vector.load %arg1[%c0, %c0_0, %c0_1] : memref<8x4x8xf32, #tpu.memory_space<vmem>>, vector<8x4x8xf32>
    %1 = vector.shape_cast %0 : vector<8x4x8xf32> to vector<32x8xf32>
    %2 = arith.truncf %1 : vector<32x8xf32> to vector<32x8xbf16>
    %c0_2 = arith.constant 0 : index
    %c0_3 = arith.constant 0 : index
    %c0_4 = arith.constant 0 : index
    %3 = vector.load %arg3[%c0_2, %c0_3, %c0_4] : memref<1x8x96xbf16, #tpu.memory_space<vmem>>, vector<1x8x96xbf16>
    %4 = vector.shape_cast %3 : vector<1x8x96xbf16> to vector<8x96xbf16>
    %cst = arith.constant dense<0.000000e+00> : vector<32x96xf32>
    %5 = tpu.matmul %2, %4, %cst {dimension_numbers = #tpu.dot_dimension_numbers<[1], [0], [0], [1], [0, 0, 1, 1], [], []>} : vector<32x8xbf16>, vector<8x96xbf16>, vector<32x96xf32> -> vector<32x96xf32>
    %c0_5 = arith.constant 0 : index
    %c0_6 = arith.constant 0 : index
    %c0_7 = arith.constant 0 : index
    %6 = vector.load %arg7[%c0_5, %c0_6, %c0_7] : memref<1x2x96xf32, #tpu.memory_space<vmem>>, vector<1x1x96xf32>
    %7 = vector.shape_cast %6 : vector<1x1x96xf32> to vector<1x96xf32>
    %8 = vector.broadcast %7 : vector<1x96xf32> to vector<32x96xf32>
    %9 = arith.addf %5, %8 : vector<32x96xf32>
    %10 = vector.shape_cast %9 : vector<32x96xf32> to vector<8x4x96xf32>
    %c0_8 = arith.constant 0 : index
    %c0_9 = arith.constant 0 : index
    %c0_10 = arith.constant 0 : index
    %11 = vector.load %arg11[%c0_8, %c0_9, %c0_10] : memref<8x8x96xf32, #tpu.memory_space<vmem>>, vector<8x4x96xf32>
    tpu.vector_store %arg11[%c0_8, %c0_9, %c0_10], %10 {strides = array<i32>} : memref<8x8x96xf32, #tpu.memory_space<vmem>>, vector<8x4x96xf32>,
    %c0_11 = arith.constant 0 : index
    %c4 = arith.constant 4 : index
    %c0_12 = arith.constant 0 : index
    %12 = vector.load %arg11[%c0_11, %c4, %c0_12] : memref<8x8x96xf32, #tpu.memory_space<vmem>>, vector<8x4x96xf32>
    tpu.vector_store %arg11[%c0_11, %c4, %c0_12], %10 {strides = array<i32>} : memref<8x8x96xf32, #tpu.memory_space<vmem>>, vector<8x4x96xf32>,
    %c0_13 = arith.constant 0 : index
    %c0_14 = arith.constant 0 : index
    %c0_15 = arith.constant 0 : index
    %13 = vector.load %arg4[%c0_13, %c0_14, %c0_15] : memref<1x32x96xbf16, #tpu.memory_space<vmem>>, vector<1x32x96xbf16>
    %14 = vector.shape_cast %13 : vector<1x32x96xbf16> to vector<32x96xbf16>
    %c0_16 = arith.constant 0 : index
    %c0_17 = arith.constant 0 : index
    %c0_18 = arith.constant 0 : index
    %15 = vector.load %arg8[%c0_16, %c0_17, %c0_18] : memref<1x2x96xf32, #tpu.memory_space<vmem>>, vector<1x1x96xf32>
    %16 = vector.shape_cast %15 : vector<1x1x96xf32> to vector<1x96xf32>
    %17 = vector.shape_cast %16 : vector<1x96xf32> to vector<1x96xf32>
    %18 = vector.broadcast %17 : vector<1x96xf32> to vector<8x96xf32>
    %c0_19 = arith.constant 0 : index
    %c0_20 = arith.constant 0 : index
    %c0_21 = arith.constant 0 : index
    %c0_22 = arith.constant 0 : index
    %c0_23 = arith.constant 0 : index
    %19 = vector.load %arg2[%c0_19, %c0_20, %c0_21, %c0_22, %c0_23] : memref<1x2x2x4x32xf32, #tpu.memory_space<vmem>>, vector<1x1x1x4x32xf32>
    %20 = vector.shape_cast %19 : vector<1x1x1x4x32xf32> to vector<4x32xf32>
    %c0_24 = arith.constant 0 : index
    %c1 = arith.constant 1 : index
    %c0_25 = arith.constant 0 : index
    %c0_26 = arith.constant 0 : index
    %c0_27 = arith.constant 0 : index
    %21 = vector.load %arg2[%c0_24, %c1, %c0_25, %c0_26, %c0_27] : memref<1x2x2x4x32xf32, #tpu.memory_space<vmem>>, vector<1x1x1x4x32xf32>
    %22 = vector.shape_cast %21 : vector<1x1x1x4x32xf32> to vector<4x32xf32>
    %23 = tpu.concatenate %20, %22 in 0 : vector<4x32xf32>, vector<4x32xf32> -> vector<8x32xf32>
    %c0_i32 = arith.constant 0 : i32
    %24 = arith.index_cast %c0_i32 : i32 to index
    %c0_28 = arith.constant 0 : index
    %c0_29 = arith.constant 0 : index
    %25 = vector.load %arg11[%24, %c0_28, %c0_29] : memref<8x8x96xf32, #tpu.memory_space<vmem>>, vector<1x8x96xf32>
    %26 = vector.shape_cast %25 : vector<1x8x96xf32> to vector<8x96xf32>
    %27 = arith.truncf %23 : vector<8x32xf32> to vector<8x32xbf16>
    %cst_30 = arith.constant dense<0.000000e+00> : vector<8x96xf32>
    %28 = tpu.matmul %27, %14, %cst_30 {dimension_numbers = #tpu.dot_dimension_numbers<[1], [0], [0], [1], [0, 0, 1, 1], [], []>} : vector<8x32xbf16>, vector<32x96xbf16>, vector<8x96xf32> -> vector<8x96xf32>
    %29 = arith.addf %28, %18 : vector<8x96xf32>
    %30 = vector.extract_strided_slice %26 {offsets = [0, 0], sizes = [8, 32], strides = [1, 1]} : vector<8x96xf32> to vector<8x32xf32>
    %31 = vector.extract_strided_slice %29 {offsets = [0, 0], sizes = [8, 32], strides = [1, 1]} : vector<8x96xf32> to vector<8x32xf32>
    %32 = arith.addf %30, %31 : vector<8x32xf32>
    %33 = arith.negf %32 : vector<8x32xf32>
    %34 = math.exp %33 : vector<8x32xf32>
    %cst_31 = arith.constant 1.000000e+00 : f32
    %35 = vector.broadcast %cst_31 : f32 to vector<8x32xf32>
    %36 = arith.addf %35, %34 : vector<8x32xf32>
    %37 = arith.divf %35, %36 : vector<8x32xf32>
    %38 = vector.extract_strided_slice %26 {offsets = [0, 32], sizes = [8, 32], strides = [1, 1]} : vector<8x96xf32> to vector<8x32xf32>
    %39 = vector.extract_strided_slice %29 {offsets = [0, 32], sizes = [8, 32], strides = [1, 1]} : vector<8x96xf32> to vector<8x32xf32>
    %40 = arith.addf %38, %39 : vector<8x32xf32>
    %41 = arith.negf %40 : vector<8x32xf32>
    %42 = math.exp %41 : vector<8x32xf32>
    %cst_32 = arith.constant 1.000000e+00 : f32
    %43 = vector.broadcast %cst_32 : f32 to vector<8x32xf32>
    %44 = arith.addf %43, %42 : vector<8x32xf32>
    %45 = arith.divf %43, %44 : vector<8x32xf32>
    %46 = vector.extract_strided_slice %26 {offsets = [0, 64], sizes = [8, 32], strides = [1, 1]} : vector<8x96xf32> to vector<8x32xf32>
    %47 = vector.extract_strided_slice %29 {offsets = [0, 64], sizes = [8, 32], strides = [1, 1]} : vector<8x96xf32> to vector<8x32xf32>
    %48 = arith.mulf %37, %47 : vector<8x32xf32>
    %49 = arith.addf %46, %48 : vector<8x32xf32>
    %50 = math.tanh %49 : vector<8x32xf32>
    %51 = arith.subf %23, %50 : vector<8x32xf32>
    %52 = arith.mulf %45, %51 : vector<8x32xf32>
    %53 = arith.addf %50, %52 : vector<8x32xf32>
    %54 = arith.index_cast %c0_i32 : i32 to index
    %c0_33 = arith.constant 0 : index
    %c0_34 = arith.constant 0 : index
    %55 = vector.load %arg12[%54, %c0_33, %c0_34] : memref<8x8x32xf32, #tpu.memory_space<vmem>>, vector<1x8x32xf32>
    %56 = vector.shape_cast %55 : vector<1x8x32xf32> to vector<8x32xf32>
    %57 = vector.shape_cast %53 : vector<8x32xf32> to vector<1x8x32xf32>
    tpu.vector_store %arg12[%54, %c0_33, %c0_34], %57 {strides = array<i32>} : memref<8x8x32xf32, #tpu.memory_space<vmem>>, vector<1x8x32xf32>,
    %c1_i32 = arith.constant 1 : i32
    %58 = arith.index_cast %c1_i32 : i32 to index
    %c0_35 = arith.constant 0 : index
    %c0_36 = arith.constant 0 : index
    %59 = vector.load %arg11[%58, %c0_35, %c0_36] : memref<8x8x96xf32, #tpu.memory_space<vmem>>, vector<1x8x96xf32>
    %60 = vector.shape_cast %59 : vector<1x8x96xf32> to vector<8x96xf32>
    %61 = arith.truncf %53 : vector<8x32xf32> to vector<8x32xbf16>
    %cst_37 = arith.constant dense<0.000000e+00> : vector<8x96xf32>
    %62 = tpu.matmul %61, %14, %cst_37 {dimension_numbers = #tpu.dot_dimension_numbers<[1], [0], [0], [1], [0, 0, 1, 1], [], []>} : vector<8x32xbf16>, vector<32x96xbf16>, vector<8x96xf32> -> vector<8x96xf32>
    %63 = arith.addf %62, %18 : vector<8x96xf32>
    %64 = vector.extract_strided_slice %60 {offsets = [0, 0], sizes = [8, 32], strides = [1, 1]} : vector<8x96xf32> to vector<8x32xf32>
    %65 = vector.extract_strided_slice %63 {offsets = [0, 0], sizes = [8, 32], strides = [1, 1]} : vector<8x96xf32> to vector<8x32xf32>
    %66 = arith.addf %64, %65 : vector<8x32xf32>
    %67 = arith.negf %66 : vector<8x32xf32>
    %68 = math.exp %67 : vector<8x32xf32>
    %cst_38 = arith.constant 1.000000e+00 : f32
    %69 = vector.broadcast %cst_38 : f32 to vector<8x32xf32>
    %70 = arith.addf %69, %68 : vector<8x32xf32>
    %71 = arith.divf %69, %70 : vector<8x32xf32>
    %72 = vector.extract_strided_slice %60 {offsets = [0, 32], sizes = [8, 32], strides = [1, 1]} : vector<8x96xf32> to vector<8x32xf32>
    %73 = vector.extract_strided_slice %63 {offsets = [0, 32], sizes = [8, 32], strides = [1, 1]} : vector<8x96xf32> to vector<8x32xf32>
    %74 = arith.addf %72, %73 : vector<8x32xf32>
    %75 = arith.negf %74 : vector<8x32xf32>
    %76 = math.exp %75 : vector<8x32xf32>
    %cst_39 = arith.constant 1.000000e+00 : f32
    %77 = vector.broadcast %cst_39 : f32 to vector<8x32xf32>
    %78 = arith.addf %77, %76 : vector<8x32xf32>
    %79 = arith.divf %77, %78 : vector<8x32xf32>
    %80 = vector.extract_strided_slice %60 {offsets = [0, 64], sizes = [8, 32], strides = [1, 1]} : vector<8x96xf32> to vector<8x32xf32>
    %81 = vector.extract_strided_slice %63 {offsets = [0, 64], sizes = [8, 32], strides = [1, 1]} : vector<8x96xf32> to vector<8x32xf32>
    %82 = arith.mulf %71, %81 : vector<8x32xf32>
    %83 = arith.addf %80, %82 : vector<8x32xf32>
    %84 = math.tanh %83 : vector<8x32xf32>
    %85 = arith.subf %53, %84 : vector<8x32xf32>
    %86 = arith.mulf %79, %85 : vector<8x32xf32>
    %87 = arith.addf %84, %86 : vector<8x32xf32>
    %88 = arith.index_cast %c1_i32 : i32 to index
    %c0_40 = arith.constant 0 : index
    %c0_41 = arith.constant 0 : index
    %89 = vector.load %arg12[%88, %c0_40, %c0_41] : memref<8x8x32xf32, #tpu.memory_space<vmem>>, vector<1x8x32xf32>
    %90 = vector.shape_cast %89 : vector<1x8x32xf32> to vector<8x32xf32>
    %91 = vector.shape_cast %87 : vector<8x32xf32> to vector<1x8x32xf32>
    tpu.vector_store %arg12[%88, %c0_40, %c0_41], %91 {strides = array<i32>} : memref<8x8x32xf32, #tpu.memory_space<vmem>>, vector<1x8x32xf32>,
    %c2_i32 = arith.constant 2 : i32
    %92 = arith.index_cast %c2_i32 : i32 to index
    %c0_42 = arith.constant 0 : index
    %c0_43 = arith.constant 0 : index
    %93 = vector.load %arg11[%92, %c0_42, %c0_43] : memref<8x8x96xf32, #tpu.memory_space<vmem>>, vector<1x8x96xf32>
    %94 = vector.shape_cast %93 : vector<1x8x96xf32> to vector<8x96xf32>
    %95 = arith.truncf %87 : vector<8x32xf32> to vector<8x32xbf16>
    %cst_44 = arith.constant dense<0.000000e+00> : vector<8x96xf32>
    %96 = tpu.matmul %95, %14, %cst_44 {dimension_numbers = #tpu.dot_dimension_numbers<[1], [0], [0], [1], [0, 0, 1, 1], [], []>} : vector<8x32xbf16>, vector<32x96xbf16>, vector<8x96xf32> -> vector<8x96xf32>
    %97 = arith.addf %96, %18 : vector<8x96xf32>
    %98 = vector.extract_strided_slice %94 {offsets = [0, 0], sizes = [8, 32], strides = [1, 1]} : vector<8x96xf32> to vector<8x32xf32>
    %99 = vector.extract_strided_slice %97 {offsets = [0, 0], sizes = [8, 32], strides = [1, 1]} : vector<8x96xf32> to vector<8x32xf32>
    %100 = arith.addf %98, %99 : vector<8x32xf32>
    %101 = arith.negf %100 : vector<8x32xf32>
    %102 = math.exp %101 : vector<8x32xf32>
    %cst_45 = arith.constant 1.000000e+00 : f32
    %103 = vector.broadcast %cst_45 : f32 to vector<8x32xf32>
    %104 = arith.addf %103, %102 : vector<8x32xf32>
    %105 = arith.divf %103, %104 : vector<8x32xf32>
    %106 = vector.extract_strided_slice %94 {offsets = [0, 32], sizes = [8, 32], strides = [1, 1]} : vector<8x96xf32> to vector<8x32xf32>
    %107 = vector.extract_strided_slice %97 {offsets = [0, 32], sizes = [8, 32], strides = [1, 1]} : vector<8x96xf32> to vector<8x32xf32>
    %108 = arith.addf %106, %107 : vector<8x32xf32>
    %109 = arith.negf %108 : vector<8x32xf32>
    %110 = math.exp %109 : vector<8x32xf32>
    %cst_46 = arith.constant 1.000000e+00 : f32
    %111 = vector.broadcast %cst_46 : f32 to vector<8x32xf32>
    %112 = arith.addf %111, %110 : vector<8x32xf32>
    %113 = arith.divf %111, %112 : vector<8x32xf32>
    %114 = vector.extract_strided_slice %94 {offsets = [0, 64], sizes = [8, 32], strides = [1, 1]} : vector<8x96xf32> to vector<8x32xf32>
    %115 = vector.extract_strided_slice %97 {offsets = [0, 64], sizes = [8, 32], strides = [1, 1]} : vector<8x96xf32> to vector<8x32xf32>
    %116 = arith.mulf %105, %115 : vector<8x32xf32>
    %117 = arith.addf %114, %116 : vector<8x32xf32>
    %118 = math.tanh %117 : vector<8x32xf32>
    %119 = arith.subf %87, %118 : vector<8x32xf32>
    %120 = arith.mulf %113, %119 : vector<8x32xf32>
    %121 = arith.addf %118, %120 : vector<8x32xf32>
    %122 = arith.index_cast %c2_i32 : i32 to index
    %c0_47 = arith.constant 0 : index
    %c0_48 = arith.constant 0 : index
    %123 = vector.load %arg12[%122, %c0_47, %c0_48] : memref<8x8x32xf32, #tpu.memory_space<vmem>>, vector<1x8x32xf32>
    %124 = vector.shape_cast %123 : vector<1x8x32xf32> to vector<8x32xf32>
    %125 = vector.shape_cast %121 : vector<8x32xf32> to vector<1x8x32xf32>
    tpu.vector_store %arg12[%122, %c0_47, %c0_48], %125 {strides = array<i32>} : memref<8x8x32xf32, #tpu.memory_space<vmem>>, vector<1x8x32xf32>,
    %c3_i32 = arith.constant 3 : i32
    %126 = arith.index_cast %c3_i32 : i32 to index
    %c0_49 = arith.constant 0 : index
    %c0_50 = arith.constant 0 : index
    %127 = vector.load %arg11[%126, %c0_49, %c0_50] : memref<8x8x96xf32, #tpu.memory_space<vmem>>, vector<1x8x96xf32>
    %128 = vector.shape_cast %127 : vector<1x8x96xf32> to vector<8x96xf32>
    %129 = arith.truncf %121 : vector<8x32xf32> to vector<8x32xbf16>
    %cst_51 = arith.constant dense<0.000000e+00> : vector<8x96xf32>
    %130 = tpu.matmul %129, %14, %cst_51 {dimension_numbers = #tpu.dot_dimension_numbers<[1], [0], [0], [1], [0, 0, 1, 1], [], []>} : vector<8x32xbf16>, vector<32x96xbf16>, vector<8x96xf32> -> vector<8x96xf32>
    %131 = arith.addf %130, %18 : vector<8x96xf32>
    %132 = vector.extract_strided_slice %128 {offsets = [0, 0], sizes = [8, 32], strides = [1, 1]} : vector<8x96xf32> to vector<8x32xf32>
    %133 = vector.extract_strided_slice %131 {offsets = [0, 0], sizes = [8, 32], strides = [1, 1]} : vector<8x96xf32> to vector<8x32xf32>
    %134 = arith.addf %132, %133 : vector<8x32xf32>
    %135 = arith.negf %134 : vector<8x32xf32>
    %136 = math.exp %135 : vector<8x32xf32>
    %cst_52 = arith.constant 1.000000e+00 : f32
    %137 = vector.broadcast %cst_52 : f32 to vector<8x32xf32>
    %138 = arith.addf %137, %136 : vector<8x32xf32>
    %139 = arith.divf %137, %138 : vector<8x32xf32>
    %140 = vector.extract_strided_slice %128 {offsets = [0, 32], sizes = [8, 32], strides = [1, 1]} : vector<8x96xf32> to vector<8x32xf32>
    %141 = vector.extract_strided_slice %131 {offsets = [0, 32], sizes = [8, 32], strides = [1, 1]} : vector<8x96xf32> to vector<8x32xf32>
    %142 = arith.addf %140, %141 : vector<8x32xf32>
    %143 = arith.negf %142 : vector<8x32xf32>
    %144 = math.exp %143 : vector<8x32xf32>
    %cst_53 = arith.constant 1.000000e+00 : f32
    %145 = vector.broadcast %cst_53 : f32 to vector<8x32xf32>
    %146 = arith.addf %145, %144 : vector<8x32xf32>
    %147 = arith.divf %145, %146 : vector<8x32xf32>
    %148 = vector.extract_strided_slice %128 {offsets = [0, 64], sizes = [8, 32], strides = [1, 1]} : vector<8x96xf32> to vector<8x32xf32>
    %149 = vector.extract_strided_slice %131 {offsets = [0, 64], sizes = [8, 32], strides = [1, 1]} : vector<8x96xf32> to vector<8x32xf32>
    %150 = arith.mulf %139, %149 : vector<8x32xf32>
    %151 = arith.addf %148, %150 : vector<8x32xf32>
    %152 = math.tanh %151 : vector<8x32xf32>
    %153 = arith.subf %121, %152 : vector<8x32xf32>
    %154 = arith.mulf %147, %153 : vector<8x32xf32>
    %155 = arith.addf %152, %154 : vector<8x32xf32>
    %156 = arith.index_cast %c3_i32 : i32 to index
    %c0_54 = arith.constant 0 : index
    %c0_55 = arith.constant 0 : index
    %157 = vector.load %arg12[%156, %c0_54, %c0_55] : memref<8x8x32xf32, #tpu.memory_space<vmem>>, vector<1x8x32xf32>
    %158 = vector.shape_cast %157 : vector<1x8x32xf32> to vector<8x32xf32>
    %159 = vector.shape_cast %155 : vector<8x32xf32> to vector<1x8x32xf32>
    tpu.vector_store %arg12[%156, %c0_54, %c0_55], %159 {strides = array<i32>} : memref<8x8x32xf32, #tpu.memory_space<vmem>>, vector<1x8x32xf32>,
    %c4_i32 = arith.constant 4 : i32
    %160 = arith.index_cast %c4_i32 : i32 to index
    %c0_56 = arith.constant 0 : index
    %c0_57 = arith.constant 0 : index
    %161 = vector.load %arg11[%160, %c0_56, %c0_57] : memref<8x8x96xf32, #tpu.memory_space<vmem>>, vector<1x8x96xf32>
    %162 = vector.shape_cast %161 : vector<1x8x96xf32> to vector<8x96xf32>
    %163 = arith.truncf %155 : vector<8x32xf32> to vector<8x32xbf16>
    %cst_58 = arith.constant dense<0.000000e+00> : vector<8x96xf32>
    %164 = tpu.matmul %163, %14, %cst_58 {dimension_numbers = #tpu.dot_dimension_numbers<[1], [0], [0], [1], [0, 0, 1, 1], [], []>} : vector<8x32xbf16>, vector<32x96xbf16>, vector<8x96xf32> -> vector<8x96xf32>
    %165 = arith.addf %164, %18 : vector<8x96xf32>
    %166 = vector.extract_strided_slice %162 {offsets = [0, 0], sizes = [8, 32], strides = [1, 1]} : vector<8x96xf32> to vector<8x32xf32>
    %167 = vector.extract_strided_slice %165 {offsets = [0, 0], sizes = [8, 32], strides = [1, 1]} : vector<8x96xf32> to vector<8x32xf32>
    %168 = arith.addf %166, %167 : vector<8x32xf32>
    %169 = arith.negf %168 : vector<8x32xf32>
    %170 = math.exp %169 : vector<8x32xf32>
    %cst_59 = arith.constant 1.000000e+00 : f32
    %171 = vector.broadcast %cst_59 : f32 to vector<8x32xf32>
    %172 = arith.addf %171, %170 : vector<8x32xf32>
    %173 = arith.divf %171, %172 : vector<8x32xf32>
    %174 = vector.extract_strided_slice %162 {offsets = [0, 32], sizes = [8, 32], strides = [1, 1]} : vector<8x96xf32> to vector<8x32xf32>
    %175 = vector.extract_strided_slice %165 {offsets = [0, 32], sizes = [8, 32], strides = [1, 1]} : vector<8x96xf32> to vector<8x32xf32>
    %176 = arith.addf %174, %175 : vector<8x32xf32>
    %177 = arith.negf %176 : vector<8x32xf32>
    %178 = math.exp %177 : vector<8x32xf32>
    %cst_60 = arith.constant 1.000000e+00 : f32
    %179 = vector.broadcast %cst_60 : f32 to vector<8x32xf32>
    %180 = arith.addf %179, %178 : vector<8x32xf32>
    %181 = arith.divf %179, %180 : vector<8x32xf32>
    %182 = vector.extract_strided_slice %162 {offsets = [0, 64], sizes = [8, 32], strides = [1, 1]} : vector<8x96xf32> to vector<8x32xf32>
    %183 = vector.extract_strided_slice %165 {offsets = [0, 64], sizes = [8, 32], strides = [1, 1]} : vector<8x96xf32> to vector<8x32xf32>
    %184 = arith.mulf %173, %183 : vector<8x32xf32>
    %185 = arith.addf %182, %184 : vector<8x32xf32>
    %186 = math.tanh %185 : vector<8x32xf32>
    %187 = arith.subf %155, %186 : vector<8x32xf32>
    %188 = arith.mulf %181, %187 : vector<8x32xf32>
    %189 = arith.addf %186, %188 : vector<8x32xf32>
    %190 = arith.index_cast %c4_i32 : i32 to index
    %c0_61 = arith.constant 0 : index
    %c0_62 = arith.constant 0 : index
    %191 = vector.load %arg12[%190, %c0_61, %c0_62] : memref<8x8x32xf32, #tpu.memory_space<vmem>>, vector<1x8x32xf32>
    %192 = vector.shape_cast %191 : vector<1x8x32xf32> to vector<8x32xf32>
    %193 = vector.shape_cast %189 : vector<8x32xf32> to vector<1x8x32xf32>
    tpu.vector_store %arg12[%190, %c0_61, %c0_62], %193 {strides = array<i32>} : memref<8x8x32xf32, #tpu.memory_space<vmem>>, vector<1x8x32xf32>,
    %c5_i32 = arith.constant 5 : i32
    %194 = arith.index_cast %c5_i32 : i32 to index
    %c0_63 = arith.constant 0 : index
    %c0_64 = arith.constant 0 : index
    %195 = vector.load %arg11[%194, %c0_63, %c0_64] : memref<8x8x96xf32, #tpu.memory_space<vmem>>, vector<1x8x96xf32>
    %196 = vector.shape_cast %195 : vector<1x8x96xf32> to vector<8x96xf32>
    %197 = arith.truncf %189 : vector<8x32xf32> to vector<8x32xbf16>
    %cst_65 = arith.constant dense<0.000000e+00> : vector<8x96xf32>
    %198 = tpu.matmul %197, %14, %cst_65 {dimension_numbers = #tpu.dot_dimension_numbers<[1], [0], [0], [1], [0, 0, 1, 1], [], []>} : vector<8x32xbf16>, vector<32x96xbf16>, vector<8x96xf32> -> vector<8x96xf32>
    %199 = arith.addf %198, %18 : vector<8x96xf32>
    %200 = vector.extract_strided_slice %196 {offsets = [0, 0], sizes = [8, 32], strides = [1, 1]} : vector<8x96xf32> to vector<8x32xf32>
    %201 = vector.extract_strided_slice %199 {offsets = [0, 0], sizes = [8, 32], strides = [1, 1]} : vector<8x96xf32> to vector<8x32xf32>
    %202 = arith.addf %200, %201 : vector<8x32xf32>
    %203 = arith.negf %202 : vector<8x32xf32>
    %204 = math.exp %203 : vector<8x32xf32>
    %cst_66 = arith.constant 1.000000e+00 : f32
    %205 = vector.broadcast %cst_66 : f32 to vector<8x32xf32>
    %206 = arith.addf %205, %204 : vector<8x32xf32>
    %207 = arith.divf %205, %206 : vector<8x32xf32>
    %208 = vector.extract_strided_slice %196 {offsets = [0, 32], sizes = [8, 32], strides = [1, 1]} : vector<8x96xf32> to vector<8x32xf32>
    %209 = vector.extract_strided_slice %199 {offsets = [0, 32], sizes = [8, 32], strides = [1, 1]} : vector<8x96xf32> to vector<8x32xf32>
    %210 = arith.addf %208, %209 : vector<8x32xf32>
    %211 = arith.negf %210 : vector<8x32xf32>
    %212 = math.exp %211 : vector<8x32xf32>
    %cst_67 = arith.constant 1.000000e+00 : f32
    %213 = vector.broadcast %cst_67 : f32 to vector<8x32xf32>
    %214 = arith.addf %213, %212 : vector<8x32xf32>
    %215 = arith.divf %213, %214 : vector<8x32xf32>
    %216 = vector.extract_strided_slice %196 {offsets = [0, 64], sizes = [8, 32], strides = [1, 1]} : vector<8x96xf32> to vector<8x32xf32>
    %217 = vector.extract_strided_slice %199 {offsets = [0, 64], sizes = [8, 32], strides = [1, 1]} : vector<8x96xf32> to vector<8x32xf32>
    %218 = arith.mulf %207, %217 : vector<8x32xf32>
    %219 = arith.addf %216, %218 : vector<8x32xf32>
    %220 = math.tanh %219 : vector<8x32xf32>
    %221 = arith.subf %189, %220 : vector<8x32xf32>
    %222 = arith.mulf %215, %221 : vector<8x32xf32>
    %223 = arith.addf %220, %222 : vector<8x32xf32>
    %224 = arith.index_cast %c5_i32 : i32 to index
    %c0_68 = arith.constant 0 : index
    %c0_69 = arith.constant 0 : index
    %225 = vector.load %arg12[%224, %c0_68, %c0_69] : memref<8x8x32xf32, #tpu.memory_space<vmem>>, vector<1x8x32xf32>
    %226 = vector.shape_cast %225 : vector<1x8x32xf32> to vector<8x32xf32>
    %227 = vector.shape_cast %223 : vector<8x32xf32> to vector<1x8x32xf32>
    tpu.vector_store %arg12[%224, %c0_68, %c0_69], %227 {strides = array<i32>} : memref<8x8x32xf32, #tpu.memory_space<vmem>>, vector<1x8x32xf32>,
    %c6_i32 = arith.constant 6 : i32
    %228 = arith.index_cast %c6_i32 : i32 to index
    %c0_70 = arith.constant 0 : index
    %c0_71 = arith.constant 0 : index
    %229 = vector.load %arg11[%228, %c0_70, %c0_71] : memref<8x8x96xf32, #tpu.memory_space<vmem>>, vector<1x8x96xf32>
    %230 = vector.shape_cast %229 : vector<1x8x96xf32> to vector<8x96xf32>
    %231 = arith.truncf %223 : vector<8x32xf32> to vector<8x32xbf16>
    %cst_72 = arith.constant dense<0.000000e+00> : vector<8x96xf32>
    %232 = tpu.matmul %231, %14, %cst_72 {dimension_numbers = #tpu.dot_dimension_numbers<[1], [0], [0], [1], [0, 0, 1, 1], [], []>} : vector<8x32xbf16>, vector<32x96xbf16>, vector<8x96xf32> -> vector<8x96xf32>
    %233 = arith.addf %232, %18 : vector<8x96xf32>
    %234 = vector.extract_strided_slice %230 {offsets = [0, 0], sizes = [8, 32], strides = [1, 1]} : vector<8x96xf32> to vector<8x32xf32>
    %235 = vector.extract_strided_slice %233 {offsets = [0, 0], sizes = [8, 32], strides = [1, 1]} : vector<8x96xf32> to vector<8x32xf32>
    %236 = arith.addf %234, %235 : vector<8x32xf32>
    %237 = arith.negf %236 : vector<8x32xf32>
    %238 = math.exp %237 : vector<8x32xf32>
    %cst_73 = arith.constant 1.000000e+00 : f32
    %239 = vector.broadcast %cst_73 : f32 to vector<8x32xf32>
    %240 = arith.addf %239, %238 : vector<8x32xf32>
    %241 = arith.divf %239, %240 : vector<8x32xf32>
    %242 = vector.extract_strided_slice %230 {offsets = [0, 32], sizes = [8, 32], strides = [1, 1]} : vector<8x96xf32> to vector<8x32xf32>
    %243 = vector.extract_strided_slice %233 {offsets = [0, 32], sizes = [8, 32], strides = [1, 1]} : vector<8x96xf32> to vector<8x32xf32>
    %244 = arith.addf %242, %243 : vector<8x32xf32>
    %245 = arith.negf %244 : vector<8x32xf32>
    %246 = math.exp %245 : vector<8x32xf32>
    %cst_74 = arith.constant 1.000000e+00 : f32
    %247 = vector.broadcast %cst_74 : f32 to vector<8x32xf32>
    %248 = arith.addf %247, %246 : vector<8x32xf32>
    %249 = arith.divf %247, %248 : vector<8x32xf32>
    %250 = vector.extract_strided_slice %230 {offsets = [0, 64], sizes = [8, 32], strides = [1, 1]} : vector<8x96xf32> to vector<8x32xf32>
    %251 = vector.extract_strided_slice %233 {offsets = [0, 64], sizes = [8, 32], strides = [1, 1]} : vector<8x96xf32> to vector<8x32xf32>
    %252 = arith.mulf %241, %251 : vector<8x32xf32>
    %253 = arith.addf %250, %252 : vector<8x32xf32>
    %254 = math.tanh %253 : vector<8x32xf32>
    %255 = arith.subf %223, %254 : vector<8x32xf32>
    %256 = arith.mulf %249, %255 : vector<8x32xf32>
    %257 = arith.addf %254, %256 : vector<8x32xf32>
    %258 = arith.index_cast %c6_i32 : i32 to index
    %c0_75 = arith.constant 0 : index
    %c0_76 = arith.constant 0 : index
    %259 = vector.load %arg12[%258, %c0_75, %c0_76] : memref<8x8x32xf32, #tpu.memory_space<vmem>>, vector<1x8x32xf32>
    %260 = vector.shape_cast %259 : vector<1x8x32xf32> to vector<8x32xf32>
    %261 = vector.shape_cast %257 : vector<8x32xf32> to vector<1x8x32xf32>
    tpu.vector_store %arg12[%258, %c0_75, %c0_76], %261 {strides = array<i32>} : memref<8x8x32xf32, #tpu.memory_space<vmem>>, vector<1x8x32xf32>,
    %c7_i32 = arith.constant 7 : i32
    %262 = arith.index_cast %c7_i32 : i32 to index
    %c0_77 = arith.constant 0 : index
    %c0_78 = arith.constant 0 : index
    %263 = vector.load %arg11[%262, %c0_77, %c0_78] : memref<8x8x96xf32, #tpu.memory_space<vmem>>, vector<1x8x96xf32>
    %264 = vector.shape_cast %263 : vector<1x8x96xf32> to vector<8x96xf32>
    %265 = arith.truncf %257 : vector<8x32xf32> to vector<8x32xbf16>
    %cst_79 = arith.constant dense<0.000000e+00> : vector<8x96xf32>
    %266 = tpu.matmul %265, %14, %cst_79 {dimension_numbers = #tpu.dot_dimension_numbers<[1], [0], [0], [1], [0, 0, 1, 1], [], []>} : vector<8x32xbf16>, vector<32x96xbf16>, vector<8x96xf32> -> vector<8x96xf32>
    %267 = arith.addf %266, %18 : vector<8x96xf32>
    %268 = vector.extract_strided_slice %264 {offsets = [0, 0], sizes = [8, 32], strides = [1, 1]} : vector<8x96xf32> to vector<8x32xf32>
    %269 = vector.extract_strided_slice %267 {offsets = [0, 0], sizes = [8, 32], strides = [1, 1]} : vector<8x96xf32> to vector<8x32xf32>
    %270 = arith.addf %268, %269 : vector<8x32xf32>
    %271 = arith.negf %270 : vector<8x32xf32>
    %272 = math.exp %271 : vector<8x32xf32>
    %cst_80 = arith.constant 1.000000e+00 : f32
    %273 = vector.broadcast %cst_80 : f32 to vector<8x32xf32>
    %274 = arith.addf %273, %272 : vector<8x32xf32>
    %275 = arith.divf %273, %274 : vector<8x32xf32>
    %276 = vector.extract_strided_slice %264 {offsets = [0, 32], sizes = [8, 32], strides = [1, 1]} : vector<8x96xf32> to vector<8x32xf32>
    %277 = vector.extract_strided_slice %267 {offsets = [0, 32], sizes = [8, 32], strides = [1, 1]} : vector<8x96xf32> to vector<8x32xf32>
    %278 = arith.addf %276, %277 : vector<8x32xf32>
    %279 = arith.negf %278 : vector<8x32xf32>
    %280 = math.exp %279 : vector<8x32xf32>
    %cst_81 = arith.constant 1.000000e+00 : f32
    %281 = vector.broadcast %cst_81 : f32 to vector<8x32xf32>
    %282 = arith.addf %281, %280 : vector<8x32xf32>
    %283 = arith.divf %281, %282 : vector<8x32xf32>
    %284 = vector.extract_strided_slice %264 {offsets = [0, 64], sizes = [8, 32], strides = [1, 1]} : vector<8x96xf32> to vector<8x32xf32>
    %285 = vector.extract_strided_slice %267 {offsets = [0, 64], sizes = [8, 32], strides = [1, 1]} : vector<8x96xf32> to vector<8x32xf32>
    %286 = arith.mulf %275, %285 : vector<8x32xf32>
    %287 = arith.addf %284, %286 : vector<8x32xf32>
    %288 = math.tanh %287 : vector<8x32xf32>
    %289 = arith.subf %257, %288 : vector<8x32xf32>
    %290 = arith.mulf %283, %289 : vector<8x32xf32>
    %291 = arith.addf %288, %290 : vector<8x32xf32>
    %292 = arith.index_cast %c7_i32 : i32 to index
    %c0_82 = arith.constant 0 : index
    %c0_83 = arith.constant 0 : index
    %293 = vector.load %arg12[%292, %c0_82, %c0_83] : memref<8x8x32xf32, #tpu.memory_space<vmem>>, vector<1x8x32xf32>
    %294 = vector.shape_cast %293 : vector<1x8x32xf32> to vector<8x32xf32>
    %295 = vector.shape_cast %291 : vector<8x32xf32> to vector<1x8x32xf32>
    tpu.vector_store %arg12[%292, %c0_82, %c0_83], %295 {strides = array<i32>} : memref<8x8x32xf32, #tpu.memory_space<vmem>>, vector<1x8x32xf32>,
    %c8_i32 = arith.constant 8 : i32
    %296 = vector.extract_strided_slice %291 {offsets = [0, 0], sizes = [4, 32], strides = [1, 1]} : vector<8x32xf32> to vector<4x32xf32>
    %c0_84 = arith.constant 0 : index
    %c0_85 = arith.constant 0 : index
    %c0_86 = arith.constant 0 : index
    %c0_87 = arith.constant 0 : index
    %c0_88 = arith.constant 0 : index
    %297 = vector.load %arg10[%c0_84, %c0_85, %c0_86, %c0_87, %c0_88] : memref<1x2x2x4x32xf32, #tpu.memory_space<vmem>>, vector<1x1x1x4x32xf32>
    %298 = vector.shape_cast %297 : vector<1x1x1x4x32xf32> to vector<4x32xf32>
    %299 = vector.shape_cast %296 : vector<4x32xf32> to vector<1x1x1x4x32xf32>
    tpu.vector_store %arg10[%c0_84, %c0_85, %c0_86, %c0_87, %c0_88], %299 {strides = array<i32>} : memref<1x2x2x4x32xf32, #tpu.memory_space<vmem>>, vector<1x1x1x4x32xf32>,
    %300 = vector.extract_strided_slice %291 {offsets = [4, 0], sizes = [4, 32], strides = [1, 1]} : vector<8x32xf32> to vector<4x32xf32>
    %c0_89 = arith.constant 0 : index
    %c1_90 = arith.constant 1 : index
    %c0_91 = arith.constant 0 : index
    %c0_92 = arith.constant 0 : index
    %c0_93 = arith.constant 0 : index
    %301 = vector.load %arg10[%c0_89, %c1_90, %c0_91, %c0_92, %c0_93] : memref<1x2x2x4x32xf32, #tpu.memory_space<vmem>>, vector<1x1x1x4x32xf32>
    %302 = vector.shape_cast %301 : vector<1x1x1x4x32xf32> to vector<4x32xf32>
    %303 = vector.shape_cast %300 : vector<4x32xf32> to vector<1x1x1x4x32xf32>
    tpu.vector_store %arg10[%c0_89, %c1_90, %c0_91, %c0_92, %c0_93], %303 {strides = array<i32>} : memref<1x2x2x4x32xf32, #tpu.memory_space<vmem>>, vector<1x1x1x4x32xf32>,
    %c0_94 = arith.constant 0 : index
    %c0_95 = arith.constant 0 : index
    %c0_96 = arith.constant 0 : index
    %304 = vector.load %arg12[%c0_94, %c0_95, %c0_96] : memref<8x8x32xf32, #tpu.memory_space<vmem>>, vector<8x8x32xf32>
    %305 = vector.shape_cast %304 : vector<8x8x32xf32> to vector<64x32xf32>
    %306 = arith.truncf %305 : vector<64x32xf32> to vector<64x32xbf16>
    %c0_97 = arith.constant 0 : index
    %c0_98 = arith.constant 0 : index
    %c0_99 = arith.constant 0 : index
    %c0_100 = arith.constant 0 : index
    %307 = vector.load %arg5[%c0_97, %c0_98, %c0_99, %c0_100] : memref<1x1x32x96xbf16, #tpu.memory_space<vmem>>, vector<1x1x32x96xbf16>
    %308 = vector.shape_cast %307 : vector<1x1x32x96xbf16> to vector<32x96xbf16>
    %cst_101 = arith.constant dense<0.000000e+00> : vector<64x96xf32>
    %309 = tpu.matmul %306, %308, %cst_101 {dimension_numbers = #tpu.dot_dimension_numbers<[1], [0], [0], [1], [0, 0, 1, 1], [], []>} : vector<64x32xbf16>, vector<32x96xbf16>, vector<64x96xf32> -> vector<64x96xf32>
    %c0_102 = arith.constant 0 : index
    %c1_103 = arith.constant 1 : index
    %c0_104 = arith.constant 0 : index
    %310 = vector.load %arg7[%c0_102, %c1_103, %c0_104] : memref<1x2x96xf32, #tpu.memory_space<vmem>>, vector<1x1x96xf32>
    %311 = vector.shape_cast %310 : vector<1x1x96xf32> to vector<1x96xf32>
    %312 = vector.broadcast %311 : vector<1x96xf32> to vector<64x96xf32>
    %313 = arith.addf %309, %312 : vector<64x96xf32>
    %314 = vector.shape_cast %313 : vector<64x96xf32> to vector<8x8x96xf32>
    %c0_105 = arith.constant 0 : index
    %c0_106 = arith.constant 0 : index
    %c0_107 = arith.constant 0 : index
    %315 = vector.load %arg11[%c0_105, %c0_106, %c0_107] : memref<8x8x96xf32, #tpu.memory_space<vmem>>, vector<8x8x96xf32>
    tpu.vector_store %arg11[%c0_105, %c0_106, %c0_107], %314 {strides = array<i32>} : memref<8x8x96xf32, #tpu.memory_space<vmem>>, vector<8x8x96xf32>,
    %c0_108 = arith.constant 0 : index
    %c0_109 = arith.constant 0 : index
    %c0_110 = arith.constant 0 : index
    %c0_111 = arith.constant 0 : index
    %316 = vector.load %arg6[%c0_108, %c0_109, %c0_110, %c0_111] : memref<1x1x32x96xbf16, #tpu.memory_space<vmem>>, vector<1x1x32x96xbf16>
    %317 = vector.shape_cast %316 : vector<1x1x32x96xbf16> to vector<32x96xbf16>
    %c0_112 = arith.constant 0 : index
    %c1_113 = arith.constant 1 : index
    %c0_114 = arith.constant 0 : index
    %318 = vector.load %arg8[%c0_112, %c1_113, %c0_114] : memref<1x2x96xf32, #tpu.memory_space<vmem>>, vector<1x1x96xf32>
    %319 = vector.shape_cast %318 : vector<1x1x96xf32> to vector<1x96xf32>
    %320 = vector.shape_cast %319 : vector<1x96xf32> to vector<1x96xf32>
    %321 = vector.broadcast %320 : vector<1x96xf32> to vector<8x96xf32>
    %c0_115 = arith.constant 0 : index
    %c0_116 = arith.constant 0 : index
    %c1_117 = arith.constant 1 : index
    %c0_118 = arith.constant 0 : index
    %c0_119 = arith.constant 0 : index
    %322 = vector.load %arg2[%c0_115, %c0_116, %c1_117, %c0_118, %c0_119] : memref<1x2x2x4x32xf32, #tpu.memory_space<vmem>>, vector<1x1x1x4x32xf32>
    %323 = vector.shape_cast %322 : vector<1x1x1x4x32xf32> to vector<4x32xf32>
    %c0_120 = arith.constant 0 : index
    %c1_121 = arith.constant 1 : index
    %c1_122 = arith.constant 1 : index
    %c0_123 = arith.constant 0 : index
    %c0_124 = arith.constant 0 : index
    %324 = vector.load %arg2[%c0_120, %c1_121, %c1_122, %c0_123, %c0_124] : memref<1x2x2x4x32xf32, #tpu.memory_space<vmem>>, vector<1x1x1x4x32xf32>
    %325 = vector.shape_cast %324 : vector<1x1x1x4x32xf32> to vector<4x32xf32>
    %326 = tpu.concatenate %323, %325 in 0 : vector<4x32xf32>, vector<4x32xf32> -> vector<8x32xf32>
    %c0_i32_125 = arith.constant 0 : i32
    %327 = arith.index_cast %c0_i32_125 : i32 to index
    %c0_126 = arith.constant 0 : index
    %c0_127 = arith.constant 0 : index
    %328 = vector.load %arg11[%327, %c0_126, %c0_127] : memref<8x8x96xf32, #tpu.memory_space<vmem>>, vector<1x8x96xf32>
    %329 = vector.shape_cast %328 : vector<1x8x96xf32> to vector<8x96xf32>
    %330 = arith.truncf %326 : vector<8x32xf32> to vector<8x32xbf16>
    %cst_128 = arith.constant dense<0.000000e+00> : vector<8x96xf32>
    %331 = tpu.matmul %330, %317, %cst_128 {dimension_numbers = #tpu.dot_dimension_numbers<[1], [0], [0], [1], [0, 0, 1, 1], [], []>} : vector<8x32xbf16>, vector<32x96xbf16>, vector<8x96xf32> -> vector<8x96xf32>
    %332 = arith.addf %331, %321 : vector<8x96xf32>
    %333 = vector.extract_strided_slice %329 {offsets = [0, 0], sizes = [8, 32], strides = [1, 1]} : vector<8x96xf32> to vector<8x32xf32>
    %334 = vector.extract_strided_slice %332 {offsets = [0, 0], sizes = [8, 32], strides = [1, 1]} : vector<8x96xf32> to vector<8x32xf32>
    %335 = arith.addf %333, %334 : vector<8x32xf32>
    %336 = arith.negf %335 : vector<8x32xf32>
    %337 = math.exp %336 : vector<8x32xf32>
    %cst_129 = arith.constant 1.000000e+00 : f32
    %338 = vector.broadcast %cst_129 : f32 to vector<8x32xf32>
    %339 = arith.addf %338, %337 : vector<8x32xf32>
    %340 = arith.divf %338, %339 : vector<8x32xf32>
    %341 = vector.extract_strided_slice %329 {offsets = [0, 32], sizes = [8, 32], strides = [1, 1]} : vector<8x96xf32> to vector<8x32xf32>
    %342 = vector.extract_strided_slice %332 {offsets = [0, 32], sizes = [8, 32], strides = [1, 1]} : vector<8x96xf32> to vector<8x32xf32>
    %343 = arith.addf %341, %342 : vector<8x32xf32>
    %344 = arith.negf %343 : vector<8x32xf32>
    %345 = math.exp %344 : vector<8x32xf32>
    %cst_130 = arith.constant 1.000000e+00 : f32
    %346 = vector.broadcast %cst_130 : f32 to vector<8x32xf32>
    %347 = arith.addf %346, %345 : vector<8x32xf32>
    %348 = arith.divf %346, %347 : vector<8x32xf32>
    %349 = vector.extract_strided_slice %329 {offsets = [0, 64], sizes = [8, 32], strides = [1, 1]} : vector<8x96xf32> to vector<8x32xf32>
    %350 = vector.extract_strided_slice %332 {offsets = [0, 64], sizes = [8, 32], strides = [1, 1]} : vector<8x96xf32> to vector<8x32xf32>
    %351 = arith.mulf %340, %350 : vector<8x32xf32>
    %352 = arith.addf %349, %351 : vector<8x32xf32>
    %353 = math.tanh %352 : vector<8x32xf32>
    %354 = arith.subf %326, %353 : vector<8x32xf32>
    %355 = arith.mulf %348, %354 : vector<8x32xf32>
    %356 = arith.addf %353, %355 : vector<8x32xf32>
    %357 = arith.index_cast %c0_i32_125 : i32 to index
    %c0_131 = arith.constant 0 : index
    %c0_132 = arith.constant 0 : index
    %358 = vector.load %arg12[%357, %c0_131, %c0_132] : memref<8x8x32xf32, #tpu.memory_space<vmem>>, vector<1x8x32xf32>
    %359 = vector.shape_cast %358 : vector<1x8x32xf32> to vector<8x32xf32>
    %360 = vector.shape_cast %356 : vector<8x32xf32> to vector<1x8x32xf32>
    tpu.vector_store %arg12[%357, %c0_131, %c0_132], %360 {strides = array<i32>} : memref<8x8x32xf32, #tpu.memory_space<vmem>>, vector<1x8x32xf32>,
    %c1_i32_133 = arith.constant 1 : i32
    %361 = arith.index_cast %c1_i32_133 : i32 to index
    %c0_134 = arith.constant 0 : index
    %c0_135 = arith.constant 0 : index
    %362 = vector.load %arg11[%361, %c0_134, %c0_135] : memref<8x8x96xf32, #tpu.memory_space<vmem>>, vector<1x8x96xf32>
    %363 = vector.shape_cast %362 : vector<1x8x96xf32> to vector<8x96xf32>
    %364 = arith.truncf %356 : vector<8x32xf32> to vector<8x32xbf16>
    %cst_136 = arith.constant dense<0.000000e+00> : vector<8x96xf32>
    %365 = tpu.matmul %364, %317, %cst_136 {dimension_numbers = #tpu.dot_dimension_numbers<[1], [0], [0], [1], [0, 0, 1, 1], [], []>} : vector<8x32xbf16>, vector<32x96xbf16>, vector<8x96xf32> -> vector<8x96xf32>
    %366 = arith.addf %365, %321 : vector<8x96xf32>
    %367 = vector.extract_strided_slice %363 {offsets = [0, 0], sizes = [8, 32], strides = [1, 1]} : vector<8x96xf32> to vector<8x32xf32>
    %368 = vector.extract_strided_slice %366 {offsets = [0, 0], sizes = [8, 32], strides = [1, 1]} : vector<8x96xf32> to vector<8x32xf32>
    %369 = arith.addf %367, %368 : vector<8x32xf32>
    %370 = arith.negf %369 : vector<8x32xf32>
    %371 = math.exp %370 : vector<8x32xf32>
    %cst_137 = arith.constant 1.000000e+00 : f32
    %372 = vector.broadcast %cst_137 : f32 to vector<8x32xf32>
    %373 = arith.addf %372, %371 : vector<8x32xf32>
    %374 = arith.divf %372, %373 : vector<8x32xf32>
    %375 = vector.extract_strided_slice %363 {offsets = [0, 32], sizes = [8, 32], strides = [1, 1]} : vector<8x96xf32> to vector<8x32xf32>
    %376 = vector.extract_strided_slice %366 {offsets = [0, 32], sizes = [8, 32], strides = [1, 1]} : vector<8x96xf32> to vector<8x32xf32>
    %377 = arith.addf %375, %376 : vector<8x32xf32>
    %378 = arith.negf %377 : vector<8x32xf32>
    %379 = math.exp %378 : vector<8x32xf32>
    %cst_138 = arith.constant 1.000000e+00 : f32
    %380 = vector.broadcast %cst_138 : f32 to vector<8x32xf32>
    %381 = arith.addf %380, %379 : vector<8x32xf32>
    %382 = arith.divf %380, %381 : vector<8x32xf32>
    %383 = vector.extract_strided_slice %363 {offsets = [0, 64], sizes = [8, 32], strides = [1, 1]} : vector<8x96xf32> to vector<8x32xf32>
    %384 = vector.extract_strided_slice %366 {offsets = [0, 64], sizes = [8, 32], strides = [1, 1]} : vector<8x96xf32> to vector<8x32xf32>
    %385 = arith.mulf %374, %384 : vector<8x32xf32>
    %386 = arith.addf %383, %385 : vector<8x32xf32>
    %387 = math.tanh %386 : vector<8x32xf32>
    %388 = arith.subf %356, %387 : vector<8x32xf32>
    %389 = arith.mulf %382, %388 : vector<8x32xf32>
    %390 = arith.addf %387, %389 : vector<8x32xf32>
    %391 = arith.index_cast %c1_i32_133 : i32 to index
    %c0_139 = arith.constant 0 : index
    %c0_140 = arith.constant 0 : index
    %392 = vector.load %arg12[%391, %c0_139, %c0_140] : memref<8x8x32xf32, #tpu.memory_space<vmem>>, vector<1x8x32xf32>
    %393 = vector.shape_cast %392 : vector<1x8x32xf32> to vector<8x32xf32>
    %394 = vector.shape_cast %390 : vector<8x32xf32> to vector<1x8x32xf32>
    tpu.vector_store %arg12[%391, %c0_139, %c0_140], %394 {strides = array<i32>} : memref<8x8x32xf32, #tpu.memory_space<vmem>>, vector<1x8x32xf32>,
    %c2_i32_141 = arith.constant 2 : i32
    %395 = arith.index_cast %c2_i32_141 : i32 to index
    %c0_142 = arith.constant 0 : index
    %c0_143 = arith.constant 0 : index
    %396 = vector.load %arg11[%395, %c0_142, %c0_143] : memref<8x8x96xf32, #tpu.memory_space<vmem>>, vector<1x8x96xf32>
    %397 = vector.shape_cast %396 : vector<1x8x96xf32> to vector<8x96xf32>
    %398 = arith.truncf %390 : vector<8x32xf32> to vector<8x32xbf16>
    %cst_144 = arith.constant dense<0.000000e+00> : vector<8x96xf32>
    %399 = tpu.matmul %398, %317, %cst_144 {dimension_numbers = #tpu.dot_dimension_numbers<[1], [0], [0], [1], [0, 0, 1, 1], [], []>} : vector<8x32xbf16>, vector<32x96xbf16>, vector<8x96xf32> -> vector<8x96xf32>
    %400 = arith.addf %399, %321 : vector<8x96xf32>
    %401 = vector.extract_strided_slice %397 {offsets = [0, 0], sizes = [8, 32], strides = [1, 1]} : vector<8x96xf32> to vector<8x32xf32>
    %402 = vector.extract_strided_slice %400 {offsets = [0, 0], sizes = [8, 32], strides = [1, 1]} : vector<8x96xf32> to vector<8x32xf32>
    %403 = arith.addf %401, %402 : vector<8x32xf32>
    %404 = arith.negf %403 : vector<8x32xf32>
    %405 = math.exp %404 : vector<8x32xf32>
    %cst_145 = arith.constant 1.000000e+00 : f32
    %406 = vector.broadcast %cst_145 : f32 to vector<8x32xf32>
    %407 = arith.addf %406, %405 : vector<8x32xf32>
    %408 = arith.divf %406, %407 : vector<8x32xf32>
    %409 = vector.extract_strided_slice %397 {offsets = [0, 32], sizes = [8, 32], strides = [1, 1]} : vector<8x96xf32> to vector<8x32xf32>
    %410 = vector.extract_strided_slice %400 {offsets = [0, 32], sizes = [8, 32], strides = [1, 1]} : vector<8x96xf32> to vector<8x32xf32>
    %411 = arith.addf %409, %410 : vector<8x32xf32>
    %412 = arith.negf %411 : vector<8x32xf32>
    %413 = math.exp %412 : vector<8x32xf32>
    %cst_146 = arith.constant 1.000000e+00 : f32
    %414 = vector.broadcast %cst_146 : f32 to vector<8x32xf32>
    %415 = arith.addf %414, %413 : vector<8x32xf32>
    %416 = arith.divf %414, %415 : vector<8x32xf32>
    %417 = vector.extract_strided_slice %397 {offsets = [0, 64], sizes = [8, 32], strides = [1, 1]} : vector<8x96xf32> to vector<8x32xf32>
    %418 = vector.extract_strided_slice %400 {offsets = [0, 64], sizes = [8, 32], strides = [1, 1]} : vector<8x96xf32> to vector<8x32xf32>
    %419 = arith.mulf %408, %418 : vector<8x32xf32>
    %420 = arith.addf %417, %419 : vector<8x32xf32>
    %421 = math.tanh %420 : vector<8x32xf32>
    %422 = arith.subf %390, %421 : vector<8x32xf32>
    %423 = arith.mulf %416, %422 : vector<8x32xf32>
    %424 = arith.addf %421, %423 : vector<8x32xf32>
    %425 = arith.index_cast %c2_i32_141 : i32 to index
    %c0_147 = arith.constant 0 : index
    %c0_148 = arith.constant 0 : index
    %426 = vector.load %arg12[%425, %c0_147, %c0_148] : memref<8x8x32xf32, #tpu.memory_space<vmem>>, vector<1x8x32xf32>
    %427 = vector.shape_cast %426 : vector<1x8x32xf32> to vector<8x32xf32>
    %428 = vector.shape_cast %424 : vector<8x32xf32> to vector<1x8x32xf32>
    tpu.vector_store %arg12[%425, %c0_147, %c0_148], %428 {strides = array<i32>} : memref<8x8x32xf32, #tpu.memory_space<vmem>>, vector<1x8x32xf32>,
    %c3_i32_149 = arith.constant 3 : i32
    %429 = arith.index_cast %c3_i32_149 : i32 to index
    %c0_150 = arith.constant 0 : index
    %c0_151 = arith.constant 0 : index
    %430 = vector.load %arg11[%429, %c0_150, %c0_151] : memref<8x8x96xf32, #tpu.memory_space<vmem>>, vector<1x8x96xf32>
    %431 = vector.shape_cast %430 : vector<1x8x96xf32> to vector<8x96xf32>
    %432 = arith.truncf %424 : vector<8x32xf32> to vector<8x32xbf16>
    %cst_152 = arith.constant dense<0.000000e+00> : vector<8x96xf32>
    %433 = tpu.matmul %432, %317, %cst_152 {dimension_numbers = #tpu.dot_dimension_numbers<[1], [0], [0], [1], [0, 0, 1, 1], [], []>} : vector<8x32xbf16>, vector<32x96xbf16>, vector<8x96xf32> -> vector<8x96xf32>
    %434 = arith.addf %433, %321 : vector<8x96xf32>
    %435 = vector.extract_strided_slice %431 {offsets = [0, 0], sizes = [8, 32], strides = [1, 1]} : vector<8x96xf32> to vector<8x32xf32>
    %436 = vector.extract_strided_slice %434 {offsets = [0, 0], sizes = [8, 32], strides = [1, 1]} : vector<8x96xf32> to vector<8x32xf32>
    %437 = arith.addf %435, %436 : vector<8x32xf32>
    %438 = arith.negf %437 : vector<8x32xf32>
    %439 = math.exp %438 : vector<8x32xf32>
    %cst_153 = arith.constant 1.000000e+00 : f32
    %440 = vector.broadcast %cst_153 : f32 to vector<8x32xf32>
    %441 = arith.addf %440, %439 : vector<8x32xf32>
    %442 = arith.divf %440, %441 : vector<8x32xf32>
    %443 = vector.extract_strided_slice %431 {offsets = [0, 32], sizes = [8, 32], strides = [1, 1]} : vector<8x96xf32> to vector<8x32xf32>
    %444 = vector.extract_strided_slice %434 {offsets = [0, 32], sizes = [8, 32], strides = [1, 1]} : vector<8x96xf32> to vector<8x32xf32>
    %445 = arith.addf %443, %444 : vector<8x32xf32>
    %446 = arith.negf %445 : vector<8x32xf32>
    %447 = math.exp %446 : vector<8x32xf32>
    %cst_154 = arith.constant 1.000000e+00 : f32
    %448 = vector.broadcast %cst_154 : f32 to vector<8x32xf32>
    %449 = arith.addf %448, %447 : vector<8x32xf32>
    %450 = arith.divf %448, %449 : vector<8x32xf32>
    %451 = vector.extract_strided_slice %431 {offsets = [0, 64], sizes = [8, 32], strides = [1, 1]} : vector<8x96xf32> to vector<8x32xf32>
    %452 = vector.extract_strided_slice %434 {offsets = [0, 64], sizes = [8, 32], strides = [1, 1]} : vector<8x96xf32> to vector<8x32xf32>
    %453 = arith.mulf %442, %452 : vector<8x32xf32>
    %454 = arith.addf %451, %453 : vector<8x32xf32>
    %455 = math.tanh %454 : vector<8x32xf32>
    %456 = arith.subf %424, %455 : vector<8x32xf32>
    %457 = arith.mulf %450, %456 : vector<8x32xf32>
    %458 = arith.addf %455, %457 : vector<8x32xf32>
    %459 = arith.index_cast %c3_i32_149 : i32 to index
    %c0_155 = arith.constant 0 : index
    %c0_156 = arith.constant 0 : index
    %460 = vector.load %arg12[%459, %c0_155, %c0_156] : memref<8x8x32xf32, #tpu.memory_space<vmem>>, vector<1x8x32xf32>
    %461 = vector.shape_cast %460 : vector<1x8x32xf32> to vector<8x32xf32>
    %462 = vector.shape_cast %458 : vector<8x32xf32> to vector<1x8x32xf32>
    tpu.vector_store %arg12[%459, %c0_155, %c0_156], %462 {strides = array<i32>} : memref<8x8x32xf32, #tpu.memory_space<vmem>>, vector<1x8x32xf32>,
    %c4_i32_157 = arith.constant 4 : i32
    %463 = arith.index_cast %c4_i32_157 : i32 to index
    %c0_158 = arith.constant 0 : index
    %c0_159 = arith.constant 0 : index
    %464 = vector.load %arg11[%463, %c0_158, %c0_159] : memref<8x8x96xf32, #tpu.memory_space<vmem>>, vector<1x8x96xf32>
    %465 = vector.shape_cast %464 : vector<1x8x96xf32> to vector<8x96xf32>
    %466 = arith.truncf %458 : vector<8x32xf32> to vector<8x32xbf16>
    %cst_160 = arith.constant dense<0.000000e+00> : vector<8x96xf32>
    %467 = tpu.matmul %466, %317, %cst_160 {dimension_numbers = #tpu.dot_dimension_numbers<[1], [0], [0], [1], [0, 0, 1, 1], [], []>} : vector<8x32xbf16>, vector<32x96xbf16>, vector<8x96xf32> -> vector<8x96xf32>
    %468 = arith.addf %467, %321 : vector<8x96xf32>
    %469 = vector.extract_strided_slice %465 {offsets = [0, 0], sizes = [8, 32], strides = [1, 1]} : vector<8x96xf32> to vector<8x32xf32>
    %470 = vector.extract_strided_slice %468 {offsets = [0, 0], sizes = [8, 32], strides = [1, 1]} : vector<8x96xf32> to vector<8x32xf32>
    %471 = arith.addf %469, %470 : vector<8x32xf32>
    %472 = arith.negf %471 : vector<8x32xf32>
    %473 = math.exp %472 : vector<8x32xf32>
    %cst_161 = arith.constant 1.000000e+00 : f32
    %474 = vector.broadcast %cst_161 : f32 to vector<8x32xf32>
    %475 = arith.addf %474, %473 : vector<8x32xf32>
    %476 = arith.divf %474, %475 : vector<8x32xf32>
    %477 = vector.extract_strided_slice %465 {offsets = [0, 32], sizes = [8, 32], strides = [1, 1]} : vector<8x96xf32> to vector<8x32xf32>
    %478 = vector.extract_strided_slice %468 {offsets = [0, 32], sizes = [8, 32], strides = [1, 1]} : vector<8x96xf32> to vector<8x32xf32>
    %479 = arith.addf %477, %478 : vector<8x32xf32>
    %480 = arith.negf %479 : vector<8x32xf32>
    %481 = math.exp %480 : vector<8x32xf32>
    %cst_162 = arith.constant 1.000000e+00 : f32
    %482 = vector.broadcast %cst_162 : f32 to vector<8x32xf32>
    %483 = arith.addf %482, %481 : vector<8x32xf32>
    %484 = arith.divf %482, %483 : vector<8x32xf32>
    %485 = vector.extract_strided_slice %465 {offsets = [0, 64], sizes = [8, 32], strides = [1, 1]} : vector<8x96xf32> to vector<8x32xf32>
    %486 = vector.extract_strided_slice %468 {offsets = [0, 64], sizes = [8, 32], strides = [1, 1]} : vector<8x96xf32> to vector<8x32xf32>
    %487 = arith.mulf %476, %486 : vector<8x32xf32>
    %488 = arith.addf %485, %487 : vector<8x32xf32>
    %489 = math.tanh %488 : vector<8x32xf32>
    %490 = arith.subf %458, %489 : vector<8x32xf32>
    %491 = arith.mulf %484, %490 : vector<8x32xf32>
    %492 = arith.addf %489, %491 : vector<8x32xf32>
    %493 = arith.index_cast %c4_i32_157 : i32 to index
    %c0_163 = arith.constant 0 : index
    %c0_164 = arith.constant 0 : index
    %494 = vector.load %arg12[%493, %c0_163, %c0_164] : memref<8x8x32xf32, #tpu.memory_space<vmem>>, vector<1x8x32xf32>
    %495 = vector.shape_cast %494 : vector<1x8x32xf32> to vector<8x32xf32>
    %496 = vector.shape_cast %492 : vector<8x32xf32> to vector<1x8x32xf32>
    tpu.vector_store %arg12[%493, %c0_163, %c0_164], %496 {strides = array<i32>} : memref<8x8x32xf32, #tpu.memory_space<vmem>>, vector<1x8x32xf32>,
    %c5_i32_165 = arith.constant 5 : i32
    %497 = arith.index_cast %c5_i32_165 : i32 to index
    %c0_166 = arith.constant 0 : index
    %c0_167 = arith.constant 0 : index
    %498 = vector.load %arg11[%497, %c0_166, %c0_167] : memref<8x8x96xf32, #tpu.memory_space<vmem>>, vector<1x8x96xf32>
    %499 = vector.shape_cast %498 : vector<1x8x96xf32> to vector<8x96xf32>
    %500 = arith.truncf %492 : vector<8x32xf32> to vector<8x32xbf16>
    %cst_168 = arith.constant dense<0.000000e+00> : vector<8x96xf32>
    %501 = tpu.matmul %500, %317, %cst_168 {dimension_numbers = #tpu.dot_dimension_numbers<[1], [0], [0], [1], [0, 0, 1, 1], [], []>} : vector<8x32xbf16>, vector<32x96xbf16>, vector<8x96xf32> -> vector<8x96xf32>
    %502 = arith.addf %501, %321 : vector<8x96xf32>
    %503 = vector.extract_strided_slice %499 {offsets = [0, 0], sizes = [8, 32], strides = [1, 1]} : vector<8x96xf32> to vector<8x32xf32>
    %504 = vector.extract_strided_slice %502 {offsets = [0, 0], sizes = [8, 32], strides = [1, 1]} : vector<8x96xf32> to vector<8x32xf32>
    %505 = arith.addf %503, %504 : vector<8x32xf32>
    %506 = arith.negf %505 : vector<8x32xf32>
    %507 = math.exp %506 : vector<8x32xf32>
    %cst_169 = arith.constant 1.000000e+00 : f32
    %508 = vector.broadcast %cst_169 : f32 to vector<8x32xf32>
    %509 = arith.addf %508, %507 : vector<8x32xf32>
    %510 = arith.divf %508, %509 : vector<8x32xf32>
    %511 = vector.extract_strided_slice %499 {offsets = [0, 32], sizes = [8, 32], strides = [1, 1]} : vector<8x96xf32> to vector<8x32xf32>
    %512 = vector.extract_strided_slice %502 {offsets = [0, 32], sizes = [8, 32], strides = [1, 1]} : vector<8x96xf32> to vector<8x32xf32>
    %513 = arith.addf %511, %512 : vector<8x32xf32>
    %514 = arith.negf %513 : vector<8x32xf32>
    %515 = math.exp %514 : vector<8x32xf32>
    %cst_170 = arith.constant 1.000000e+00 : f32
    %516 = vector.broadcast %cst_170 : f32 to vector<8x32xf32>
    %517 = arith.addf %516, %515 : vector<8x32xf32>
    %518 = arith.divf %516, %517 : vector<8x32xf32>
    %519 = vector.extract_strided_slice %499 {offsets = [0, 64], sizes = [8, 32], strides = [1, 1]} : vector<8x96xf32> to vector<8x32xf32>
    %520 = vector.extract_strided_slice %502 {offsets = [0, 64], sizes = [8, 32], strides = [1, 1]} : vector<8x96xf32> to vector<8x32xf32>
    %521 = arith.mulf %510, %520 : vector<8x32xf32>
    %522 = arith.addf %519, %521 : vector<8x32xf32>
    %523 = math.tanh %522 : vector<8x32xf32>
    %524 = arith.subf %492, %523 : vector<8x32xf32>
    %525 = arith.mulf %518, %524 : vector<8x32xf32>
    %526 = arith.addf %523, %525 : vector<8x32xf32>
    %527 = arith.index_cast %c5_i32_165 : i32 to index
    %c0_171 = arith.constant 0 : index
    %c0_172 = arith.constant 0 : index
    %528 = vector.load %arg12[%527, %c0_171, %c0_172] : memref<8x8x32xf32, #tpu.memory_space<vmem>>, vector<1x8x32xf32>
    %529 = vector.shape_cast %528 : vector<1x8x32xf32> to vector<8x32xf32>
    %530 = vector.shape_cast %526 : vector<8x32xf32> to vector<1x8x32xf32>
    tpu.vector_store %arg12[%527, %c0_171, %c0_172], %530 {strides = array<i32>} : memref<8x8x32xf32, #tpu.memory_space<vmem>>, vector<1x8x32xf32>,
    %c6_i32_173 = arith.constant 6 : i32
    %531 = arith.index_cast %c6_i32_173 : i32 to index
    %c0_174 = arith.constant 0 : index
    %c0_175 = arith.constant 0 : index
    %532 = vector.load %arg11[%531, %c0_174, %c0_175] : memref<8x8x96xf32, #tpu.memory_space<vmem>>, vector<1x8x96xf32>
    %533 = vector.shape_cast %532 : vector<1x8x96xf32> to vector<8x96xf32>
    %534 = arith.truncf %526 : vector<8x32xf32> to vector<8x32xbf16>
    %cst_176 = arith.constant dense<0.000000e+00> : vector<8x96xf32>
    %535 = tpu.matmul %534, %317, %cst_176 {dimension_numbers = #tpu.dot_dimension_numbers<[1], [0], [0], [1], [0, 0, 1, 1], [], []>} : vector<8x32xbf16>, vector<32x96xbf16>, vector<8x96xf32> -> vector<8x96xf32>
    %536 = arith.addf %535, %321 : vector<8x96xf32>
    %537 = vector.extract_strided_slice %533 {offsets = [0, 0], sizes = [8, 32], strides = [1, 1]} : vector<8x96xf32> to vector<8x32xf32>
    %538 = vector.extract_strided_slice %536 {offsets = [0, 0], sizes = [8, 32], strides = [1, 1]} : vector<8x96xf32> to vector<8x32xf32>
    %539 = arith.addf %537, %538 : vector<8x32xf32>
    %540 = arith.negf %539 : vector<8x32xf32>
    %541 = math.exp %540 : vector<8x32xf32>
    %cst_177 = arith.constant 1.000000e+00 : f32
    %542 = vector.broadcast %cst_177 : f32 to vector<8x32xf32>
    %543 = arith.addf %542, %541 : vector<8x32xf32>
    %544 = arith.divf %542, %543 : vector<8x32xf32>
    %545 = vector.extract_strided_slice %533 {offsets = [0, 32], sizes = [8, 32], strides = [1, 1]} : vector<8x96xf32> to vector<8x32xf32>
    %546 = vector.extract_strided_slice %536 {offsets = [0, 32], sizes = [8, 32], strides = [1, 1]} : vector<8x96xf32> to vector<8x32xf32>
    %547 = arith.addf %545, %546 : vector<8x32xf32>
    %548 = arith.negf %547 : vector<8x32xf32>
    %549 = math.exp %548 : vector<8x32xf32>
    %cst_178 = arith.constant 1.000000e+00 : f32
    %550 = vector.broadcast %cst_178 : f32 to vector<8x32xf32>
    %551 = arith.addf %550, %549 : vector<8x32xf32>
    %552 = arith.divf %550, %551 : vector<8x32xf32>
    %553 = vector.extract_strided_slice %533 {offsets = [0, 64], sizes = [8, 32], strides = [1, 1]} : vector<8x96xf32> to vector<8x32xf32>
    %554 = vector.extract_strided_slice %536 {offsets = [0, 64], sizes = [8, 32], strides = [1, 1]} : vector<8x96xf32> to vector<8x32xf32>
    %555 = arith.mulf %544, %554 : vector<8x32xf32>
    %556 = arith.addf %553, %555 : vector<8x32xf32>
    %557 = math.tanh %556 : vector<8x32xf32>
    %558 = arith.subf %526, %557 : vector<8x32xf32>
    %559 = arith.mulf %552, %558 : vector<8x32xf32>
    %560 = arith.addf %557, %559 : vector<8x32xf32>
    %561 = arith.index_cast %c6_i32_173 : i32 to index
    %c0_179 = arith.constant 0 : index
    %c0_180 = arith.constant 0 : index
    %562 = vector.load %arg12[%561, %c0_179, %c0_180] : memref<8x8x32xf32, #tpu.memory_space<vmem>>, vector<1x8x32xf32>
    %563 = vector.shape_cast %562 : vector<1x8x32xf32> to vector<8x32xf32>
    %564 = vector.shape_cast %560 : vector<8x32xf32> to vector<1x8x32xf32>
    tpu.vector_store %arg12[%561, %c0_179, %c0_180], %564 {strides = array<i32>} : memref<8x8x32xf32, #tpu.memory_space<vmem>>, vector<1x8x32xf32>,
    %c7_i32_181 = arith.constant 7 : i32
    %565 = arith.index_cast %c7_i32_181 : i32 to index
    %c0_182 = arith.constant 0 : index
    %c0_183 = arith.constant 0 : index
    %566 = vector.load %arg11[%565, %c0_182, %c0_183] : memref<8x8x96xf32, #tpu.memory_space<vmem>>, vector<1x8x96xf32>
    %567 = vector.shape_cast %566 : vector<1x8x96xf32> to vector<8x96xf32>
    %568 = arith.truncf %560 : vector<8x32xf32> to vector<8x32xbf16>
    %cst_184 = arith.constant dense<0.000000e+00> : vector<8x96xf32>
    %569 = tpu.matmul %568, %317, %cst_184 {dimension_numbers = #tpu.dot_dimension_numbers<[1], [0], [0], [1], [0, 0, 1, 1], [], []>} : vector<8x32xbf16>, vector<32x96xbf16>, vector<8x96xf32> -> vector<8x96xf32>
    %570 = arith.addf %569, %321 : vector<8x96xf32>
    %571 = vector.extract_strided_slice %567 {offsets = [0, 0], sizes = [8, 32], strides = [1, 1]} : vector<8x96xf32> to vector<8x32xf32>
    %572 = vector.extract_strided_slice %570 {offsets = [0, 0], sizes = [8, 32], strides = [1, 1]} : vector<8x96xf32> to vector<8x32xf32>
    %573 = arith.addf %571, %572 : vector<8x32xf32>
    %574 = arith.negf %573 : vector<8x32xf32>
    %575 = math.exp %574 : vector<8x32xf32>
    %cst_185 = arith.constant 1.000000e+00 : f32
    %576 = vector.broadcast %cst_185 : f32 to vector<8x32xf32>
    %577 = arith.addf %576, %575 : vector<8x32xf32>
    %578 = arith.divf %576, %577 : vector<8x32xf32>
    %579 = vector.extract_strided_slice %567 {offsets = [0, 32], sizes = [8, 32], strides = [1, 1]} : vector<8x96xf32> to vector<8x32xf32>
    %580 = vector.extract_strided_slice %570 {offsets = [0, 32], sizes = [8, 32], strides = [1, 1]} : vector<8x96xf32> to vector<8x32xf32>
    %581 = arith.addf %579, %580 : vector<8x32xf32>
    %582 = arith.negf %581 : vector<8x32xf32>
    %583 = math.exp %582 : vector<8x32xf32>
    %cst_186 = arith.constant 1.000000e+00 : f32
    %584 = vector.broadcast %cst_186 : f32 to vector<8x32xf32>
    %585 = arith.addf %584, %583 : vector<8x32xf32>
    %586 = arith.divf %584, %585 : vector<8x32xf32>
    %587 = vector.extract_strided_slice %567 {offsets = [0, 64], sizes = [8, 32], strides = [1, 1]} : vector<8x96xf32> to vector<8x32xf32>
    %588 = vector.extract_strided_slice %570 {offsets = [0, 64], sizes = [8, 32], strides = [1, 1]} : vector<8x96xf32> to vector<8x32xf32>
    %589 = arith.mulf %578, %588 : vector<8x32xf32>
    %590 = arith.addf %587, %589 : vector<8x32xf32>
    %591 = math.tanh %590 : vector<8x32xf32>
    %592 = arith.subf %560, %591 : vector<8x32xf32>
    %593 = arith.mulf %586, %592 : vector<8x32xf32>
    %594 = arith.addf %591, %593 : vector<8x32xf32>
    %595 = arith.index_cast %c7_i32_181 : i32 to index
    %c0_187 = arith.constant 0 : index
    %c0_188 = arith.constant 0 : index
    %596 = vector.load %arg12[%595, %c0_187, %c0_188] : memref<8x8x32xf32, #tpu.memory_space<vmem>>, vector<1x8x32xf32>
    %597 = vector.shape_cast %596 : vector<1x8x32xf32> to vector<8x32xf32>
    %598 = vector.shape_cast %594 : vector<8x32xf32> to vector<1x8x32xf32>
    tpu.vector_store %arg12[%595, %c0_187, %c0_188], %598 {strides = array<i32>} : memref<8x8x32xf32, #tpu.memory_space<vmem>>, vector<1x8x32xf32>,
    %c8_i32_189 = arith.constant 8 : i32
    %599 = vector.extract_strided_slice %594 {offsets = [0, 0], sizes = [4, 32], strides = [1, 1]} : vector<8x32xf32> to vector<4x32xf32>
    %c0_190 = arith.constant 0 : index
    %c0_191 = arith.constant 0 : index
    %c1_192 = arith.constant 1 : index
    %c0_193 = arith.constant 0 : index
    %c0_194 = arith.constant 0 : index
    %600 = vector.load %arg10[%c0_190, %c0_191, %c1_192, %c0_193, %c0_194] : memref<1x2x2x4x32xf32, #tpu.memory_space<vmem>>, vector<1x1x1x4x32xf32>
    %601 = vector.shape_cast %600 : vector<1x1x1x4x32xf32> to vector<4x32xf32>
    %602 = vector.shape_cast %599 : vector<4x32xf32> to vector<1x1x1x4x32xf32>
    tpu.vector_store %arg10[%c0_190, %c0_191, %c1_192, %c0_193, %c0_194], %602 {strides = array<i32>} : memref<1x2x2x4x32xf32, #tpu.memory_space<vmem>>, vector<1x1x1x4x32xf32>,
    %603 = vector.extract_strided_slice %594 {offsets = [4, 0], sizes = [4, 32], strides = [1, 1]} : vector<8x32xf32> to vector<4x32xf32>
    %c0_195 = arith.constant 0 : index
    %c1_196 = arith.constant 1 : index
    %c1_197 = arith.constant 1 : index
    %c0_198 = arith.constant 0 : index
    %c0_199 = arith.constant 0 : index
    %604 = vector.load %arg10[%c0_195, %c1_196, %c1_197, %c0_198, %c0_199] : memref<1x2x2x4x32xf32, #tpu.memory_space<vmem>>, vector<1x1x1x4x32xf32>
    %605 = vector.shape_cast %604 : vector<1x1x1x4x32xf32> to vector<4x32xf32>
    %606 = vector.shape_cast %603 : vector<4x32xf32> to vector<1x1x1x4x32xf32>
    tpu.vector_store %arg10[%c0_195, %c1_196, %c1_197, %c0_198, %c0_199], %606 {strides = array<i32>} : memref<1x2x2x4x32xf32, #tpu.memory_space<vmem>>, vector<1x1x1x4x32xf32>,
    %c0_200 = arith.constant 0 : index
    %c0_201 = arith.constant 0 : index
    %c0_202 = arith.constant 0 : index
    %607 = vector.load %arg12[%c0_200, %c0_201, %c0_202] : memref<8x8x32xf32, #tpu.memory_space<vmem>>, vector<8x4x32xf32>
    %c0_203 = arith.constant 0 : index
    %c0_204 = arith.constant 0 : index
    %c0_205 = arith.constant 0 : index
    %c0_206 = arith.constant 0 : index
    %c0_207 = arith.constant 0 : index
    %608 = vector.load %arg9[%c0_203, %c0_204, %c0_205, %c0_206, %c0_207] : memref<1x2x8x4x32xf32, #tpu.memory_space<vmem>>, vector<1x1x8x4x32xf32>
    %609 = vector.shape_cast %608 : vector<1x1x8x4x32xf32> to vector<8x4x32xf32>
    %610 = vector.shape_cast %607 : vector<8x4x32xf32> to vector<1x1x8x4x32xf32>
    tpu.vector_store %arg9[%c0_203, %c0_204, %c0_205, %c0_206, %c0_207], %610 {strides = array<i32>} : memref<1x2x8x4x32xf32, #tpu.memory_space<vmem>>, vector<1x1x8x4x32xf32>,
    %c0_208 = arith.constant 0 : index
    %c4_209 = arith.constant 4 : index
    %c0_210 = arith.constant 0 : index
    %611 = vector.load %arg12[%c0_208, %c4_209, %c0_210] : memref<8x8x32xf32, #tpu.memory_space<vmem>>, vector<8x4x32xf32>
    %c0_211 = arith.constant 0 : index
    %c1_212 = arith.constant 1 : index
    %c0_213 = arith.constant 0 : index
    %c0_214 = arith.constant 0 : index
    %c0_215 = arith.constant 0 : index
    %612 = vector.load %arg9[%c0_211, %c1_212, %c0_213, %c0_214, %c0_215] : memref<1x2x8x4x32xf32, #tpu.memory_space<vmem>>, vector<1x1x8x4x32xf32>
    %613 = vector.shape_cast %612 : vector<1x1x8x4x32xf32> to vector<8x4x32xf32>
    %614 = vector.shape_cast %611 : vector<8x4x32xf32> to vector<1x1x8x4x32xf32>
    tpu.vector_store %arg9[%c0_211, %c1_212, %c0_213, %c0_214, %c0_215], %614 {strides = array<i32>} : memref<1x2x8x4x32xf32, #tpu.memory_space<vmem>>, vector<1x1x8x4x32xf32>,
    return
  }
  func.func @transform_0(%arg0: i32) -> (i32, i32, i32) {
    %c0_i32 = arith.constant 0 : i32
    %c0_i32_0 = arith.constant 0 : i32
    %c0_i32_1 = arith.constant 0 : i32
    %c0_i32_2 = arith.constant 0 : i32
    return %c0_i32, %c0_i32_0, %c0_i32_1 : i32, i32, i32
  }
  func.func @transform_1(%arg0: i32) -> (i32, i32, i32, i32, i32) {
    %c0_i32 = arith.constant 0 : i32
    %c0_i32_0 = arith.constant 0 : i32
    %c0_i32_1 = arith.constant 0 : i32
    %c0_i32_2 = arith.constant 0 : i32
    %c0_i32_3 = arith.constant 0 : i32
    return %arg0, %c0_i32, %c0_i32_0, %c0_i32_1, %c0_i32_2 : i32, i32, i32, i32, i32
  }
  func.func @transform_2(%arg0: i32) -> (i32, i32, i32) {
    %c0_i32 = arith.constant 0 : i32
    %c0_i32_0 = arith.constant 0 : i32
    %c0_i32_1 = arith.constant 0 : i32
    return %arg0, %c0_i32, %c0_i32_0 : i32, i32, i32
  }
  func.func @transform_3(%arg0: i32) -> (i32, i32, i32) {
    %c0_i32 = arith.constant 0 : i32
    %c0_i32_0 = arith.constant 0 : i32
    %c0_i32_1 = arith.constant 0 : i32
    return %arg0, %c0_i32, %c0_i32_0 : i32, i32, i32
  }
  func.func @transform_4(%arg0: i32) -> (i32, i32, i32, i32) {
    %c0_i32 = arith.constant 0 : i32
    %c0_i32_0 = arith.constant 0 : i32
    %c0_i32_1 = arith.constant 0 : i32
    %c0_i32_2 = arith.constant 0 : i32
    return %arg0, %c0_i32, %c0_i32_0, %c0_i32_1 : i32, i32, i32, i32
  }
  func.func @transform_5(%arg0: i32) -> (i32, i32, i32, i32) {
    %c0_i32 = arith.constant 0 : i32
    %c0_i32_0 = arith.constant 0 : i32
    %c0_i32_1 = arith.constant 0 : i32
    %c0_i32_2 = arith.constant 0 : i32
    return %arg0, %c0_i32, %c0_i32_0, %c0_i32_1 : i32, i32, i32, i32
  }
  func.func @transform_6(%arg0: i32) -> (i32, i32, i32) {
    %c0_i32 = arith.constant 0 : i32
    %c0_i32_0 = arith.constant 0 : i32
    %c0_i32_1 = arith.constant 0 : i32
    return %arg0, %c0_i32, %c0_i32_0 : i32, i32, i32
  }
  func.func @transform_7(%arg0: i32) -> (i32, i32, i32) {
    %c0_i32 = arith.constant 0 : i32
    %c0_i32_0 = arith.constant 0 : i32
    %c0_i32_1 = arith.constant 0 : i32
    return %arg0, %c0_i32, %c0_i32_0 : i32, i32, i32
  }
  func.func @transform_8(%arg0: i32) -> (i32, i32, i32, i32, i32) {
    %c0_i32 = arith.constant 0 : i32
    %c0_i32_0 = arith.constant 0 : i32
    %c0_i32_1 = arith.constant 0 : i32
    %c0_i32_2 = arith.constant 0 : i32
    %c0_i32_3 = arith.constant 0 : i32
    return %arg0, %c0_i32, %c0_i32_0, %c0_i32_1, %c0_i32_2 : i32, i32, i32, i32, i32
  }
  func.func @transform_9(%arg0: i32) -> (i32, i32, i32, i32, i32) {
    %c0_i32 = arith.constant 0 : i32
    %c0_i32_0 = arith.constant 0 : i32
    %c0_i32_1 = arith.constant 0 : i32
    %c0_i32_2 = arith.constant 0 : i32
    %c0_i32_3 = arith.constant 0 : i32
    return %arg0, %c0_i32, %c0_i32_0, %c0_i32_1, %c0_i32_2 : i32, i32, i32, i32, i32
  }
}

</mosaic_0001>

<bundles_post_ra>
// kernel: tpu_custom_call.1
= control target key start
LH: loop header
LB: loop body
LE: loop exit
PB: predicated region body
PF: predicated region fallthrough
CT: control target
= control target key end

     0   :  { %s4420_s0 = inlined_call_operand.hbm [shape: f32[8,4,8], index: 0, kind: input, shape index: {}]   ;;  %s4421_s1 = inlined_call_operand.hbm [shape: f32[2,2,2,4,32], index: 1, kind: input, shape index: {}]   ;;  %s4422_s2 = inlined_call_operand.hbm [shape: bf16[2,8,96], index: 2, kind: input, shape index: {}]   ;;  %s4423_s3 = inlined_call_operand.hbm [shape: bf16[2,32,96], index: 3, kind: input, shape index: {}]   ;;  %s4424_s4 = inlined_call_operand.hbm [shape: bf16[2,1,32,96], index: 4, kind: input, shape index: {}]   ;;  %s4425_s5 = inlined_call_operand.hbm [shape: bf16[2,1,32,96], index: 5, kind: input, shape index: {}]   ;;  %s4426_s6 = inlined_call_operand.hbm [shape: f32[2,2,96], index: 6, kind: input, shape index: {}]   ;;  %s4427_s7 = inlined_call_operand.hbm [shape: f32[2,2,96], index: 7, kind: input, shape index: {}]   ;;  %s4428_s8 = inlined_call_operand.hbm [shape: f32[2,2,8,4,32], index: 8, kind: output, shape index: {0}]   ;;  %s4429_s9 = inlined_call_operand.hbm [shape: f32[2,2,2,4,32], index: 9, kind: output, shape index: {1}]  }
   0x1   :  { %4452 = sst [smem:[#allocation33_spill]] %s4421_s1 }
   0x2   :  { %4453 = sst [smem:[#allocation34_spill]] %s4423_s3 }
   0x3   :  { %4454 = sst [smem:[#allocation35_spill]] %s4425_s5 }
   0x4   :  { %4455 = sst [smem:[#allocation36_spill]] %s4428_s8 }
   0x5   :  { %15 = vsyncpa [#allocation5], 0 }
   0x6   :  { %16 = vsyncpa [#allocation8], 0 }
   0x7   :  { %18 = vsyncpa [#allocation8 + $0x1], 0 }
   0x8   :  { %19 = vsyncpa [#allocation11], 0 }
   0x9   :  { %21 = vsyncpa [#allocation11 + $0x1], 0 }
   0xa   :  { %22 = vsyncpa [#allocation14], 0 }
   0xb   :  { %24 = vsyncpa [#allocation14 + $0x1], 0 }
   0xc   :  { %25 = vsyncpa [#allocation17], 0 }
   0xd   :  { %27 = vsyncpa [#allocation17 + $0x1], 0 }
   0xe   :  { %28 = vsyncpa [#allocation6], 0 }
   0xf   :  { %30 = vsyncpa [#allocation6 + $0x1], 0 }
  0x10   :  { %31 = vsyncpa [#allocation20], 0 }
  0x11   :  { %33 = vsyncpa [#allocation20 + $0x1], 0  ;;  %s3490_s30 = smov 0   ;;  %s3492_s10 = smov 0  }
  0x12   :  { %s3494_s11 = smov 0   ;;  %s3496_s12 = smov 0  }
  0x13 LB: > { %4456 = sst [smem:[#allocation28_spill]] %s3408_s30  ;;  %s3511_s13 = sadd.s32 1, %s3420_s12   ;;  %s3420_s12 = sphi %s3496_s12, %s4494_s12   ;;  %s3416_s11 = sphi %s3494_s11, %s4496_s11   ;;  %s3412_s10 = sphi %s3492_s10, %s4498_s10   ;;  %s3408_s30 = sphi %s3490_s30, %s4497_s30  }
  0x14   : > { %4457 = sst [smem:[#allocation29_spill]] %s3416_s11  ;;  %s67_s14 = sadd.s32 1, %s3416_s11 }
  0x15   : > { %4458 = sst [smem:[#allocation30_spill]] %s3511_s13  ;;  %s64_s15 = ssub.s32 %s3420_s12, %s3511_s13 }
  0x16   : > { %p4430_p0 = scmp.ne.s32.totalorder %s3416_s11, %s3412_s10  ;;  %p65_p1 = scmp.eq.s32.totalorder %s64_s15, 0 }
  0x17   : > { %p75_p2 = scmp.eq.s32.totalorder %s3420_s12, 0  ;;  %p2918_p5 = scmp.lt.s32.totalorder %s3420_s12, 2 }
  0x18   : > { %s3520_s16 = scalar_select %p65_p1, %s3416_s11, %s67_s14  }
  0x19   : > { %p76_p3 = por %p75_p2, %p4430_p0  ;;  %s3528_s17 = sand.u32 1, %s3420_s12  }
  0x1a   : > { %4459 = sst [smem:[#allocation31_spill]] %s3520_s16  ;;  %s3531_s18 = sand.u32 1, %s3416_s11  }
  0x1b   : > { %s3534_s19 = sshll.u32 %s3531_s18, 4  ;;  %s3537_s20 = sshll.u32 %s3420_s12, 8 }
  0x1c   : > { %s4460_s1 = sld [smem:[#allocation33_spill]]  ;;  %s329_s24 = scalar_lea.vmem [#allocation7], %s3534_s19 }
  0x1d   : > { %s336_s25 = sshll.u32 %s329_s24, 4  ;;  %p3546_p6 = pnand %p2918_p5, %p76_p3  ;;  %s3550_s25 = int_to_ptr.vmem [resolvable:$true] %s336_s25 }
  0x1f   : > { %s4461_s26 = scalar_select %p3546_p6, 1, 0 }
  0x20   : > { %p3557_p8 = pneg %p3546_p6 }
  0x22   : > { %s3543_s23 = scalar_lea.hbm %s4460_s1, %s3537_s20  ;;  %s3073_s21 = scalar_lea.hbm %s4460_s1, 512 }
  0x23   : > { %s3068_s28 = scalar_lea.hbm %s3543_s23, 256  ;;  %p3074_p11 = scmp.lt.u32.totalorder %s3543_s23, %s4460_s1 }
  0x24   : > { %p3069_p7 = scmp.ne.s32.totalorder %s3543_s23, %s3068_s28  ;;  %p3075_p12 = scmp.lt.u32.totalorder %s3073_s21, %s3068_s28 }
  0x25   : > { %s4462_s29 = scalar_select %p3557_p8, 1, 0 }
  0x26   : > { %p3071_p9 = pnand %p3557_p8, %p3069_p7  ;;  %p3076_p13 = por %p3075_p12, %p3074_p11 }
  0x27   : > { %p3077_p1 = scmp.lt.u32.totalorder %s3068_s28, %s3543_s23 }
  0x28   : > { %p3072_p10 = pneg %p3071_p9 }
  0x29   : > { %p3078_p2 = por %p3077_p1, %p3076_p13 }
  0x2b   : > { %p3079_p3 = pnand %p3078_p2, %p3072_p10 }
  0x2d   : > { %3082 = shalt.err (!%p3079_p3)
}
  0x2e   : > { %s3083_s27 = scalar_lea.vmem %s3550_s25, 256  ;;  %s3422_s14 = smov [#allocation7]  }
  0x2f   : > { %p3084_p5 = scmp.ne.s32.totalorder %s3550_s25, %s3083_s27  ;;  %s3088_s15 = sshll.u32 %s3422_s14, 4  ;;  %s3089_s15 = int_to_ptr.vmem [resolvable:$false] %s3088_s15 }
  0x30   : > { %s3090_s22 = scalar_lea.vmem %s3089_s15, 512  ;;  %p3091_p4 = scmp.lt.s32.totalorder %s3550_s25, %s3089_s15 }
  0x31   : > { %p3086_p7 = pnand %p3084_p5, %p3557_p8  ;;  %p3092_p0 = scmp.lt.s32.totalorder %s3090_s22, %s3083_s27 }
  0x33   : > { %p3087_p9 = pneg %p3086_p7  ;;  %p3093_p11 = por %p3092_p0, %p3091_p4 }
  0x35   : > { %p3094_p12 = pnand %p3093_p11, %p3087_p9 }
  0x37   : > { %3097 = shalt.err (!%p3094_p12)
}
  0x38   : > { %s4435_s28 = smov 64   ;;  %s4437_s21 = smov 4  }
  0x39   : > { %s4463_s24 = scalar_lea.sflag [#allocation8], %s3528_s17  ;;  %s4464_s3 = sld [smem:[#allocation34_spill]] }
  0x3a   : > { %2891 = dma.hbm_to_vmem [thread:$0]  (!%p3546_p6), %s3543_s23, 256, %s3550_s25, %s4463_s24, %s4435_s28, %s4435_s28, %s4437_s21  }
  0x3b   : > { %s368_s22 = scalar_lea.vmem [#allocation10], %s3534_s19  ;;  %s4433_s16 = scalar_lea.sflag [#allocation11], %s3528_s17 }
  0x3c   : > { %s375_s1 = sshll.u32 %s368_s22, 4  ;;  %s3592_s1 = int_to_ptr.vmem [resolvable:$true] %s375_s1 }
  0x3f   : > { %s3589_s15 = scalar_lea.hbm %s4464_s3, %s3537_s20  ;;  %s3103_s24 = scalar_lea.hbm %s4464_s3, 512 }
  0x40   : > { %s3098_s13 = scalar_lea.hbm %s3589_s15, 256  ;;  %p3104_p13 = scmp.lt.u32.totalorder %s3589_s15, %s4464_s3 }
  0x41   : > { %p3099_p0 = scmp.ne.s32.totalorder %s3589_s15, %s3098_s13  ;;  %p3105_p1 = scmp.lt.u32.totalorder %s3103_s24, %s3098_s13 }
  0x42   : > { %p3107_p3 = scmp.lt.u32.totalorder %s3098_s13, %s3589_s15 }
  0x43   : > { %p3101_p4 = pnand %p3099_p0, %p3557_p8  ;;  %p3106_p2 = por %p3105_p1, %p3104_p13 }
  0x45   : > { %p3102_p10 = pneg %p3101_p4  ;;  %p3108_p5 = por %p3107_p3, %p3106_p2 }
  0x47   : > { %p3109_p7 = pnand %p3108_p5, %p3102_p10 }
  0x49   : > { %3112 = shalt.err (!%p3109_p7)
}
  0x4a   : > { %s3113_s22 = scalar_lea.vmem %s3592_s1, 256  ;;  %s3425_s23 = smov [#allocation10]  }
  0x4b   : > { %p3114_p9 = scmp.ne.s32.totalorder %s3592_s1, %s3113_s22  ;;  %s3118_s25 = sshll.u32 %s3425_s23, 4  ;;  %s3119_s25 = int_to_ptr.vmem [resolvable:$false] %s3118_s25 }
  0x4c   : > { %s3120_s27 = scalar_lea.vmem %s3119_s25, 512  ;;  %p3121_p0 = scmp.lt.s32.totalorder %s3592_s1, %s3119_s25 }
  0x4d   : > { %p3116_p11 = pnand %p3114_p9, %p3557_p8  ;;  %p3122_p4 = scmp.lt.s32.totalorder %s3120_s27, %s3113_s22 }
  0x4f   : > { %p3117_p12 = pneg %p3116_p11  ;;  %p3123_p13 = por %p3122_p4, %p3121_p0 }
  0x51   : > { %p3124_p1 = pnand %p3123_p13, %p3117_p12 }
  0x53   : > { %3127 = shalt.err (!%p3124_p1)
}
  0x54   : > { %2897 = dma.hbm_to_vmem [thread:$0]  (!%p3546_p6), %s3589_s15, 256, %s3592_s1, %s4433_s16, %s4435_s28, %s4435_s28, %s4437_s21  }
  0x55   : > { %s4465_s5 = sld [smem:[#allocation35_spill]]  ;;  %s410_s22 = scalar_lea.vmem [#allocation13], %s3534_s19 }
  0x56   : > { %s417_s23 = sshll.u32 %s410_s22, 4  ;;  %s4434_s25 = scalar_lea.sflag [#allocation14], %s3528_s17  ;;  %s3628_s23 = int_to_ptr.vmem [resolvable:$true] %s417_s23 }
  0x5b   : > { %s3625_s14 = scalar_lea.hbm %s4465_s5, %s3537_s20  ;;  %s3133_s13 = scalar_lea.hbm %s4465_s5, 512 }
  0x5c   : > { %s3128_s27 = scalar_lea.hbm %s3625_s14, 256  ;;  %p3134_p5 = scmp.lt.u32.totalorder %s3625_s14, %s4465_s5 }
  0x5d   : > { %p3129_p10 = scmp.ne.s32.totalorder %s3625_s14, %s3128_s27  ;;  %p3135_p7 = scmp.lt.u32.totalorder %s3133_s13, %s3128_s27 }
  0x5e   : > { %p3137_p11 = scmp.lt.u32.totalorder %s3128_s27, %s3625_s14 }
  0x5f   : > { %p3131_p2 = pnand %p3129_p10, %p3557_p8  ;;  %p3136_p9 = por %p3135_p7, %p3134_p5 }
  0x61   : > { %p3132_p3 = pneg %p3131_p2  ;;  %p3138_p12 = por %p3137_p11, %p3136_p9 }
  0x63   : > { %p3139_p0 = pnand %p3138_p12, %p3132_p3 }
  0x65   : > { %3142 = shalt.err (!%p3139_p0)
}
  0x66   : > { %s3143_s22 = scalar_lea.vmem %s3628_s23, 256  ;;  %s3426_s1 = smov [#allocation13]  }
  0x67   : > { %p3144_p4 = scmp.ne.s32.totalorder %s3628_s23, %s3143_s22  ;;  %s3148_s15 = sshll.u32 %s3426_s1, 4  ;;  %s3149_s15 = int_to_ptr.vmem [resolvable:$false] %s3148_s15 }
  0x68   : > { %s3150_s16 = scalar_lea.vmem %s3149_s15, 512  ;;  %p3151_p10 = scmp.lt.s32.totalorder %s3628_s23, %s3149_s15 }
  0x69   : > { %p3146_p13 = pnand %p3144_p4, %p3557_p8  ;;  %p3152_p2 = scmp.lt.s32.totalorder %s3150_s16, %s3143_s22 }
  0x6b   : > { %p3147_p1 = pneg %p3146_p13  ;;  %p3153_p5 = por %p3152_p2, %p3151_p10 }
  0x6d   : > { %p3154_p7 = pnand %p3153_p5, %p3147_p1 }
  0x6f   : > { %3157 = shalt.err (!%p3154_p7)
}
  0x70   : > { %2903 = dma.hbm_to_vmem [thread:$0]  (!%p3546_p6), %s3625_s14, 256, %s3628_s23, %s4434_s25, %s4435_s28, %s4435_s28, %s4437_s21  }
  0x71   : > { %s3658_s27 = sadd.s32 4294967295, %s3420_s12   ;;  %s2549_s13 = sadd.s32 4294967294, %s3420_s12  }
  0x72   : > { %p80_p3 = scmp.ne.s32.totalorder %s3412_s10, %s3408_s30  ;;  %p4442_p9 = scmp.eq.s32.totalorder %s3658_s27, 0 }
  0x73   : > { %p260_p11 = scmp.eq.s32.totalorder %s3658_s27, 1  ;;  %p266_p12 = scmp.eq.s32.totalorder %s2549_s13, 1 }
  0x74   : > { %p3667_p0 = por %p4442_p9, %p80_p3  ;;  %p2550_p4 = scmp.ge.s32.totalorder %s3420_s12, 1 }
  0x75   : > { %p4467_p13 = scmp.ne.s32.totalorder %s3416_s11, %s3412_s10  ;;  %p3679_p10 = por %p266_p12, %p80_p3 }
  0x76   : > { %s4466_s24 = scalar_select %p3667_p0, 1, 0 }
  0x77   : > { %p3675_p1 = por %p260_p11, %p4467_p13  ;;  %p299_p2 = scmp.lt.s32.totalorder %s3420_s12, 3 }
  0x78   : > { %s4469_s23 = scalar_select %p3679_p10, 1, 0 }
  0x79   : > { %s4468_s14 = scalar_select %p3675_p1, 1, 0 }
  0x7a   : > { %4470 = sst [smem:[#allocation32_spill]] %s4469_s23  ;;  %s2556_s22 = sshll.u32 %s3531_s18, 2 }
  0x7b   : > { %p3685_p5 = pnand %p2550_p4, %p299_p2  ;;  %s3427_s15 = smov [#allocation4]  }
  0x7c   : > { %s311_s16 = sshll.u32 %s3427_s15, 4  ;;  %s2557_s13 = sshll.u32 %s3420_s12, 6  ;;  %s3689_s16 = int_to_ptr.vmem [resolvable:$true] %s311_s16 }
  0x7d   : > { %s4471_s1 = scalar_select %p3685_p5, 1, 0 }
  0x7e   : > { %p2884_p7 = pneg %p3685_p5  ;;  %s3697_s21 = scalar_lea.hbm %s4422_s2, %s2557_s13 }
  0x7f   : > { %s350_s3 = scalar_lea.vmem [#allocation9], %s2556_s22  ;;  %s3158_s15 = scalar_lea.hbm %s3697_s21, 64 }
  0x80   : > { %s357_s5 = sshll.u32 %s350_s3, 4  ;;  %p3701_p3 = pnand %p2884_p7, %p4442_p9  ;;  %s358_s5 = int_to_ptr.vmem [resolvable:$true] %s357_s5 }
  0x81   : > { %p3159_p11 = scmp.ne.s32.totalorder %s3697_s21, %s3158_s15  ;;  %s3163_s13 = scalar_lea.hbm %s4422_s2, 128 }
  0x82   : > { %s4472_s11 = scalar_select %p3701_p3, 1, 0 }
  0x83   : > { %p3161_p12 = pnand %p3159_p11, %p3557_p8  ;;  %p3164_p13 = scmp.lt.u32.totalorder %s3697_s21, %s4422_s2 }
  0x84   : > { %p3165_p2 = scmp.lt.u32.totalorder %s3163_s13, %s3158_s15  ;;  %p3167_p7 = scmp.lt.u32.totalorder %s3158_s15, %s3697_s21 }
  0x85   : > { %p3162_p4 = pneg %p3161_p12 }
  0x86   : > { %p3166_p10 = por %p3165_p2, %p3164_p13 }
  0x88   : > { %p3168_p9 = por %p3167_p7, %p3166_p10 }
  0x8a   : > { %p3169_p1 = pnand %p3168_p9, %p3162_p4 }
  0x8c   : > { %3172 = shalt.err (!%p3169_p1)
}
  0x8d   : > { %s3173_s3 = scalar_lea.vmem %s358_s5, 64  ;;  %s3428_s22 = smov [#allocation9]  }
  0x8e   : > { %p3174_p0 = scmp.ne.s32.totalorder %s358_s5, %s3173_s3  ;;  %s3178_s8 = sshll.u32 %s3428_s22, 4  ;;  %s3179_s8 = int_to_ptr.vmem [resolvable:$false] %s3178_s8 }
  0x8f   : > { %s3180_s28 = scalar_lea.vmem %s3179_s8, 128  ;;  %p3181_p5 = scmp.lt.s32.totalorder %s358_s5, %s3179_s8 }
  0x90   : > { %p3176_p11 = pnand %p3174_p0, %p3557_p8  ;;  %p3182_p3 = scmp.lt.s32.totalorder %s3180_s28, %s3173_s3 }
  0x92   : > { %p3177_p12 = pneg %p3176_p11  ;;  %p3183_p6 = por %p3182_p3, %p3181_p5 }
  0x94   : > { %p3184_p2 = pnand %p3183_p6, %p3177_p12 }
  0x96   : > { %3187 = shalt.err (!%p3184_p2)
}
  0x97   : > { %p4473_p13 = scmp.ne.s32.totalorder %s4461_s26, 0  ;;  %s4474_s30 = scalar_lea.sflag [#allocation8], %s3528_s17 }
  0x98   : > { %s3188_s25 = scalar_lea.hbm %s4420_s0, 512  ;;  %p4475_p0 = scmp.ne.s32.totalorder %s4472_s11, 0 }
  0x99   : > { %2894 = dma.hbm_to_vmem [thread:$0]  (!%p4473_p13), %s3697_s21, 64, %s358_s5, %s4474_s30  }
  0x9a   : > { %p3189_p9 = scmp.ne.s32.totalorder %s4420_s0, %s3188_s25  ;;  %p3190_p1 = pneg %p4475_p0 }
  0x9b   : > { %p3195_p5 = scmp.lt.u32.totalorder %s3188_s25, %s4420_s0 }
  0x9c   : > { %p3191_p10 = pnand %p3190_p1, %p3189_p9 }
  0x9e   : > { %p3192_p6 = pneg %p3191_p10 }
  0xa0   : > { %p3197_p3 = pnand %p3195_p5, %p3192_p6 }
  0xa2   : > { %3200 = shalt.err (!%p3197_p3)
}
  0xa3   : > { %s3201_s5 = scalar_lea.vmem %s3689_s16, 512  ;;  %p3209_p12 = scmp.lt.s32.totalorder %s3689_s16, %s3689_s16 }
  0xa4   : > { %p3202_p4 = scmp.ne.s32.totalorder %s3689_s16, %s3201_s5  ;;  %p3210_p2 = scmp.lt.s32.totalorder %s3201_s5, %s3201_s5 }
  0xa6   : > { %p3204_p7 = pnand %p3202_p4, %p3190_p1  ;;  %p3211_p13 = por %p3210_p2, %p3209_p12 }
  0xa8   : > { %p3205_p11 = pneg %p3204_p7 }
  0xaa   : > { %p3212_p8 = pnand %p3211_p13, %p3205_p11 }
  0xac   : > { %3215 = shalt.err (!%p3212_p8)
}
  0xad   : > { %s4476_s21 = smov 4   ;;  %s4477_s28 = smov 64  }
  0xae   : > { %2887 = dma.hbm_to_vmem [thread:$0]  (!%p4475_p0), %s4420_s0, 512, %s3689_s16, [#allocation5], %s4477_s28, %s4477_s28, %s4476_s21  }
  0xaf   : > { %s3752_s13 = scalar_lea.hbm %s4424_s4, %s3537_s20  ;;  %s389_s11 = scalar_lea.vmem [#allocation12], %s3534_s19 }
  0xb0   : > { %s396_s22 = sshll.u32 %s389_s11, 4  ;;  %s2567_s8 = sshll.u32 %s3531_s18, 1  ;;  %s3755_s22 = int_to_ptr.vmem [resolvable:$true] %s396_s22 }
  0xb1   : > { %s3216_s3 = scalar_lea.hbm %s3752_s13, 256  ;;  %p4478_p13 = scmp.ne.s32.totalorder %s4462_s29, 0 }
  0xb2   : > { %p3217_p8 = scmp.ne.s32.totalorder %s3752_s13, %s3216_s3  ;;  %s3221_s30 = scalar_lea.hbm %s4424_s4, 512 }
  0xb3   : > { %p3222_p0 = scmp.lt.u32.totalorder %s3752_s13, %s4424_s4  ;;  %p3223_p10 = scmp.lt.u32.totalorder %s3221_s30, %s3216_s3 }
  0xb4   : > { %p3219_p9 = pnand %p3217_p8, %p4478_p13  ;;  %p3225_p5 = scmp.lt.u32.totalorder %s3216_s3, %s3752_s13 }
  0xb5   : > { %p3224_p6 = por %p3223_p10, %p3222_p0 }
  0xb6   : > { %p3220_p1 = pneg %p3219_p9 }
  0xb7   : > { %p3226_p3 = por %p3225_p5, %p3224_p6 }
  0xb9   : > { %p3227_p4 = pnand %p3226_p3, %p3220_p1 }
  0xbb   : > { %3230 = shalt.err (!%p3227_p4)
}
  0xbc   : > { %s3231_s19 = scalar_lea.vmem %s3755_s22, 256  ;;  %s3429_s15 = smov [#allocation12]  }
  0xbd   : > { %p3232_p7 = scmp.ne.s32.totalorder %s3755_s22, %s3231_s19  ;;  %s3236_s25 = sshll.u32 %s3429_s15, 4  ;;  %s3237_s25 = int_to_ptr.vmem [resolvable:$false] %s3236_s25 }
  0xbe   : > { %s3238_s11 = scalar_lea.vmem %s3237_s25, 512  ;;  %p3239_p2 = scmp.lt.s32.totalorder %s3755_s22, %s3237_s25 }
  0xbf   : > { %p3234_p11 = pnand %p3232_p7, %p4478_p13  ;;  %p3240_p8 = scmp.lt.s32.totalorder %s3238_s11, %s3231_s19 }
  0xc1   : > { %p3235_p12 = pneg %p3234_p11  ;;  %p3241_p9 = por %p3240_p8, %p3239_p2 }
  0xc3   : > { %p3242_p0 = pnand %p3241_p9, %p3235_p12 }
  0xc5   : > { %3245 = shalt.err (!%p3242_p0)
}
  0xc6   : > { %p4479_p1 = scmp.ne.s32.totalorder %s4461_s26, 0  ;;  %s4480_s3 = scalar_lea.sflag [#allocation11], %s3528_s17 }
  0xc7   : > { %s2568_s16 = sshll.u32 %s3420_s12, 5  ;;  %s431_s23 = scalar_lea.vmem [#allocation15], %s2567_s8 }
  0xc8   : > { %2900 = dma.hbm_to_vmem [thread:$0]  (!%p4479_p1), %s3752_s13, 256, %s3755_s22, %s4480_s3, %s4477_s28, %s4477_s28, %s4476_s21  }
  0xc9   : > { %s3790_s20 = scalar_lea.hbm %s4426_s6, %s2568_s16  ;;  %s438_s19 = sshll.u32 %s431_s23, 4  ;;  %s439_s19 = int_to_ptr.vmem [resolvable:$true] %s438_s19 }
  0xca   : > { %s3246_s15 = scalar_lea.hbm %s3790_s20, 32  ;;  %s3251_s13 = scalar_lea.hbm %s4426_s6, 64 }
  0xcb   : > { %p3247_p10 = scmp.ne.s32.totalorder %s3790_s20, %s3246_s15  ;;  %p3252_p3 = scmp.lt.u32.totalorder %s3790_s20, %s4426_s6 }
  0xcc   : > { %p3253_p4 = scmp.lt.u32.totalorder %s3251_s13, %s3246_s15  ;;  %p3255_p11 = scmp.lt.u32.totalorder %s3246_s15, %s3790_s20 }
  0xcd   : > { %p3249_p6 = pnand %p3247_p10, %p4478_p13 }
  0xce   : > { %p3254_p7 = por %p3253_p4, %p3252_p3 }
  0xcf   : > { %p3250_p5 = pneg %p3249_p6 }
  0xd0   : > { %p3256_p12 = por %p3255_p11, %p3254_p7 }
  0xd2   : > { %p3257_p2 = pnand %p3256_p12, %p3250_p5 }
  0xd4   : > { %3260 = shalt.err (!%p3257_p2)
}
  0xd5   : > { %s3261_s11 = scalar_lea.vmem %s439_s19, 32  ;;  %s3430_s3 = smov [#allocation15]  }
  0xd6   : > { %p3262_p8 = scmp.ne.s32.totalorder %s439_s19, %s3261_s11  ;;  %s3266_s5 = sshll.u32 %s3430_s3, 4  ;;  %s3267_s5 = int_to_ptr.vmem [resolvable:$false] %s3266_s5 }
  0xd7   : > { %s3268_s30 = scalar_lea.vmem %s3267_s5, 64  ;;  %p3269_p10 = scmp.lt.s32.totalorder %s439_s19, %s3267_s5 }
  0xd8   : > { %p3264_p9 = pnand %p3262_p8, %p4478_p13  ;;  %p3270_p6 = scmp.lt.s32.totalorder %s3268_s30, %s3261_s11 }
  0xda   : > { %p3265_p0 = pneg %p3264_p9  ;;  %p3271_p1 = por %p3270_p6, %p3269_p10 }
  0xdc   : > { %p3272_p3 = pnand %p3271_p1, %p3265_p0 }
  0xde   : > { %3275 = shalt.err (!%p3272_p3)
}
  0xdf   : > { %p4481_p4 = scmp.ne.s32.totalorder %s4461_s26, 0  ;;  %s4482_s23 = scalar_lea.sflag [#allocation14], %s3528_s17 }
  0xe0   : > { %s3818_s28 = scalar_lea.hbm %s4427_s7, %s2568_s16  ;;  %s449_s13 = scalar_lea.vmem [#allocation16], %s2567_s8 }
  0xe1   : > { %2906 = dma.hbm_to_vmem [thread:$0]  (!%p4481_p4), %s3790_s20, 32, %s439_s19, %s4482_s23  }
  0xe2   : > { %s456_s22 = sshll.u32 %s449_s13, 4  ;;  %s446_s17 = scalar_lea.sflag [#allocation17], %s3531_s18  ;;  %s457_s22 = int_to_ptr.vmem [resolvable:$true] %s456_s22 }
  0xe3   : > { %s3276_s25 = scalar_lea.hbm %s3818_s28, 32  ;;  %s3281_s11 = scalar_lea.hbm %s4427_s7, 64 }
  0xe4   : > { %p3277_p1 = scmp.ne.s32.totalorder %s3818_s28, %s3276_s25  ;;  %p3282_p11 = scmp.lt.u32.totalorder %s3818_s28, %s4427_s7 }
  0xe5   : > { %p3283_p12 = scmp.lt.u32.totalorder %s3281_s11, %s3276_s25  ;;  %p3285_p8 = scmp.lt.u32.totalorder %s3276_s25, %s3818_s28 }
  0xe6   : > { %p3279_p5 = pnand %p3277_p1, %p4478_p13 }
  0xe7   : > { %p3284_p2 = por %p3283_p12, %p3282_p11 }
  0xe8   : > { %p3280_p7 = pneg %p3279_p5 }
  0xe9   : > { %p3286_p9 = por %p3285_p8, %p3284_p2 }
  0xeb   : > { %p3287_p0 = pnand %p3286_p9, %p3280_p7 }
  0xed   : > { %3290 = shalt.err (!%p3287_p0)
}
  0xee   : > { %s3291_s18 = scalar_lea.vmem %s457_s22, 32  ;;  %s3431_s8 = smov [#allocation16]  }
  0xef   : > { %p3292_p10 = scmp.ne.s32.totalorder %s457_s22, %s3291_s18  ;;  %s3296_s5 = sshll.u32 %s3431_s8, 4  ;;  %s3297_s5 = int_to_ptr.vmem [resolvable:$false] %s3296_s5 }
  0xf0   : > { %s3298_s30 = scalar_lea.vmem %s3297_s5, 64  ;;  %p3299_p1 = scmp.lt.s32.totalorder %s457_s22, %s3297_s5 }
  0xf1   : > { %p3294_p6 = pnand %p3292_p10, %p4478_p13  ;;  %p3300_p5 = scmp.lt.s32.totalorder %s3298_s30, %s3291_s18 }
  0xf3   : > { %p3295_p3 = pneg %p3294_p6  ;;  %p3301_p4 = por %p3300_p5, %p3299_p1 }
  0xf5   : > { %p3302_p11 = pnand %p3301_p4, %p3295_p3 }
  0xf7   : > { %3305 = shalt.err (!%p3302_p11)
}
  0xf8   : > { %p4483_p12 = scmp.ne.s32.totalorder %s4461_s26, 0  ;;  %p4484_p7 = scmp.ne.s32.totalorder %s4471_s1, 0 }
  0xf9   : > { %p4485_p2 = scmp.eq.s32.totalorder (!%p4484_p7), %s3658_s27, 0 }
  0xfa   : > { %2909 = dma.hbm_to_vmem [thread:$0]  (!%p4483_p12), %s3818_s28, 32, %s457_s22, %s446_s17  }
  0xfb   : > { %465 = sbr.rel (%p4484_p7) target bundleno = 12740 (0x31c4), region = 52 }
 0x102   : > { %3379 = dma.done.wait (%p4485_p2), [#allocation5], 512   ;;  %p4486_p13 = pmov %p4485_p2 }
 0x103   : > { %s471_s29 = sand.u32 1, %s3658_s27   ;;  %s3848_s23 = sand.u32 1, %s3412_s10  }
 0x104   : > { %3381 = vsyncadd (%p4486_p13), [#allocation5], 4294966784  ;;  %s3851_s15 = sshll.u32 %s3848_s23, 4  ;;  %s472_s26 = scalar_lea.sflag [#allocation8], %s471_s29 }
 0x105   : > { %s3854_s21 = scalar_lea.vmem [#allocation7], %s3851_s15  ;;  %p4487_p4 = scmp.ne.s32.totalorder %s4466_s24, 0 }
 0x107   : > { %3383 = dma.done.wait (%p4487_p4), %s472_s26, 320  }
 0x108   : > { %3385 = vsyncadd (%p4487_p4), %s472_s26, 4294966976  ;;  %s2574_s1 = sshll.u32 %s3848_s23, 2  ;;  %s490_s13 = scalar_lea.sflag [#allocation11], %s471_s29 }
 0x109   : > { %s484_s28 = scalar_lea.vmem [#allocation9], %s2574_s1  ;;  %s493_s22 = scalar_lea.vmem [#allocation10], %s3851_s15 }
 0x10a   : > { %3387 = dma.done.wait (%p4487_p4), %s490_s13, 512  }
 0x10b   : > { %3389 = vsyncadd (%p4487_p4), %s490_s13, 4294966784  ;;  %s502_s17 = scalar_lea.vmem [#allocation12], %s3851_s15  ;;  %s508_s25 = scalar_lea.sflag [#allocation14], %s471_s29 }
 0x10c   : > { %s511_s20 = scalar_lea.vmem [#allocation13], %s3851_s15 }
 0x10d   : > { %3391 = dma.done.wait (%p4487_p4), %s508_s25, 288  }
 0x10e   : > { %3393 = vsyncadd (%p4487_p4), %s508_s25, 4294967008  ;;  %s2578_s19 = sshll.u32 %s3848_s23, 1  ;;  %s526_s16 = scalar_lea.sflag [#allocation17], %s3848_s23 }
 0x10f   : > { %s3873_s11 = scalar_lea.vmem [#allocation15], %s2578_s19  ;;  %s3876_s3 = scalar_lea.vmem [#allocation16], %s2578_s19 }
 0x110   : > { %3395 = dma.done.wait (%p4487_p4), %s526_s16, 32  }
 0x111   : > { %3397 = vsyncadd (%p4487_p4), %s526_s16, 4294967264  ;;  %v3432_v0 = vmov 0.0   ;;  %vm3433_vm0 = vmmov 0   ;;  %vm639_vm1 = vcmask 1043456   ;;  %v626_v1 = vld [vmem:[%s484_s28] sm:$0xf] }
 0x112   : > { %2721 = vmatprep.subr.bf16.mxu1 %v3432_v0  ;;  %2725 = vmatprep.mubr.msk.bf16.mxu1 %vm3433_vm0, %v3432_v0  ;;  %v2586_v2 = vld [vmem:[%s3854_s21 + $0x8] sm:$0xf]  ;;  %v730_v3 = vld [vmem:[%s3854_s21] sm:$0xf]  ;;  %v641_v5 = vsel %vm639_vm1, %v626_v1, 0  ;;  %vm632_vm2 = vcmask 64512  }
 0x113   : > { %2861 = vmatprep.subr.msk.bf16.mxu0 %vm639_vm1, %v626_v1  ;;  %v734_v4 = vrot.slane %v2586_v2, 4  ;;  %v3891_v6 = vld [vmem:[%s493_s22] sm:$0xff]   ;;  %v2963_v7 = vld [vmem:[#allocation4] sm:$0xff]   ;;  %v2965_v11 = vld [vmem:[#allocation4 + $0x10] sm:$0xff]   ;;  %vm751_vm3 = vcmask 261120   ;;  %vm704_vm4 = vcmask 781312  }
 0x114   : > { %2716 = vmatpush3.bf16.msra.mxu0 %v641_v5  ;;  %2722 = vmatpush3.bf16.msra.mxu1 %v3891_v6  ;;  %v2964_v8 = vld [vmem:[#allocation4 + $0x8] sm:$0xff]   ;;  %v2966_v12 = vld [vmem:[#allocation4 + $0x18] sm:$0xff]   ;;  %v3901_v13 = vld [vmem:[%s493_s22 + $0x8] sm:$0xff]   ;;  %s3434_s24 = smov 64   ;;  %s3435_s18 = smov 32   ;;  %vm1536_vm5 = vcmask 785408  }
 0x115   : > { %2729 = vmatprep.subr.bf16.mxu0 %v3432_v0  ;;  %v3896_v9 = vsel %vm639_vm1, %v730_v3, %v734_v4  ;;  %2723 = vmatprep.subr.bf16.mxu1 %v3432_v0  ;;  %v624_v10 = vpack.c.bf16 %v2964_v8, %v2963_v7  ;;  %v625_v14 = vpack.c.bf16 %v2966_v12, %v2965_v11  ;;  %v2582_v16 = vld [vmem:[%s3873_s11] ss:$0 sm:$0xff]  ;;  %v3922_v18 = vld [vmem:[%s3876_s3] ss:$0 sm:$0xff]  ;;  %s3436_s8 = smov 96   ;;  %vm1421_vm6 = vcmask 257024  }
 0x116   : > { %v738_v15 = vpack.c.bf16 %v3896_v9, %v3896_v9  ;;  %vm1424_vm7 = vcmask 261124   ;;  %s4167_s5 = scalar_lea.vmem [#allocation19], %s3851_s15  ;;  %s2580_s30 = sshll.u32 %s3848_s23, 6 }
 0x117   : > { %2717 = vmatprep.mubr.msk.bf16.mxu0 %vm632_vm2, %v624_v10  ;;  %s4283_s29 = scalar_lea.vmem [#allocation18], %s2580_s30  ;;  %s2303_s15 = sshll.u32 %s4167_s5, 4  ;;  %s4323_s15 = int_to_ptr.vmem [resolvable:$true] %s2303_s15 }
 0x118   : > { %2724 = vmatpush3.bf16.msra.mxu1 %v3901_v13  ;;  %2718 = vmatmul.mubr.msk.bf16.vlgmr.msra.gmra.mrb[0].mxu0 %vm632_vm2, %v625_v14  ;;  %s2657_s26 = sshll.u32 %s3658_s27, 8  ;;  %s2274_s13 = scalar_lea.sflag [#allocation20], %s3848_s23 }
 0x119   : > { %2737 = vmatprep.subr.bf16.mxu1 %v3432_v0  ;;  %2730 = vmatpush3.bf16.msra.mxu0 %v3891_v6  ;;  %s4328_s28 = scalar_lea.hbm %s4429_s9, %s2657_s26  ;;  %s3306_s22 = scalar_lea.vmem %s4323_s15, 256 }
 0x11a   : > { %2733 = vmatprep.mubr.msk.bf16.mxu0 %vm3433_vm0, %v3432_v0  ;;  %2731 = vmatprep.subr.bf16.mxu0 %v3432_v0  ;;  %p3307_p8 = scmp.ne.s32.totalorder %s4323_s15, %s3306_s22  ;;  %p4488_p9 = scmp.ne.s32.totalorder %s4468_s14, 0 }
 0x11b   : > { %2726 = vmatmul.mubr.msk.bf16.vlgmr.msra.gmra.mrb[0].mxu1 %vm751_vm3, %v738_v15 }
 0x11c   : > { %2738 = vmatpush3.bf16.msra.mxu1 %v3891_v6  ;;  %2741 = vmatprep.mubr.msk.bf16.mxu1 %vm3433_vm0, %v3432_v0  ;;  %p3308_p0 = pnand %p3307_p8, %p4488_p9 }
 0x11d   : > { %2739 = vmatprep.subr.bf16.mxu1 %v3432_v0  ;;  %2732 = vmatpush3.bf16.msra.mxu0 %v3901_v13 }
 0x11e   : > { %2745 = vmatprep.subr.bf16.mxu0 %v3432_v0  ;;  %p3309_p10 = pneg %p3308_p0 }
 0x120   : > { %2740 = vmatpush3.bf16.msra.mxu1 %v3901_v13 }
 0x121   : > { %2753 = vmatprep.subr.bf16.mxu1 %v3432_v0 }
 0x1eb   : > { %v2719_v17 = vpop.f32.mrb[0].mxu0 }
 0x1ec   : > { %v686_v19 = vadd.f32 %v2719_v17, %v2582_v16  ;;  %v677_v20 = vpop.f32.mrb[1].mxu0 }
 0x1ed   : > { %v678_v21 = vadd.f32 %v2582_v16, %v677_v20  ;;  %v2720_v23 = vpop.f32.mrb[2].mxu0 }
 0x1ee   : > { %v789_v22 = vpop.f32.mrb[0].mxu1  ;;  %v698_v24 = vcombine.high %v686_v19, %v686_v19  ;;  %709 = vst.msk [vmem:[#allocation2 + $0x20] sm:$0xf] %vm704_vm4, %v686_v19  ;;  %717 = vst.msk [vmem:[#allocation2 + $0x24] sm:$0xf] %vm704_vm4, %v686_v19  ;;  %v689_v27 = vadd.f32 %v2720_v23, %v2582_v16  ;;  %v680_v28 = vpop.f32.mrb[3].mxu0 }
 0x1ef   : > { %v790_v25 = vadd.f32 %v3922_v18, %v789_v22  ;;  %v2727_v26 = vpop.f32.mrb[1].mxu1  ;;  %v696_v29 = vcombine.high %v678_v21, %v678_v21  ;;  %705 = vst.msk [vmem:[#allocation2] sm:$0xf] %vm704_vm4, %v678_v21  ;;  %713 = vst.msk [vmem:[#allocation2 + $0x4] sm:$0xf] %vm704_vm4, %v678_v21  ;;  %v681_v31 = vadd.f32 %v2582_v16, %v680_v28 }
 0x1f0   : > { %v792_v30 = vpop.f32.mrb[2].mxu1  ;;  %710 = vst.msk [vmem:[#allocation2 + $0x28] sm:$0xf] %vm704_vm4, %v698_v24  ;;  %718 = vst.msk [vmem:[#allocation2 + $0x2c] sm:$0xf] %vm704_vm4, %v698_v24  ;;  %v699_v33 = vcombine.high %v689_v27, %v689_v27 }
 0x1f1   : > { %803 = vrot.lane.b32.xlu0 %v790_v25, %s3434_s24  ;;  %v2728_v32 = vpop.f32.mrb[3].mxu1  ;;  %711 = vst.msk [vmem:[#allocation2 + $0x30] sm:$0xf] %vm704_vm4, %v689_v27  ;;  %719 = vst.msk [vmem:[#allocation2 + $0x34] sm:$0xf] %vm704_vm4, %v689_v27  ;;  %v697_v34 = vcombine.high %v681_v31, %v681_v31 }
 0x1f2   : > { %706 = vst.msk [vmem:[#allocation2 + $0x8] sm:$0xf] %vm704_vm4, %v696_v29  ;;  %714 = vst.msk [vmem:[#allocation2 + $0xc] sm:$0xf] %vm704_vm4, %v696_v29 }
 0x1f3   : > { %707 = vst.msk [vmem:[#allocation2 + $0x10] sm:$0xf] %vm704_vm4, %v681_v31  ;;  %715 = vst.msk [vmem:[#allocation2 + $0x14] sm:$0xf] %vm704_vm4, %v681_v31 }
 0x1f4   : > { %712 = vst.msk [vmem:[#allocation2 + $0x38] sm:$0xf] %vm704_vm4, %v699_v33  ;;  %720 = vst.msk [vmem:[#allocation2 + $0x3c] sm:$0xf] %vm704_vm4, %v699_v33 }
 0x1f5   : > { %708 = vst.msk [vmem:[#allocation2 + $0x18] sm:$0xf] %vm704_vm4, %v697_v34  ;;  %716 = vst.msk [vmem:[#allocation2 + $0x1c] sm:$0xf] %vm704_vm4, %v697_v34 }
 0x1f6   : > { %v737_v35 = vld [vmem:[#allocation2] sm:$0xff] }
 0x1f7   : > { %v795_v36 = vadd.f32 %v790_v25, %v737_v35 }
 0x1f9   : > { %v2590_v37 = vmul.f32 -1.442695, %v795_v36  ;;  %v834_v59 = vld [vmem:[#allocation2 + $0x8] sm:$0xff] }
 0x1fa   : > { %v918_v22 = vld [vmem:[#allocation2 + $0x10] sm:$0xff] }
 0x1fb   : > { %2972 = vpow2.f32 %v2590_v37 }
 0x205   : > { %v2973_v38 = vpop.eup %2972 }
 0x206   : > { %v799_v39 = vadd.f32 1.0, %v2973_v38 }
 0x208   : > { %2974 = vrcp.f32 %v799_v39 }
 0x212   : > { %v2975_v40 = vpop.eup %2974 }
 0x263   : > { %v804_v41 = vpop.permute.xlu0 %803 }
 0x264   : > { %v806_v42 = vmul.f32 %v2975_v40, %v804_v41 }
 0x266   : > { %808 = vrot.lane.b32.xlu0 %v806_v42, %s3434_s24 }
 0x2d8   : > { %v809_v43 = vpop.permute.xlu0 %808 }
 0x2d9   : > { %v811_v44 = vadd.f32 %v809_v43, %v737_v35 }
 0x2db   : > { %2976 = vtanh.f32 %v811_v44 }
 0x2e5   : > { %v2977_v45 = vpop.eup %2976 }
 0x2e6   : > { %814 = vrot.lane.b32.xlu1 %v2977_v45, %s3434_s24 }
 0x358   : > { %v815_v46 = vpop.permute.xlu1 %814 }
 0x359   : > { %v817_v47 = vsub.f32 %v3896_v9, %v815_v46 }
 0x35b   : > { %819 = vrot.lane.b32.xlu1 %v817_v47, %s3435_s18 }
 0x3cd   : > { %v820_v48 = vpop.permute.xlu1 %819 }
 0x3ce   : > { %v822_v49 = vmul.f32 %v2975_v40, %v820_v48 }
 0x3d0   : > { %824 = vrot.lane.b32.xlu0 %v822_v49, %s3435_s18 }
 0x442   : > { %v825_v50 = vpop.permute.xlu0 %824 }
 0x443   : > { %v3947_v51 = vadd.f32 %v2977_v45, %v825_v50  ;;  %v1002_v45 = vld [vmem:[#allocation2 + $0x18] sm:$0xff] }
 0x445   : > { %v835_v52 = vpack.c.bf16 %v3947_v51, %v3947_v51 }
 0x447   : > { %837 = vrot.lane.b32.xlu1 %v835_v52, %s3434_s24 }
 0x4b9   : > { %v838_v53 = vpop.permute.xlu1 %837 }
 0x4ba   : > { %2734 = vmatmul.mubr.msk.bf16.vlgmr.msra.gmra.mrb[4].mxu0 %vm751_vm3, %v838_v53 }
 0x4bb   : > { %2746 = vmatpush3.bf16.msra.mxu0 %v3891_v6  ;;  %2749 = vmatprep.mubr.msk.bf16.mxu0 %vm3433_vm0, %v3432_v0 }
 0x4bc   : > { %2747 = vmatprep.subr.bf16.mxu0 %v3432_v0 }
 0x4bf   : > { %2748 = vmatpush3.bf16.msra.mxu0 %v3901_v13 }
 0x4c0   : > { %2761 = vmatprep.subr.bf16.mxu0 %v3432_v0 }
 0x58d   : > { %v876_v54 = vpop.f32.mrb[4].mxu0 }
 0x58e   : > { %v877_v55 = vadd.f32 %v3922_v18, %v876_v54  ;;  %v2735_v56 = vpop.f32.mrb[5].mxu0 }
 0x58f   : > { %v879_v57 = vpop.f32.mrb[6].mxu0 }
 0x590   : > { %890 = vrot.lane.b32.xlu0 %v877_v55, %s3434_s24  ;;  %v2736_v58 = vpop.f32.mrb[7].mxu0  ;;  %v882_v60 = vadd.f32 %v877_v55, %v834_v59 }
 0x592   : > { %v2592_v61 = vmul.f32 -1.442695, %v882_v60 }
 0x594   : > { %2978 = vpow2.f32 %v2592_v61 }
 0x59e   : > { %v2979_v62 = vpop.eup %2978 }
 0x59f   : > { %v886_v63 = vadd.f32 1.0, %v2979_v62 }
 0x5a1   : > { %2980 = vrcp.f32 %v886_v63 }
 0x5ab   : > { %v2981_v1 = vpop.eup %2980 }
 0x602   : > { %v891_v2 = vpop.permute.xlu0 %890 }
 0x603   : > { %v893_v3 = vmul.f32 %v2981_v1, %v891_v2 }
 0x605   : > { %895 = vrot.lane.b32.xlu1 %v893_v3, %s3434_s24 }
 0x677   : > { %v896_v4 = vpop.permute.xlu1 %895 }
 0x678   : > { %v898_v5 = vadd.f32 %v896_v4, %v834_v59 }
 0x67a   : > { %2982 = vtanh.f32 %v898_v5 }
 0x684   : > { %v2983_v7 = vpop.eup %2982 }
 0x685   : > { %v900_v8 = vsub.f32 %v3947_v51, %v2983_v7 }
 0x687   : > { %902 = vrot.lane.b32.xlu0 %v900_v8, %s3436_s8 }
 0x6f9   : > { %v903_v9 = vpop.permute.xlu0 %902 }
 0x6fa   : > { %v905_v10 = vmul.f32 %v2981_v1, %v903_v9 }
 0x6fc   : > { %907 = vrot.lane.b32.xlu1 %v905_v10, %s3435_s18 }
 0x76e   : > { %v908_v11 = vpop.permute.xlu1 %907 }
 0x76f   : > { %v3965_v12 = vadd.f32 %v2983_v7, %v908_v11  ;;  %v1086_v7 = vld [vmem:[#allocation2 + $0x20] sm:$0xff] }
 0x771   : > { %v919_v14 = vpack.c.bf16 %v3965_v12, %v3965_v12 }
 0x773   : > { %921 = vrot.lane.b32.xlu0 %v919_v14, %s3434_s24 }
 0x7e5   : > { %v922_v15 = vpop.permute.xlu0 %921 }
 0x7e6   : > { %2742 = vmatmul.mubr.msk.bf16.vlgmr.msra.gmra.mrb[4].mxu1 %vm751_vm3, %v922_v15 }
 0x7e7   : > { %2754 = vmatpush3.bf16.msra.mxu1 %v3891_v6  ;;  %2757 = vmatprep.mubr.msk.bf16.mxu1 %vm3433_vm0, %v3432_v0 }
 0x7e8   : > { %2755 = vmatprep.subr.bf16.mxu1 %v3432_v0 }
 0x7eb   : > { %2756 = vmatpush3.bf16.msra.mxu1 %v3901_v13 }
 0x7ec   : > { %2769 = vmatprep.subr.bf16.mxu1 %v3432_v0 }
 0x8b9   : > { %v960_v16 = vpop.f32.mrb[4].mxu1 }
 0x8ba   : > { %v961_v17 = vadd.f32 %v3922_v18, %v960_v16  ;;  %v2743_v19 = vpop.f32.mrb[5].mxu1 }
 0x8bb   : > { %v963_v20 = vpop.f32.mrb[6].mxu1 }
 0x8bc   : > { %974 = vrot.lane.b32.xlu1 %v961_v17, %s3434_s24  ;;  %v2744_v21 = vpop.f32.mrb[7].mxu1  ;;  %v966_v23 = vadd.f32 %v961_v17, %v918_v22 }
 0x8be   : > { %v2594_v24 = vmul.f32 -1.442695, %v966_v23 }
 0x8c0   : > { %2984 = vpow2.f32 %v2594_v24 }
 0x8ca   : > { %v2985_v25 = vpop.eup %2984 }
 0x8cb   : > { %v970_v26 = vadd.f32 1.0, %v2985_v25 }
 0x8cd   : > { %2986 = vrcp.f32 %v970_v26 }
 0x8d7   : > { %v2987_v27 = vpop.eup %2986 }
 0x92e   : > { %v975_v28 = vpop.permute.xlu1 %974 }
 0x92f   : > { %v977_v29 = vmul.f32 %v2987_v27, %v975_v28 }
 0x931   : > { %979 = vrot.lane.b32.xlu0 %v977_v29, %s3434_s24 }
 0x9a3   : > { %v980_v30 = vpop.permute.xlu0 %979 }
 0x9a4   : > { %v982_v31 = vadd.f32 %v980_v30, %v918_v22 }
 0x9a6   : > { %2988 = vtanh.f32 %v982_v31 }
 0x9b0   : > { %v2989_v32 = vpop.eup %2988 }
 0x9b1   : > { %v984_v33 = vsub.f32 %v3965_v12, %v2989_v32 }
 0x9b3   : > { %986 = vrot.lane.b32.xlu1 %v984_v33, %s3436_s8  ;;  %v1170_v33 = vld [vmem:[#allocation2 + $0x28] sm:$0xff] }
 0xa25   : > { %v987_v34 = vpop.permute.xlu1 %986 }
 0xa26   : > { %v989_v35 = vmul.f32 %v2987_v27, %v987_v34 }
 0xa28   : > { %991 = vrot.lane.b32.xlu0 %v989_v35, %s3435_s18 }
 0xa9a   : > { %v992_v36 = vpop.permute.xlu0 %991 }
 0xa9b   : > { %v3983_v37 = vadd.f32 %v2989_v32, %v992_v36 }
 0xa9d   : > { %v1003_v38 = vpack.c.bf16 %v3983_v37, %v3983_v37 }
 0xa9f   : > { %1005 = vrot.lane.b32.xlu1 %v1003_v38, %s3434_s24 }
 0xb11   : > { %v1006_v39 = vpop.permute.xlu1 %1005 }
 0xb12   : > { %2750 = vmatmul.mubr.msk.bf16.vlgmr.msra.gmra.mrb[8].mxu0 %vm751_vm3, %v1006_v39 }
 0xb13   : > { %2762 = vmatpush3.bf16.msra.mxu0 %v3891_v6  ;;  %2765 = vmatprep.mubr.msk.bf16.mxu0 %vm3433_vm0, %v3432_v0 }
 0xb14   : > { %2763 = vmatprep.subr.bf16.mxu0 %v3432_v0 }
 0xb17   : > { %2764 = vmatpush3.bf16.msra.mxu0 %v3901_v13 }
 0xb18   : > { %2777 = vmatprep.subr.bf16.mxu0 %v3432_v0 }
 0xbe5   : > { %v1044_v40 = vpop.f32.mrb[8].mxu0 }
 0xbe6   : > { %v1045_v41 = vadd.f32 %v3922_v18, %v1044_v40  ;;  %v2751_v42 = vpop.f32.mrb[9].mxu0 }
 0xbe7   : > { %v1047_v43 = vpop.f32.mrb[10].mxu0 }
 0xbe8   : > { %1058 = vrot.lane.b32.xlu0 %v1045_v41, %s3434_s24  ;;  %v2752_v44 = vpop.f32.mrb[11].mxu0  ;;  %v1050_v46 = vadd.f32 %v1045_v41, %v1002_v45 }
 0xbea   : > { %v2596_v47 = vmul.f32 -1.442695, %v1050_v46 }
 0xbec   : > { %2990 = vpow2.f32 %v2596_v47 }
 0xbf6   : > { %v2991_v48 = vpop.eup %2990 }
 0xbf7   : > { %v1054_v49 = vadd.f32 1.0, %v2991_v48 }
 0xbf9   : > { %2992 = vrcp.f32 %v1054_v49 }
 0xc03   : > { %v2993_v50 = vpop.eup %2992 }
 0xc5a   : > { %v1059_v52 = vpop.permute.xlu0 %1058 }
 0xc5b   : > { %v1061_v53 = vmul.f32 %v2993_v50, %v1059_v52 }
 0xc5d   : > { %1063 = vrot.lane.b32.xlu1 %v1061_v53, %s3434_s24 }
 0xccf   : > { %v1064_v54 = vpop.permute.xlu1 %1063 }
 0xcd0   : > { %v1066_v55 = vadd.f32 %v1064_v54, %v1002_v45 }
 0xcd2   : > { %2994 = vtanh.f32 %v1066_v55 }
 0xcdc   : > { %v2995_v56 = vpop.eup %2994 }
 0xcdd   : > { %v1068_v57 = vsub.f32 %v3983_v37, %v2995_v56 }
 0xcdf   : > { %1070 = vrot.lane.b32.xlu0 %v1068_v57, %s3436_s8 }
 0xd51   : > { %v1071_v58 = vpop.permute.xlu0 %1070 }
 0xd52   : > { %v1073_v59 = vmul.f32 %v2993_v50, %v1071_v58 }
 0xd54   : > { %1075 = vrot.lane.b32.xlu1 %v1073_v59, %s3435_s18 }
 0xdc6   : > { %v1076_v60 = vpop.permute.xlu1 %1075 }
 0xdc7   : > { %v4001_v61 = vadd.f32 %v2995_v56, %v1076_v60  ;;  %v1254_v56 = vld [vmem:[#allocation2 + $0x30] sm:$0xff] }
 0xdc9   : > { %v1087_v62 = vpack.c.bf16 %v4001_v61, %v4001_v61 }
 0xdcb   : > { %1089 = vrot.lane.b32.xlu0 %v1087_v62, %s3434_s24 }
 0xe3d   : > { %v1090_v63 = vpop.permute.xlu0 %1089 }
 0xe3e   : > { %2758 = vmatmul.mubr.msk.bf16.vlgmr.msra.gmra.mrb[8].mxu1 %vm751_vm3, %v1090_v63 }
 0xe3f   : > { %2770 = vmatpush3.bf16.msra.mxu1 %v3891_v6  ;;  %2773 = vmatprep.mubr.msk.bf16.mxu1 %vm3433_vm0, %v3432_v0 }
 0xe40   : > { %2771 = vmatprep.subr.bf16.mxu1 %v3432_v0 }
 0xe43   : > { %2772 = vmatpush3.bf16.msra.mxu1 %v3901_v13 }
 0xf11   : > { %v1128_v1 = vpop.f32.mrb[8].mxu1 }
 0xf12   : > { %v1129_v2 = vadd.f32 %v3922_v18, %v1128_v1  ;;  %v2759_v3 = vpop.f32.mrb[9].mxu1 }
 0xf13   : > { %v1131_v4 = vpop.f32.mrb[10].mxu1 }
 0xf14   : > { %1142 = vrot.lane.b32.xlu1 %v1129_v2, %s3434_s24  ;;  %v2760_v5 = vpop.f32.mrb[11].mxu1  ;;  %v1134_v8 = vadd.f32 %v1129_v2, %v1086_v7 }
 0xf16   : > { %v2598_v9 = vmul.f32 -1.442695, %v1134_v8 }
 0xf18   : > { %2996 = vpow2.f32 %v2598_v9 }
 0xf22   : > { %v2997_v10 = vpop.eup %2996 }
 0xf23   : > { %v1138_v11 = vadd.f32 1.0, %v2997_v10  ;;  %v2970_v10 = vld [vmem:[%s502_s17] sm:$0xff]  }
 0xf24   : > { %2785 = vmatprep.subr.bf16.mxu1 %v2970_v10 }
 0xf25   : > { %2998 = vrcp.f32 %v1138_v11  ;;  %v2971_v11 = vld [vmem:[%s502_s17 + $0x8] sm:$0xff]   ;;  %s3437_s17 = smov [#allocation19]  }
 0xf26   : > { %s3310_s25 = sshll.u32 %s3437_s17, 4  ;;  %s3311_s25 = int_to_ptr.vmem [resolvable:$false] %s3310_s25 }
 0xf27   : > { %p3313_p6 = scmp.lt.s32.totalorder %s4323_s15, %s3311_s25 }
 0xf2f   : > { %v2999_v14 = vpop.eup %2998 }
 0xf86   : > { %v1143_v15 = vpop.permute.xlu1 %1142 }
 0xf87   : > { %v1145_v16 = vmul.f32 %v2999_v14, %v1143_v15 }
 0xf89   : > { %1147 = vrot.lane.b32.xlu0 %v1145_v16, %s3434_s24 }
 0xffb   : > { %v1148_v17 = vpop.permute.xlu0 %1147 }
 0xffc   : > { %v1150_v19 = vadd.f32 %v1148_v17, %v1086_v7 }
 0xffe   : > { %3000 = vtanh.f32 %v1150_v19  ;;  %v4071_v19 = vld [vmem:[%s511_s20] sm:$0xff]  }
0x1008   : > { %v3001_v20 = vpop.eup %3000 }
0x1009   : > { %v1152_v21 = vsub.f32 %v4001_v61, %v3001_v20 }
0x100b   : > { %1154 = vrot.lane.b32.xlu1 %v1152_v21, %s3436_s8 }
0x107d   : > { %v1155_v22 = vpop.permute.xlu1 %1154 }
0x107e   : > { %v1157_v23 = vmul.f32 %v2999_v14, %v1155_v22 }
0x1080   : > { %1159 = vrot.lane.b32.xlu0 %v1157_v23, %s3435_s18  ;;  %v4081_v23 = vld [vmem:[%s511_s20 + $0x8] sm:$0xff]   ;;  %s3312_s20 = scalar_lea.vmem %s3311_s25, 512 }
0x1081   : > { %p3314_p3 = scmp.lt.s32.totalorder %s3312_s20, %s3306_s22 }
0x1083   : > { %p3315_p1 = por %p3314_p3, %p3313_p6 }
0x1085   : > { %p3316_p5 = pnand %p3315_p1, %p3309_p10 }
0x10f2   : > { %v1160_v24 = vpop.permute.xlu0 %1159 }
0x10f3   : > { %v4018_v25 = vadd.f32 %v3001_v20, %v1160_v24  ;;  %v2614_v20 = vld [vmem:[%s3854_s21 + $0x4] sm:$0xf] }
0x10f5   : > { %v1171_v26 = vpack.c.bf16 %v4018_v25, %v4018_v25 }
0x10f7   : > { %1173 = vrot.lane.b32.xlu1 %v1171_v26, %s3434_s24 }
0x1169   : > { %v1174_v27 = vpop.permute.xlu1 %1173 }
0x116a   : > { %2766 = vmatmul.mubr.msk.bf16.vlgmr.msra.gmra.mrb[12].mxu0 %vm751_vm3, %v1174_v27 }
0x116b   : > { %2778 = vmatpush3.bf16.msra.mxu0 %v3891_v6  ;;  %2781 = vmatprep.mubr.msk.bf16.mxu0 %vm3433_vm0, %v3432_v0 }
0x116c   : > { %2779 = vmatprep.subr.bf16.mxu0 %v3432_v0 }
0x116f   : > { %2780 = vmatpush3.bf16.msra.mxu0 %v3901_v13 }
0x1170   : > { %2797 = vmatprep.subr.bf16.mxu0 %v3432_v0 }
0x123d   : > { %v1212_v28 = vpop.f32.mrb[12].mxu0 }
0x123e   : > { %v1213_v29 = vadd.f32 %v3922_v18, %v1212_v28  ;;  %v2767_v30 = vpop.f32.mrb[13].mxu0 }
0x123f   : > { %v1215_v31 = vpop.f32.mrb[14].mxu0 }
0x1240   : > { %1226 = vrot.lane.b32.xlu0 %v1213_v29, %s3434_s24  ;;  %v2768_v32 = vpop.f32.mrb[15].mxu0  ;;  %v1218_v34 = vadd.f32 %v1213_v29, %v1170_v33 }
0x1242   : > { %v2600_v6 = vmul.f32 -1.442695, %v1218_v34 }
0x1244   : > { %3002 = vpow2.f32 %v2600_v6 }
0x124e   : > { %v3003_v35 = vpop.eup %3002 }
0x124f   : > { %v1222_v36 = vadd.f32 1.0, %v3003_v35  ;;  %v4106_v35 = vld [vmem:[%s3876_s3 + $0x1] ss:$0 sm:$0xff] }
0x1251   : > { %3004 = vrcp.f32 %v1222_v36 }
0x125b   : > { %v3005_v38 = vpop.eup %3004 }
0x12b2   : > { %v1227_v39 = vpop.permute.xlu0 %1226 }
0x12b3   : > { %v1229_v13 = vmul.f32 %v3005_v38, %v1227_v39 }
0x12b5   : > { %1231 = vrot.lane.b32.xlu1 %v1229_v13, %s3434_s24 }
0x1327   : > { %v1232_v40 = vpop.permute.xlu1 %1231 }
0x1328   : > { %v1234_v41 = vadd.f32 %v1232_v40, %v1170_v33 }
0x132a   : > { %3006 = vtanh.f32 %v1234_v41  ;;  %v4111_v41 = vld [vmem:[%s3873_s11 + $0x1] ss:$0 sm:$0xff] }
0x1334   : > { %v3007_v42 = vpop.eup %3006 }
0x1335   : > { %v1236_v43 = vsub.f32 %v4018_v25, %v3007_v42 }
0x1337   : > { %1238 = vrot.lane.b32.xlu0 %v1236_v43, %s3436_s8 }
0x13a9   : > { %v1239_v44 = vpop.permute.xlu0 %1238 }
0x13aa   : > { %v1241_v45 = vmul.f32 %v3005_v38, %v1239_v44 }
0x13ac   : > { %1243 = vrot.lane.b32.xlu1 %v1241_v45, %s3435_s18 }
0x141e   : > { %v1244_v46 = vpop.permute.xlu1 %1243 }
0x141f   : > { %v4036_v47 = vadd.f32 %v3007_v42, %v1244_v46 }
0x1421   : > { %v1255_v48 = vpack.c.bf16 %v4036_v47, %v4036_v47 }
0x1423   : > { %1257 = vrot.lane.b32.xlu0 %v1255_v48, %s3434_s24 }
0x1495   : > { %v1258_v49 = vpop.permute.xlu0 %1257 }
0x1496   : > { %2774 = vmatmul.mubr.msk.bf16.vlgmr.msra.gmra.mrb[12].mxu1 %vm751_vm3, %v1258_v49 }
0x1497   : > { %2786 = vmatpush3.bf16.msra.mxu1 %v2970_v10 }
0x1498   : > { %2787 = vmatprep.subr.bf16.mxu1 %v2971_v11 }
0x149b   : > { %2788 = vmatpush3.bf16.msra.mxu1 %v2971_v11 }
0x149c   : > { %2813 = vmatprep.subr.bf16.mxu1 %v3432_v0 }
0x1569   : > { %v1296_v50 = vpop.f32.mrb[12].mxu1 }
0x156a   : > { %v1297_v52 = vadd.f32 %v3922_v18, %v1296_v50  ;;  %v2775_v53 = vpop.f32.mrb[13].mxu1 }
0x156b   : > { %v1299_v54 = vpop.f32.mrb[14].mxu1 }
0x156c   : > { %1310 = vrot.lane.b32.xlu1 %v1297_v52, %s3434_s24  ;;  %v2776_v55 = vpop.f32.mrb[15].mxu1  ;;  %v1302_v57 = vadd.f32 %v1297_v52, %v1254_v56 }
0x156e   : > { %v2602_v58 = vmul.f32 -1.442695, %v1302_v57 }
0x1570   : > { %3008 = vpow2.f32 %v2602_v58 }
0x157a   : > { %v3009_v59 = vpop.eup %3008 }
0x157b   : > { %v1306_v60 = vadd.f32 1.0, %v3009_v59 }
0x157d   : > { %3010 = vrcp.f32 %v1306_v60 }
0x1587   : > { %v3011_v62 = vpop.eup %3010 }
0x15de   : > { %v1311_v63 = vpop.permute.xlu1 %1310 }
0x15df   : > { %v1313_v1 = vmul.f32 %v3011_v62, %v1311_v63 }
0x15e1   : > { %1315 = vrot.lane.b32.xlu0 %v1313_v1, %s3434_s24 }
0x1653   : > { %v1316_v2 = vpop.permute.xlu0 %1315 }
0x1654   : > { %v1318_v3 = vadd.f32 %v1316_v2, %v1254_v56 }
0x1656   : > { %3012 = vtanh.f32 %v1318_v3 }
0x1660   : > { %v3013_v4 = vpop.eup %3012 }
0x1661   : > { %v1320_v5 = vsub.f32 %v4036_v47, %v3013_v4 }
0x1663   : > { %1322 = vrot.lane.b32.xlu1 %v1320_v5, %s3436_s8 }
0x16d5   : > { %v1323_v7 = vpop.permute.xlu1 %1322 }
0x16d6   : > { %v1325_v8 = vmul.f32 %v3011_v62, %v1323_v7  ;;  %v1338_v7 = vld [vmem:[#allocation2 + $0x38] sm:$0xff] }
0x16d8   : > { %1327 = vrot.lane.b32.xlu0 %v1325_v8, %s3435_s18 }
0x16dc   : > { %829 = vrot.lane.b32.xlu0 %v3947_v51, %s3434_s24 }
0x16e0   : > { %996 = vrot.lane.b32.xlu0 %v3983_v37, %s3434_s24  ;;  %v2615_v37 = vld [vmem:[%s3854_s21 + $0xc] sm:$0xf] }
0x16e1   : > { %v1559_v17 = vrot.slane %v2615_v37, 4 }
0x16e3   : > { %v4076_v22 = vsel %vm639_vm1, %v2614_v20, %v1559_v17 }
0x174a   : > { %v1328_v9 = vpop.permute.xlu0 %1327 }
0x174b   : > { %v4056_v14 = vadd.f32 %v3013_v4, %v1328_v9 }
0x174d   : > { %v1339_v15 = vpack.c.bf16 %v4056_v14, %v4056_v14 }
0x174e   : > { %v830_v16 = vpop.permute.xlu0 %829 }
0x174f   : > { %832 = vst.msk [vmem:[#allocation3] sm:$0xff] %vm751_vm3, %v830_v16  ;;  %1341 = vrot.lane.b32.xlu1 %v1339_v15, %s3434_s24 }
0x1752   : > { %v997_v51 = vpop.permute.xlu0 %996 }
0x1753   : > { %1000 = vst.msk [vmem:[#allocation3 + $0x10] sm:$0xff] %vm751_vm3, %v997_v51  ;;  %912 = vrot.lane.b32.xlu1 %v3965_v12, %s3434_s24 }
0x1756   : > { %v1426_v26 = vld [vmem:[#allocation3] sm:$0xff] }
0x1757   : > { %1080 = vrot.lane.b32.xlu1 %v4001_v61, %s3434_s24  ;;  %v1563_v61 = vpack.c.bf16 %v4076_v22, %v4076_v22 }
0x175a   : > { %v1428_v29 = vld [vmem:[#allocation3 + $0x10] sm:$0xff] }
0x17c1   : > { %v1342_v21 = vpop.permute.xlu1 %1341 }
0x17c2   : > { %2782 = vmatmul.mubr.msk.bf16.vlgmr.msra.gmra.mrb[16].mxu0 %vm751_vm3, %v1342_v21 }
0x17c3   : > { %2798 = vmatpush3.bf16.msra.mxu0 %v4071_v19  ;;  %2801 = vmatprep.mubr.msk.bf16.mxu0 %vm3433_vm0, %v3432_v0 }
0x17c4   : > { %2799 = vmatprep.subr.bf16.mxu0 %v3432_v0 }
0x17c5   : > { %v913_v12 = vpop.permute.xlu1 %912 }
0x17c6   : > { %916 = vst.msk [vmem:[#allocation3 + $0x8] sm:$0xff] %vm751_vm3, %v913_v12 }
0x17c7   : > { %2800 = vmatpush3.bf16.msra.mxu0 %v4081_v23 }
0x17c8   : > { %2805 = vmatprep.subr.bf16.mxu0 %v3432_v0 }
0x17c9   : > { %v1081_v24 = vpop.permute.xlu1 %1080 }
0x17ca   : > { %1084 = vst.msk [vmem:[#allocation3 + $0x18] sm:$0xff] %vm751_vm3, %v1081_v24  ;;  %2802 = vmatmul.mubr.msk.bf16.vlgmr.msra.gmra.mrb[20].mxu0 %vm751_vm3, %v1563_v61 }
0x17cb   : > { %2806 = vmatpush3.bf16.msra.mxu0 %v4071_v19  ;;  %2809 = vmatprep.mubr.msk.bf16.mxu0 %vm3433_vm0, %v3432_v0 }
0x17cc   : > { %2807 = vmatprep.subr.bf16.mxu0 %v3432_v0 }
0x17cd   : > { %v1427_v27 = vld [vmem:[#allocation3 + $0x8] sm:$0xff] }
0x17ce   : > { %v1434_v28 = vpack.c.bf16 %v1427_v27, %v1426_v26 }
0x17cf   : > { %2808 = vmatpush3.bf16.msra.mxu0 %v4081_v23 }
0x17d0   : > { %2789 = vmatprep.mubr.msk.bf16.mxu1 %vm751_vm3, %v1434_v28  ;;  %2821 = vmatprep.subr.bf16.mxu0 %v3432_v0 }
0x17d1   : > { %v1429_v30 = vld [vmem:[#allocation3 + $0x18] sm:$0xff] }
0x17d2   : > { %v1435_v31 = vpack.c.bf16 %v1429_v30, %v1428_v29 }
0x17d4   : > { %2790 = vmatmul.mubr.msk.bf16.vlgmr.msra.gmra.mrb[16].mxu1 %vm751_vm3, %v1435_v31 }
0x17d5   : > { %2814 = vmatpush3.bf16.msra.mxu1 %v4071_v19 }
0x17d6   : > { %2815 = vmatprep.subr.bf16.mxu1 %v3432_v0 }
0x17d9   : > { %2816 = vmatpush3.bf16.msra.mxu1 %v4081_v23 }
0x17da   : > { %2829 = vmatprep.subr.bf16.mxu1 %v3432_v0 }
0x1895   : > { %v1380_v32 = vpop.f32.mrb[16].mxu0 }
0x1896   : > { %v2783_v33 = vpop.f32.mrb[17].mxu0  ;;  %v1381_v5 = vadd.f32 %v3922_v18, %v1380_v32 }
0x1897   : > { %v1383_v34 = vpop.f32.mrb[18].mxu0 }
0x1898   : > { %v2784_v6 = vpop.f32.mrb[19].mxu0  ;;  %v1386_v8 = vadd.f32 %v1381_v5, %v1338_v7 }
0x189a   : > { %v2604_v9 = vmul.f32 -1.442695, %v1386_v8 }
0x189d   : > { %v1613_v36 = vpop.f32.mrb[20].mxu0 }
0x189e   : > { %v1614_v38 = vadd.f32 %v4106_v35, %v1613_v36  ;;  %v2803_v39 = vpop.f32.mrb[21].mxu0 }
0x189f   : > { %v1616_v13 = vpop.f32.mrb[22].mxu0 }
0x18a0   : > { %1627 = vrot.lane.b32.xlu0 %v1614_v38, %s3434_s24  ;;  %v2804_v40 = vpop.f32.mrb[23].mxu0 }
0x18a7   : > { %v2791_v42 = vpop.f32.mrb[16].mxu1 }
0x18a8   : > { %v1514_v43 = vadd.f32 %v2791_v42, %v4111_v41  ;;  %v1505_v44 = vpop.f32.mrb[17].mxu1 }
0x18a9   : > { %v1506_v45 = vadd.f32 %v4111_v41, %v1505_v44  ;;  %v2792_v46 = vpop.f32.mrb[18].mxu1 }
0x18aa   : > { %1539 = vst.msk [vmem:[#allocation2 + $0x10] sm:$0xff] %vm1536_vm5, %v1514_v43  ;;  %v1517_v48 = vadd.f32 %v2792_v46, %v4111_v41  ;;  %v1508_v49 = vpop.f32.mrb[19].mxu1 }
0x18ab   : > { %1537 = vst.msk [vmem:[#allocation2] sm:$0xff] %vm1536_vm5, %v1506_v45  ;;  %v1509_v50 = vadd.f32 %v4111_v41, %v1508_v49 }
0x18ac   : > { %1540 = vst.msk [vmem:[#allocation2 + $0x18] sm:$0xff] %vm1536_vm5, %v1517_v48 }
0x18ad   : > { %1538 = vst.msk [vmem:[#allocation2 + $0x8] sm:$0xff] %vm1536_vm5, %v1509_v50 }
0x18b2   : > { %v1562_v52 = vld [vmem:[#allocation2] sm:$0xff] }
0x18b3   : > { %v1619_v53 = vadd.f32 %v1614_v38, %v1562_v52 }
0x18b4   : > { %v1657_v6 = vld [vmem:[#allocation2 + $0x8] sm:$0xff] }
0x18b5   : > { %v2619_v54 = vmul.f32 -1.442695, %v1619_v53 }
0x18b7   : > { %3014 = vpow2.f32 %v2619_v54 }
0x18c1   : > { %v3015_v55 = vpop.eup %3014 }
0x18c2   : > { %v1623_v56 = vadd.f32 1.0, %v3015_v55 }
0x18c4   : > { %3016 = vrcp.f32 %v1623_v56 }
0x18ce   : > { %v3017_v57 = vpop.eup %3016 }
0x1912   : > { %v1628_v58 = vpop.permute.xlu0 %1627 }
0x1913   : > { %v1630_v59 = vmul.f32 %v3017_v57, %v1628_v58 }
0x1915   : > { %1632 = vrot.lane.b32.xlu1 %v1630_v59, %s3434_s24 }
0x1987   : > { %v1633_v60 = vpop.permute.xlu1 %1632 }
0x1988   : > { %v1635_v62 = vadd.f32 %v1633_v60, %v1562_v52 }
0x198a   : > { %3018 = vtanh.f32 %v1635_v62 }
0x198b   : > { %3020 = vpow2.f32 %v2604_v9 }
0x1994   : > { %v3019_v63 = vpop.eup %3018 }
0x1995   : > { %1638 = vrot.lane.b32.xlu0 %v3019_v63, %s3434_s24  ;;  %v3021_v10 = vpop.eup %3020 }
0x1996   : > { %v1390_v11 = vadd.f32 1.0, %v3021_v10 }
0x1998   : > { %3022 = vrcp.f32 %v1390_v11 }
0x19a2   : > { %v3023_v37 = vpop.eup %3022 }
0x1a07   : > { %v1639_v1 = vpop.permute.xlu0 %1638 }
0x1a08   : > { %v1641_v2 = vsub.f32 %v4076_v22, %v1639_v1 }
0x1a0a   : > { %1643 = vrot.lane.b32.xlu1 %v1641_v2, %s3435_s18 }
0x1a7c   : > { %v1644_v3 = vpop.permute.xlu1 %1643 }
0x1a7d   : > { %v1646_v4 = vmul.f32 %v3017_v57, %v1644_v3 }
0x1a7f   : > { %1648 = vrot.lane.b32.xlu0 %v1646_v4, %s3435_s18 }
0x1a83   : > { %1394 = vrot.lane.b32.xlu0 %v1381_v5, %s3434_s24 }
0x1af1   : > { %v1649_v15 = vpop.permute.xlu0 %1648 }
0x1af2   : > { %v4128_v16 = vadd.f32 %v3019_v63, %v1649_v15 }
0x1af4   : > { %v1658_v51 = vpack.c.bf16 %v4128_v16, %v4128_v16 }
0x1af5   : > { %v1395_v17 = vpop.permute.xlu0 %1394 }
0x1af6   : > { %v1397_v20 = vmul.f32 %v3023_v37, %v1395_v17  ;;  %1660 = vrot.lane.b32.xlu1 %v1658_v51, %s3434_s24 }
0x1af8   : > { %1399 = vrot.lane.b32.xlu0 %v1397_v20, %s3434_s24 }
0x1b68   : > { %v1661_v18 = vpop.permute.xlu1 %1660 }
0x1b69   : > { %2810 = vmatmul.mubr.msk.bf16.vlgmr.msra.gmra.mrb[24].mxu0 %vm751_vm3, %v1661_v18 }
0x1b6a   : > { %v1400_v21 = vpop.permute.xlu0 %1399  ;;  %2822 = vmatpush3.bf16.msra.mxu0 %v4071_v19  ;;  %2825 = vmatprep.mubr.msk.bf16.mxu0 %vm3433_vm0, %v3432_v0 }
0x1b6b   : > { %v1402_v22 = vadd.f32 %v1400_v21, %v1338_v7  ;;  %2823 = vmatprep.subr.bf16.mxu0 %v3432_v0 }
0x1b6d   : > { %3024 = vtanh.f32 %v1402_v22 }
0x1b6e   : > { %2824 = vmatpush3.bf16.msra.mxu0 %v4081_v23 }
0x1b6f   : > { %2837 = vmatprep.subr.bf16.mxu0 %v3432_v0 }
0x1b77   : > { %v3025_v12 = vpop.eup %3024 }
0x1b78   : > { %v1404_v61 = vsub.f32 %v4056_v14, %v3025_v12 }
0x1b7a   : > { %1406 = vrot.lane.b32.xlu0 %v1404_v61, %s3436_s8 }
0x1bec   : > { %v1407_v24 = vpop.permute.xlu0 %1406 }
0x1bed   : > { %v1409_v26 = vmul.f32 %v3023_v37, %v1407_v24  ;;  %v1739_v37 = vld [vmem:[#allocation2 + $0x10] sm:$0xff] }
0x1bef   : > { %1411 = vrot.lane.b32.xlu0 %v1409_v26, %s3435_s18 }
0x1bf3   : > { %1164 = vrot.lane.b32.xlu0 %v4018_v25, %s3434_s24 }
0x1bf7   : > { %1332 = vrot.lane.b32.xlu0 %v4056_v14, %s3434_s24 }
0x1c3c   : > { %v1699_v27 = vpop.f32.mrb[24].mxu0 }
0x1c3d   : > { %v1700_v28 = vadd.f32 %v4106_v35, %v1699_v27  ;;  %v2811_v29 = vpop.f32.mrb[25].mxu0 }
0x1c3e   : > { %v1702_v30 = vpop.f32.mrb[26].mxu0 }
0x1c3f   : > { %1713 = vrot.lane.b32.xlu1 %v1700_v28, %s3434_s24  ;;  %v2812_v31 = vpop.f32.mrb[27].mxu0  ;;  %v1705_v25 = vadd.f32 %v1700_v28, %v1657_v6 }
0x1c41   : > { %v2621_v36 = vmul.f32 -1.442695, %v1705_v25 }
0x1c43   : > { %3026 = vpow2.f32 %v2621_v36 }
0x1c4d   : > { %v3027_v14 = vpop.eup %3026 }
0x1c4e   : > { %v1709_v38 = vadd.f32 1.0, %v3027_v14 }
0x1c50   : > { %3028 = vrcp.f32 %v1709_v38  ;;  %v1821_v38 = vld [vmem:[#allocation2 + $0x18] sm:$0xff] }
0x1c5a   : > { %v3029_v39 = vpop.eup %3028 }
0x1c61   : > { %v1412_v32 = vpop.permute.xlu0 %1411 }
0x1c62   : > { %v1414_v49 = vadd.f32 %v3025_v12, %v1412_v32 }
0x1c65   : > { %v1165_v33 = vpop.permute.xlu0 %1164 }
0x1c66   : > { %1168 = vst.msk [vmem:[#allocation3 + $0x20] sm:$0xff] %vm751_vm3, %v1165_v33 }
0x1c69   : > { %v1333_v34 = vpop.permute.xlu0 %1332 }
0x1c6a   : > { %1336 = vst.msk [vmem:[#allocation3 + $0x30] sm:$0xff] %vm751_vm3, %v1333_v34 }
0x1c71   : > { %v1432_v58 = vld [vmem:[#allocation3 + $0x30] sm:$0xff] }
0x1cb1   : > { %v1714_v13 = vpop.permute.xlu1 %1713 }
0x1cb2   : > { %v1716_v40 = vmul.f32 %v3029_v39, %v1714_v13 }
0x1cb4   : > { %1718 = vrot.lane.b32.xlu1 %v1716_v40, %s3434_s24 }
0x1d26   : > { %v1719_v42 = vpop.permute.xlu1 %1718 }
0x1d27   : > { %v1721_v43 = vadd.f32 %v1719_v42, %v1657_v6 }
0x1d29   : > { %3030 = vtanh.f32 %v1721_v43 }
0x1d33   : > { %v3031_v44 = vpop.eup %3030 }
0x1d34   : > { %v1723_v45 = vsub.f32 %v4128_v16, %v3031_v44 }
0x1d36   : > { %1725 = vrot.lane.b32.xlu1 %v1723_v45, %s3436_s8 }
0x1da8   : > { %v1726_v46 = vpop.permute.xlu1 %1725 }
0x1da9   : > { %v1728_v48 = vmul.f32 %v3029_v39, %v1726_v46 }
0x1dab   : > { %1730 = vrot.lane.b32.xlu1 %v1728_v48, %s3435_s18 }
0x1daf   : > { %1248 = vrot.lane.b32.xlu1 %v4036_v47, %s3434_s24  ;;  %v1430_v47 = vld [vmem:[#allocation3 + $0x20] sm:$0xff] }
0x1db3   : > { %1416 = vrot.lane.b32.xlu1 %v1414_v49, %s3434_s24 }
0x1e1d   : > { %v1731_v50 = vpop.permute.xlu1 %1730 }
0x1e1e   : > { %v4159_v52 = vadd.f32 %v3031_v44, %v1731_v50 }
0x1e20   : > { %v1740_v53 = vpack.c.bf16 %v4159_v52, %v4159_v52 }
0x1e21   : > { %v1249_v54 = vpop.permute.xlu1 %1248 }
0x1e22   : > { %1252 = vst.msk [vmem:[#allocation3 + $0x28] sm:$0xff] %vm751_vm3, %v1249_v54  ;;  %1742 = vrot.lane.b32.xlu0 %v1740_v53, %s3434_s24 }
0x1e25   : > { %v1417_v55 = vpop.permute.xlu1 %1416 }
0x1e26   : > { %1420 = vst.msk [vmem:[#allocation3 + $0x38] sm:$0xff] %vm751_vm3, %v1417_v55 }
0x1e27   : > { %1422 = vst.msk [vmem:[%s4167_s5] sm:$0xf] %vm1421_vm6, %v1417_v55 }
0x1e28   : > { %2605 = vst.msk [vmem:[%s4167_s5 + $0x4] sm:$0xf0] %vm1424_vm7, %v1417_v55 }
0x1e29   : > { %v1431_v56 = vld [vmem:[#allocation3 + $0x28] sm:$0xff] }
0x1e2a   : > { %v1436_v57 = vpack.c.bf16 %v1431_v56, %v1430_v47 }
0x1e2c   : > { %2793 = vmatprep.mubr.msk.bf16.mxu1 %vm751_vm3, %v1436_v57 }
0x1e2d   : > { %v1433_v59 = vld [vmem:[#allocation3 + $0x38] sm:$0xff] }
0x1e2e   : > { %v1437_v60 = vpack.c.bf16 %v1433_v59, %v1432_v58 }
0x1e30   : > { %2794 = vmatmul.mubr.msk.bf16.gmra.mrb[20].mxu1 %vm751_vm3, %v1437_v60 }
0x1e31   : > { %2817 = vmatprep.mubr.msk.bf16.mxu1 %vm3433_vm0, %v3432_v0 }
0x1e94   : > { %v1743_v62 = vpop.permute.xlu0 %1742 }
0x1e95   : > { %2818 = vmatmul.mubr.msk.bf16.vlgmr.msra.gmra.mrb[24].mxu1 %vm751_vm3, %v1743_v62 }
0x1e96   : > { %2830 = vmatpush3.bf16.msra.mxu1 %v4071_v19  ;;  %2833 = vmatprep.mubr.msk.bf16.mxu1 %vm3433_vm0, %v3432_v0 }
0x1e97   : > { %2831 = vmatprep.subr.bf16.mxu1 %v3432_v0 }
0x1e9a   : > { %2832 = vmatpush3.bf16.msra.mxu1 %v4081_v23 }
0x1e9b   : > { %2845 = vmatprep.subr.bf16.mxu1 %v3432_v0 }
0x1f03   : > { %v2795_v63 = vpop.f32.mrb[20].mxu1 }
0x1f04   : > { %v1530_v1 = vadd.f32 %v2795_v63, %v4111_v41  ;;  %v1521_v2 = vpop.f32.mrb[21].mxu1 }
0x1f05   : > { %v1522_v3 = vadd.f32 %v4111_v41, %v1521_v2  ;;  %v2796_v4 = vpop.f32.mrb[22].mxu1 }
0x1f06   : > { %1543 = vst.msk [vmem:[#allocation2 + $0x30] sm:$0xff] %vm1536_vm5, %v1530_v1  ;;  %v1533_v5 = vadd.f32 %v2796_v4, %v4111_v41  ;;  %v1524_v7 = vpop.f32.mrb[23].mxu1 }
0x1f07   : > { %1541 = vst.msk [vmem:[#allocation2 + $0x20] sm:$0xff] %vm1536_vm5, %v1522_v3  ;;  %v1525_v8 = vadd.f32 %v4111_v41, %v1524_v7 }
0x1f08   : > { %1544 = vst.msk [vmem:[#allocation2 + $0x38] sm:$0xff] %vm1536_vm5, %v1533_v5 }
0x1f09   : > { %1542 = vst.msk [vmem:[#allocation2 + $0x28] sm:$0xff] %vm1536_vm5, %v1525_v8 }
0x1f0e   : > { %v1903_v1 = vld [vmem:[#allocation2 + $0x20] sm:$0xff] }
0x1f68   : > { %v1781_v9 = vpop.f32.mrb[24].mxu1 }
0x1f69   : > { %v1782_v10 = vadd.f32 %v4106_v35, %v1781_v9  ;;  %v2819_v11 = vpop.f32.mrb[25].mxu1 }
0x1f6a   : > { %v1784_v15 = vpop.f32.mrb[26].mxu1 }
0x1f6b   : > { %1795 = vrot.lane.b32.xlu1 %v1782_v10, %s3434_s24  ;;  %v2820_v51 = vpop.f32.mrb[27].mxu1  ;;  %v1787_v17 = vadd.f32 %v1782_v10, %v1739_v37 }
0x1f6d   : > { %v2623_v20 = vmul.f32 -1.442695, %v1787_v17 }
0x1f6f   : > { %3032 = vpow2.f32 %v2623_v20 }
0x1f79   : > { %v3033_v18 = vpop.eup %3032 }
0x1f7a   : > { %v1791_v21 = vadd.f32 1.0, %v3033_v18 }
0x1f7c   : > { %3034 = vrcp.f32 %v1791_v21 }
0x1f86   : > { %v3035_v41 = vpop.eup %3034 }
0x1fdd   : > { %v1796_v22 = vpop.permute.xlu1 %1795 }
0x1fde   : > { %v1798_v12 = vmul.f32 %v3035_v41, %v1796_v22 }
0x1fe0   : > { %1800 = vrot.lane.b32.xlu0 %v1798_v12, %s3434_s24 }
0x2052   : > { %v1801_v61 = vpop.permute.xlu0 %1800 }
0x2053   : > { %v1803_v24 = vadd.f32 %v1801_v61, %v1739_v37 }
0x2055   : > { %3036 = vtanh.f32 %v1803_v24 }
0x205f   : > { %v3037_v26 = vpop.eup %3036 }
0x2060   : > { %v1805_v27 = vsub.f32 %v4159_v52, %v3037_v26 }
0x2062   : > { %1807 = vrot.lane.b32.xlu1 %v1805_v27, %s3436_s8  ;;  %v1985_v27 = vld [vmem:[#allocation2 + $0x28] sm:$0xff] }
0x20d4   : > { %v1808_v28 = vpop.permute.xlu1 %1807 }
0x20d5   : > { %v1810_v29 = vmul.f32 %v3035_v41, %v1808_v28 }
0x20d7   : > { %1812 = vrot.lane.b32.xlu0 %v1810_v29, %s3435_s18 }
0x2149   : > { %v1813_v30 = vpop.permute.xlu0 %1812 }
0x214a   : > { %v4198_v31 = vadd.f32 %v3037_v26, %v1813_v30 }
0x214c   : > { %v1822_v32 = vpack.c.bf16 %v4198_v31, %v4198_v31 }
0x214e   : > { %1824 = vrot.lane.b32.xlu1 %v1822_v32, %s3434_s24 }
0x21c0   : > { %v1825_v33 = vpop.permute.xlu1 %1824 }
0x21c1   : > { %2826 = vmatmul.mubr.msk.bf16.vlgmr.msra.gmra.mrb[28].mxu0 %vm751_vm3, %v1825_v33 }
0x21c2   : > { %2838 = vmatpush3.bf16.msra.mxu0 %v4071_v19  ;;  %2841 = vmatprep.mubr.msk.bf16.mxu0 %vm3433_vm0, %v3432_v0 }
0x21c3   : > { %2839 = vmatprep.subr.bf16.mxu0 %v3432_v0 }
0x21c6   : > { %2840 = vmatpush3.bf16.msra.mxu0 %v4081_v23 }
0x21c7   : > { %2853 = vmatprep.subr.bf16.mxu0 %v3432_v0 }
0x2294   : > { %v1863_v34 = vpop.f32.mrb[28].mxu0 }
0x2295   : > { %v1864_v6 = vadd.f32 %v4106_v35, %v1863_v34  ;;  %v2827_v25 = vpop.f32.mrb[29].mxu0 }
0x2296   : > { %v1866_v36 = vpop.f32.mrb[30].mxu0 }
0x2297   : > { %1877 = vrot.lane.b32.xlu0 %v1864_v6, %s3434_s24  ;;  %v2828_v14 = vpop.f32.mrb[31].mxu0  ;;  %v1869_v39 = vadd.f32 %v1864_v6, %v1821_v38 }
0x2299   : > { %v2625_v13 = vmul.f32 -1.442695, %v1869_v39 }
0x229b   : > { %3038 = vpow2.f32 %v2625_v13 }
0x22a5   : > { %v3039_v40 = vpop.eup %3038 }
0x22a6   : > { %v1873_v42 = vadd.f32 1.0, %v3039_v40 }
0x22a8   : > { %3040 = vrcp.f32 %v1873_v42 }
0x22b2   : > { %v3041_v43 = vpop.eup %3040 }
0x2309   : > { %v1878_v44 = vpop.permute.xlu0 %1877 }
0x230a   : > { %v1880_v45 = vmul.f32 %v3041_v43, %v1878_v44 }
0x230c   : > { %1882 = vrot.lane.b32.xlu1 %v1880_v45, %s3434_s24 }
0x237e   : > { %v1883_v46 = vpop.permute.xlu1 %1882 }
0x237f   : > { %v1885_v48 = vadd.f32 %v1883_v46, %v1821_v38 }
0x2381   : > { %3042 = vtanh.f32 %v1885_v48  ;;  %v2067_v48 = vld [vmem:[#allocation2 + $0x30] sm:$0xff] }
0x238b   : > { %v3043_v49 = vpop.eup %3042 }
0x238c   : > { %v1887_v50 = vsub.f32 %v4198_v31, %v3043_v49 }
0x238e   : > { %1889 = vrot.lane.b32.xlu0 %v1887_v50, %s3436_s8 }
0x2400   : > { %v1890_v53 = vpop.permute.xlu0 %1889 }
0x2401   : > { %v1892_v54 = vmul.f32 %v3041_v43, %v1890_v53 }
0x2403   : > { %1894 = vrot.lane.b32.xlu1 %v1892_v54, %s3435_s18 }
0x2475   : > { %v1895_v55 = vpop.permute.xlu1 %1894 }
0x2476   : > { %v4216_v47 = vadd.f32 %v3043_v49, %v1895_v55 }
0x2478   : > { %v1904_v56 = vpack.c.bf16 %v4216_v47, %v4216_v47 }
0x247a   : > { %1906 = vrot.lane.b32.xlu0 %v1904_v56, %s3434_s24 }
0x24ec   : > { %v1907_v57 = vpop.permute.xlu0 %1906 }
0x24ed   : > { %2834 = vmatmul.mubr.msk.bf16.vlgmr.msra.gmra.mrb[28].mxu1 %vm751_vm3, %v1907_v57 }
0x24ee   : > { %2846 = vmatpush3.bf16.msra.mxu1 %v4071_v19  ;;  %2849 = vmatprep.mubr.msk.bf16.mxu1 %vm3433_vm0, %v3432_v0 }
0x24ef   : > { %2847 = vmatprep.subr.bf16.mxu1 %v3432_v0 }
0x24f2   : > { %2848 = vmatpush3.bf16.msra.mxu1 %v4081_v23 }
0x25c0   : > { %v1945_v58 = vpop.f32.mrb[28].mxu1 }
0x25c1   : > { %v1946_v59 = vadd.f32 %v4106_v35, %v1945_v58  ;;  %v2835_v60 = vpop.f32.mrb[29].mxu1 }
0x25c2   : > { %v1948_v62 = vpop.f32.mrb[30].mxu1 }
0x25c3   : > { %1959 = vrot.lane.b32.xlu1 %v1946_v59, %s3434_s24  ;;  %v2836_v63 = vpop.f32.mrb[31].mxu1  ;;  %v1951_v2 = vadd.f32 %v1946_v59, %v1903_v1 }
0x25c5   : > { %v2627_v3 = vmul.f32 -1.442695, %v1951_v2 }
0x25c7   : > { %3044 = vpow2.f32 %v2627_v3 }
0x25d1   : > { %v3045_v4 = vpop.eup %3044 }
0x25d2   : > { %v1955_v5 = vadd.f32 1.0, %v3045_v4 }
0x25d4   : > { %3046 = vrcp.f32 %v1955_v5 }
0x25de   : > { %v3047_v7 = vpop.eup %3046 }
0x2635   : > { %v1960_v8 = vpop.permute.xlu1 %1959 }
0x2636   : > { %v1962_v9 = vmul.f32 %v3047_v7, %v1960_v8 }
0x2638   : > { %1964 = vrot.lane.b32.xlu0 %v1962_v9, %s3434_s24 }
0x26aa   : > { %v1965_v10 = vpop.permute.xlu0 %1964 }
0x26ab   : > { %v1967_v11 = vadd.f32 %v1965_v10, %v1903_v1 }
0x26ad   : > { %3048 = vtanh.f32 %v1967_v11 }
0x26b7   : > { %v3049_v15 = vpop.eup %3048 }
0x26b8   : > { %v1969_v51 = vsub.f32 %v4216_v47, %v3049_v15 }
0x26ba   : > { %1971 = vrot.lane.b32.xlu1 %v1969_v51, %s3436_s8 }
0x272c   : > { %v1972_v37 = vpop.permute.xlu1 %1971 }
0x272d   : > { %v1974_v17 = vmul.f32 %v3047_v7, %v1972_v37 }
0x272f   : > { %1976 = vrot.lane.b32.xlu0 %v1974_v17, %s3435_s18 }
0x27a1   : > { %v1977_v20 = vpop.permute.xlu0 %1976 }
0x27a2   : > { %v4233_v18 = vadd.f32 %v3049_v15, %v1977_v20  ;;  %v2149_v15 = vld [vmem:[#allocation2 + $0x38] sm:$0xff] }
0x27a4   : > { %v1986_v21 = vpack.c.bf16 %v4233_v18, %v4233_v18 }
0x27a6   : > { %1988 = vrot.lane.b32.xlu1 %v1986_v21, %s3434_s24 }
0x2818   : > { %v1989_v41 = vpop.permute.xlu1 %1988 }
0x2819   : > { %2842 = vmatmul.mubr.msk.bf16.vlgmr.msra.gmra.mrb[32].mxu0 %vm751_vm3, %v1989_v41 }
0x281a   : > { %2854 = vmatpush3.bf16.msra.mxu0 %v4071_v19  ;;  %2857 = vmatprep.mubr.msk.bf16.mxu0 %vm3433_vm0, %v3432_v0 }
0x281b   : > { %2855 = vmatprep.subr.bf16.mxu0 %v3432_v0 }
0x281e   : > { %2856 = vmatpush3.bf16.msra.mxu0 %v4081_v23 }
0x28ec   : > { %v2027_v22 = vpop.f32.mrb[32].mxu0 }
0x28ed   : > { %v2028_v12 = vadd.f32 %v4106_v35, %v2027_v22  ;;  %v2843_v61 = vpop.f32.mrb[33].mxu0 }
0x28ee   : > { %v2030_v24 = vpop.f32.mrb[34].mxu0 }
0x28ef   : > { %2041 = vrot.lane.b32.xlu0 %v2028_v12, %s3434_s24  ;;  %v2844_v26 = vpop.f32.mrb[35].mxu0  ;;  %v2033_v28 = vadd.f32 %v2028_v12, %v1985_v27 }
0x28f1   : > { %v2629_v29 = vmul.f32 -1.442695, %v2033_v28 }
0x28f3   : > { %3050 = vpow2.f32 %v2629_v29 }
0x28fd   : > { %v3051_v19 = vpop.eup %3050 }
0x28fe   : > { %v2037_v30 = vadd.f32 1.0, %v3051_v19 }
0x2900   : > { %3052 = vrcp.f32 %v2037_v30 }
0x290a   : > { %v3053_v32 = vpop.eup %3052 }
0x2961   : > { %v2042_v33 = vpop.permute.xlu0 %2041 }
0x2962   : > { %v2044_v0 = vmul.f32 %v3053_v32, %v2042_v33 }
0x2964   : > { %2046 = vrot.lane.b32.xlu1 %v2044_v0, %s3434_s24 }
0x29d6   : > { %v2047_v23 = vpop.permute.xlu1 %2046 }
0x29d7   : > { %v2049_v34 = vadd.f32 %v2047_v23, %v1985_v27 }
0x29d9   : > { %3054 = vtanh.f32 %v2049_v34 }
0x29e3   : > { %v3055_v6 = vpop.eup %3054 }
0x29e4   : > { %v2051_v25 = vsub.f32 %v4233_v18, %v3055_v6 }
0x29e6   : > { %2053 = vrot.lane.b32.xlu0 %v2051_v25, %s3436_s8 }
0x2a58   : > { %v2054_v36 = vpop.permute.xlu0 %2053 }
0x2a59   : > { %v2056_v14 = vmul.f32 %v3053_v32, %v2054_v36 }
0x2a5b   : > { %2058 = vrot.lane.b32.xlu1 %v2056_v14, %s3435_s18 }
0x2acd   : > { %v2059_v38 = vpop.permute.xlu1 %2058 }
0x2ace   : > { %v4250_v39 = vadd.f32 %v3055_v6, %v2059_v38 }
0x2ad0   : > { %v2068_v13 = vpack.c.bf16 %v4250_v39, %v4250_v39 }
0x2ad2   : > { %2070 = vrot.lane.b32.xlu0 %v2068_v13, %s3434_s24 }
0x2b44   : > { %v2071_v40 = vpop.permute.xlu0 %2070 }
0x2b45   : > { %2850 = vmatmul.mubr.msk.bf16.vlgmr.msra.gmra.mrb[32].mxu1 %vm751_vm3, %v2071_v40 }
0x2c18   : > { %v2109_v42 = vpop.f32.mrb[32].mxu1 }
0x2c19   : > { %v2110_v43 = vadd.f32 %v4106_v35, %v2109_v42  ;;  %v2851_v44 = vpop.f32.mrb[33].mxu1 }
0x2c1a   : > { %v2112_v45 = vpop.f32.mrb[34].mxu1 }
0x2c1b   : > { %2123 = vrot.lane.b32.xlu1 %v2110_v43, %s3434_s24  ;;  %v2852_v46 = vpop.f32.mrb[35].mxu1  ;;  %v2115_v49 = vadd.f32 %v2110_v43, %v2067_v48 }
0x2c1d   : > { %v2631_v50 = vmul.f32 -1.442695, %v2115_v49 }
0x2c1f   : > { %3056 = vpow2.f32 %v2631_v50 }
0x2c29   : > { %v3057_v53 = vpop.eup %3056 }
0x2c2a   : > { %v2119_v54 = vadd.f32 1.0, %v3057_v53 }
0x2c2c   : > { %3058 = vrcp.f32 %v2119_v54 }
0x2c36   : > { %v3059_v55 = vpop.eup %3058 }
0x2c8d   : > { %v2124_v56 = vpop.permute.xlu1 %2123 }
0x2c8e   : > { %v2126_v57 = vmul.f32 %v3059_v55, %v2124_v56 }
0x2c90   : > { %2128 = vrot.lane.b32.xlu0 %v2126_v57, %s3434_s24 }
0x2d02   : > { %v2129_v58 = vpop.permute.xlu0 %2128 }
0x2d03   : > { %v2131_v59 = vadd.f32 %v2129_v58, %v2067_v48 }
0x2d05   : > { %3060 = vtanh.f32 %v2131_v59 }
0x2d0f   : > { %v3061_v60 = vpop.eup %3060 }
0x2d10   : > { %v2133_v62 = vsub.f32 %v4250_v39, %v3061_v60 }
0x2d12   : > { %2135 = vrot.lane.b32.xlu1 %v2133_v62, %s3436_s8 }
0x2d84   : > { %v2136_v63 = vpop.permute.xlu1 %2135 }
0x2d85   : > { %v2138_v1 = vmul.f32 %v3059_v55, %v2136_v63 }
0x2d87   : > { %2140 = vrot.lane.b32.xlu0 %v2138_v1, %s3435_s18 }
0x2df9   : > { %v2141_v2 = vpop.permute.xlu0 %2140 }
0x2dfa   : > { %v2143_v3 = vadd.f32 %v3061_v60, %v2141_v2 }
0x2dfc   : > { %v2150_v4 = vpack.c.bf16 %v2143_v3, %v2143_v3 }
0x2dfe   : > { %2152 = vrot.lane.b32.xlu1 %v2150_v4, %s3434_s24 }
0x2e70   : > { %v2153_v5 = vpop.permute.xlu1 %2152 }
0x2e71   : > { %2858 = vmatmul.mubr.msk.bf16.vlgmr.msra.gmra.mrb[36].mxu0 %vm751_vm3, %v2153_v5 }
0x2f44   : > { %v2191_v7 = vpop.f32.mrb[36].mxu0 }
0x2f45   : > { %v2192_v8 = vadd.f32 %v4106_v35, %v2191_v7  ;;  %v2859_v9 = vpop.f32.mrb[37].mxu0 }
0x2f46   : > { %v2194_v10 = vpop.f32.mrb[38].mxu0 }
0x2f47   : > { %2205 = vrot.lane.b32.xlu0 %v2192_v8, %s3434_s24  ;;  %v2860_v11 = vpop.f32.mrb[39].mxu0  ;;  %v2197_v51 = vadd.f32 %v2192_v8, %v2149_v15 }
0x2f49   : > { %v2633_v37 = vmul.f32 -1.442695, %v2197_v51 }
0x2f4b   : > { %3062 = vpow2.f32 %v2633_v37 }
0x2f55   : > { %v3063_v17 = vpop.eup %3062 }
0x2f56   : > { %v2201_v20 = vadd.f32 1.0, %v3063_v17 }
0x2f58   : > { %3064 = vrcp.f32 %v2201_v20 }
0x2f62   : > { %v3065_v21 = vpop.eup %3064 }
0x2fb9   : > { %v2206_v41 = vpop.permute.xlu0 %2205 }
0x2fba   : > { %v2208_v22 = vmul.f32 %v3065_v21, %v2206_v41 }
0x2fbc   : > { %2210 = vrot.lane.b32.xlu1 %v2208_v22, %s3434_s24 }
0x302e   : > { %v2211_v12 = vpop.permute.xlu1 %2210 }
0x302f   : > { %v2213_v35 = vadd.f32 %v2211_v12, %v2149_v15 }
0x3031   : > { %3066 = vtanh.f32 %v2213_v35 }
0x303b   : > { %v3067_v61 = vpop.eup %3066 }
0x303c   : > { %v2215_v24 = vsub.f32 %v2143_v3, %v3067_v61 }
0x303e   : > { %2217 = vrot.lane.b32.xlu0 %v2215_v24, %s3436_s8 }
0x3042   : > { %1653 = vrot.lane.b32.xlu0 %v4128_v16, %s3434_s24 }
0x3046   : > { %1817 = vrot.lane.b32.xlu0 %v4198_v31, %s3434_s24 }
0x304a   : > { %1981 = vrot.lane.b32.xlu0 %v4233_v18, %s3434_s24 }
0x304e   : > { %2145 = vrot.lane.b32.xlu0 %v2143_v3, %s3434_s24 }
0x30b0   : > { %v2218_v26 = vpop.permute.xlu0 %2217 }
0x30b1   : > { %v2220_v27 = vmul.f32 %v3065_v21, %v2218_v26 }
0x30b3   : > { %2222 = vrot.lane.b32.xlu1 %v2220_v27, %s3435_s18 }
0x30b4   : > { %v1654_v28 = vpop.permute.xlu0 %1653 }
0x30b5   : > { %1656 = vst.msk [vmem:[#allocation3] sm:$0xff] %vm751_vm3, %v1654_v28 }
0x30b7   : > { %1735 = vrot.lane.b32.xlu1 %v4159_v52, %s3434_s24 }
0x30b8   : > { %v1818_v16 = vpop.permute.xlu0 %1817 }
0x30b9   : > { %1820 = vst.msk [vmem:[#allocation3 + $0x10] sm:$0xff] %vm751_vm3, %v1818_v16 }
0x30bb   : > { %1899 = vrot.lane.b32.xlu1 %v4216_v47, %s3434_s24 }
0x30bc   : > { %v2235_v31 = vld [vmem:[#allocation3] sm:$0xf]  ;;  %v2251_v18 = vld [vmem:[#allocation3 + $0x4] sm:$0xf]  ;;  %v1982_v29 = vpop.permute.xlu0 %1981 }
0x30bd   : > { %2243 = vst.msk [vmem:[%s4283_s29] sm:$0xf] %vm1421_vm6, %v2235_v31  ;;  %2636 = vst.msk [vmem:[%s4283_s29 + $0x20] sm:$0xf] %vm1421_vm6, %v2251_v18 }
0x30be   : > { %1984 = vst.msk [vmem:[#allocation3 + $0x20] sm:$0xff] %vm751_vm3, %v1982_v29 }
0x30bf   : > { %2063 = vrot.lane.b32.xlu1 %v4250_v39, %s3434_s24 }
0x30c0   : > { %v2237_v52 = vld [vmem:[#allocation3 + $0x10] sm:$0xf]  ;;  %v2253_v47 = vld [vmem:[#allocation3 + $0x14] sm:$0xf]  ;;  %v2146_v19 = vpop.permute.xlu0 %2145 }
0x30c1   : > { %2245 = vst.msk [vmem:[%s4283_s29 + $0x8] sm:$0xf] %vm1421_vm6, %v2237_v52  ;;  %2638 = vst.msk [vmem:[%s4283_s29 + $0x28] sm:$0xf] %vm1421_vm6, %v2253_v47 }
0x30c2   : > { %2148 = vst.msk [vmem:[#allocation3 + $0x30] sm:$0xff] %vm751_vm3, %v2146_v19 }
0x30c5   : > { %v2239_v30 = vld [vmem:[#allocation3 + $0x20] sm:$0xf]  ;;  %v2255_v32 = vld [vmem:[#allocation3 + $0x24] sm:$0xf] }
0x30c6   : > { %2247 = vst.msk [vmem:[%s4283_s29 + $0x10] sm:$0xf] %vm1421_vm6, %v2239_v30  ;;  %2640 = vst.msk [vmem:[%s4283_s29 + $0x30] sm:$0xf] %vm1421_vm6, %v2255_v32 }
0x30c9   : > { %v2241_v33 = vld [vmem:[#allocation3 + $0x30] sm:$0xf]  ;;  %v2257_v0 = vld [vmem:[#allocation3 + $0x34] sm:$0xf] }
0x30ca   : > { %2249 = vst.msk [vmem:[%s4283_s29 + $0x18] sm:$0xf] %vm1421_vm6, %v2241_v33  ;;  %2642 = vst.msk [vmem:[%s4283_s29 + $0x38] sm:$0xf] %vm1421_vm6, %v2257_v0 }
0x3125   : > { %v2223_v23 = vpop.permute.xlu1 %2222 }
0x3126   : > { %v2225_v34 = vadd.f32 %v3067_v61, %v2223_v23 }
0x3128   : > { %2227 = vrot.lane.b32.xlu1 %v2225_v34, %s3434_s24 }
0x3129   : > { %v1736_v6 = vpop.permute.xlu1 %1735 }
0x312a   : > { %1738 = vst.msk [vmem:[#allocation3 + $0x8] sm:$0xff] %vm751_vm3, %v1736_v6 }
0x312d   : > { %v1900_v25 = vpop.permute.xlu1 %1899 }
0x312e   : > { %1902 = vst.msk [vmem:[#allocation3 + $0x18] sm:$0xff] %vm751_vm3, %v1900_v25 }
0x3131   : > { %v2236_v36 = vld [vmem:[#allocation3 + $0x8] sm:$0xf]  ;;  %v2252_v14 = vld [vmem:[#allocation3 + $0xc] sm:$0xf]  ;;  %v2064_v38 = vpop.permute.xlu1 %2063 }
0x3132   : > { %2244 = vst.msk [vmem:[%s4283_s29 + $0x4] sm:$0xf] %vm1421_vm6, %v2236_v36  ;;  %2637 = vst.msk [vmem:[%s4283_s29 + $0x24] sm:$0xf] %vm1421_vm6, %v2252_v14 }
0x3133   : > { %2066 = vst.msk [vmem:[#allocation3 + $0x28] sm:$0xff] %vm751_vm3, %v2064_v38 }
0x3135   : > { %v2238_v39 = vld [vmem:[#allocation3 + $0x18] sm:$0xf]  ;;  %v2254_v13 = vld [vmem:[#allocation3 + $0x1c] sm:$0xf] }
0x3136   : > { %2246 = vst.msk [vmem:[%s4283_s29 + $0xc] sm:$0xf] %vm1421_vm6, %v2238_v39  ;;  %2639 = vst.msk [vmem:[%s4283_s29 + $0x2c] sm:$0xf] %vm1421_vm6, %v2254_v13 }
0x313a   : > { %v2240_v40 = vld [vmem:[#allocation3 + $0x28] sm:$0xf]  ;;  %v2256_v42 = vld [vmem:[#allocation3 + $0x2c] sm:$0xf] }
0x313b   : > { %2248 = vst.msk [vmem:[%s4283_s29 + $0x14] sm:$0xf] %vm1421_vm6, %v2240_v40  ;;  %2641 = vst.msk [vmem:[%s4283_s29 + $0x34] sm:$0xf] %vm1421_vm6, %v2256_v42 }
0x319a   : > { %v2228_v43 = vpop.permute.xlu1 %2227 }
0x319b   : > { %2230 = vst.msk [vmem:[#allocation3 + $0x38] sm:$0xff] %vm751_vm3, %v2228_v43 }
0x319c   : > { %2634 = vst.msk [vmem:[%s4167_s5 + $0x4] sm:$0xf] %vm1421_vm6, %v2228_v43 }
0x319d   : > { %2635 = vst.msk [vmem:[%s4167_s5 + $0x8] sm:$0xf0] %vm1424_vm7, %v2228_v43 }
0x319e   : > { %3319 = shalt.err (!%p3316_p5)
}
0x319f   : > { %s3320_s19 = scalar_lea.hbm %s4328_s28, 256  ;;  %s3324_s3 = scalar_lea.hbm %s4429_s9, 512 }
0x31a0   : > { %p3321_p11 = scmp.ne.s32.totalorder %s4328_s28, %s3320_s19  ;;  %p3325_p2 = scmp.lt.u32.totalorder %s4328_s28, %s4429_s9 }
0x31a1   : > { %p3326_p13 = scmp.lt.u32.totalorder %s3324_s3, %s3320_s19  ;;  %p3328_p8 = scmp.lt.u32.totalorder %s3320_s19, %s4328_s28 }
0x31a2   : > { %p3322_p12 = pnand %p3321_p11, %p4488_p9 }
0x31a3   : > { %p3327_p4 = por %p3326_p13, %p3325_p2 }
0x31a4   : > { %p3323_p7 = pneg %p3322_p12 }
0x31a5   : > { %p3329_p0 = por %p3328_p8, %p3327_p4 }
0x31a7   : > { %p3330_p10 = pnand %p3329_p0, %p3323_p7 }
0x31a9   : > { %3333 = shalt.err (!%p3330_p10)
}
0x31aa   : > { %s3438_s5 = smov 4   ;;  %s2656_s30 = sshll.u32 %s3658_s27, 10  ;;  %v2242_v44 = vld [vmem:[#allocation3 + $0x38] sm:$0xf]  ;;  %v2258_v45 = vld [vmem:[#allocation3 + $0x3c] sm:$0xf] }
0x31ab   : > { %2881 = dma.vmem_to_hbm [thread:$0]  (%p4488_p9), %s4323_s15, 256, %s4328_s28, %s2274_s13, %s3434_s24, %s3434_s24, %s3438_s5  }
0x31ac   : > { %s2287_s26 = sshll.u32 %s4283_s29, 4  ;;  %s4489_s22 = sld [smem:[#allocation36_spill]]  ;;  %2250 = vst.msk [vmem:[%s4283_s29 + $0x1c] sm:$0xf] %vm1421_vm6, %v2242_v44  ;;  %2643 = vst.msk [vmem:[%s4283_s29 + $0x3c] sm:$0xf] %vm1421_vm6, %v2258_v45  ;;  %s4369_s26 = int_to_ptr.vmem [resolvable:$true] %s2287_s26 }
0x31ad   : > { %s2269_s25 = scalar_lea.sflag [#allocation6], %s3848_s23  ;;  %s3334_s15 = scalar_lea.vmem %s4369_s26, 1024 }
0x31ae   : > { %p3335_p6 = scmp.ne.s32.totalorder %s4369_s26, %s3334_s15  ;;  %s3439_s27 = smov [#allocation18]  }
0x31af   : > { %s3338_s28 = sshll.u32 %s3439_s27, 4  ;;  %s3339_s28 = int_to_ptr.vmem [resolvable:$false] %s3338_s28 }
0x31b0   : > { %p3336_p3 = pnand %p3335_p6, %p4488_p9  ;;  %s3340_s13 = scalar_lea.vmem %s3339_s28, 2048 }
0x31b1   : > { %p3341_p5 = scmp.lt.s32.totalorder %s4369_s26, %s3339_s28  ;;  %p3342_p11 = scmp.lt.s32.totalorder %s3340_s13, %s3334_s15 }
0x31b2   : > { %s4367_s17 = scalar_lea.hbm %s4489_s22, %s2656_s30  ;;  %p3337_p1 = pneg %p3336_p3 }
0x31b3   : > { %p3343_p12 = por %p3342_p11, %p3341_p5 }
0x31b5   : > { %p3344_p7 = pnand %p3343_p12, %p3337_p1 }
0x31b7   : > { %3347 = shalt.err (!%p3344_p7)
}
0x31b8   : > { %s3348_s29 = scalar_lea.hbm %s4367_s17, 1024  ;;  %s3352_s11 = scalar_lea.hbm %s4489_s22, 2048 }
0x31b9   : > { %p3349_p2 = scmp.ne.s32.totalorder %s4367_s17, %s3348_s29  ;;  %p3353_p8 = scmp.lt.u32.totalorder %s4367_s17, %s4489_s22 }
0x31ba   : > { %p3354_p0 = scmp.lt.u32.totalorder %s3352_s11, %s3348_s29  ;;  %p3356_p6 = scmp.lt.u32.totalorder %s3348_s29, %s4367_s17 }
0x31bb   : > { %p3350_p13 = pnand %p3349_p2, %p4488_p9 }
0x31bc   : > { %p3355_p10 = por %p3354_p0, %p3353_p8 }
0x31bd   : > { %p3351_p4 = pneg %p3350_p13 }
0x31be   : > { %p3357_p3 = por %p3356_p6, %p3355_p10 }
0x31c0   : > { %p3358_p1 = pnand %p3357_p3, %p3351_p4 }
0x31c2   : > { %3361 = shalt.err (!%p3358_p1)
}
0x31c3   : > { %2880 = dma.vmem_to_hbm [thread:$0]  (%p4488_p9), %s4369_s26, 1024, %s4367_s17, %s2269_s25, %s3434_s24, %s3434_s24, %s3438_s5  }
0x31c4 PF: > { %s4490_s18 = sld [smem:[#allocation28_spill]]  ;;  %s4491_s8 = sld [smem:[#allocation32_spill]] }
0x31c5   : > { %p4493_p11 = scmp.ge.s32.totalorder %s3420_s12, 2 }
0x31ca   : > { %s2318_s30 = sand.u32 1, %s4490_s18   ;;  %p4492_p5 = scmp.ne.s32.totalorder %s4491_s8, 0 }
0x31cb   : > { %s2319_s21 = scalar_lea.sflag [#allocation6], %s2318_s30 }
0x31cc   : > { %p2911_p12 = pnand %p4493_p11, %p4492_p5 }
0x31ce   : > { %3399 = dma.done.wait (!%p2911_p12), %s2319_s21, 1024  }
0x31cf   : > { %3401 = vsyncadd (!%p2911_p12), %s2319_s21, 4294966272  ;;  %s2328_s14 = scalar_lea.sflag [#allocation20], %s2318_s30 }
0x31d0   : > { %3403 = dma.done.wait (!%p2911_p12), %s2328_s14, 256  }
0x31d1   : > { %3405 = vsyncadd (!%p2911_p12), %s2328_s14, 4294967040  ;;  %s4494_s12 = sld [smem:[#allocation30_spill]]  ;;  %s4495_s23 = sld [smem:[#allocation29_spill]] }
0x31d2   : > { %s4496_s11 = sld [smem:[#allocation31_spill]]  ;;  %s4497_s30 = smov %s3412_s10 }
0x31d7   : > { %p36_p9 = scmp.ge.s32.totalorder %s4494_s12, 4   ;;  %s4498_s10 = smov %s4495_s23 }
0x31d9   :  { %38 = sbr.rel (!%p36_p9) target bundleno = 19 (0x13), region = 212 }
0x31e0   :  { %2333 = vsyncpa [#allocation5], 1 }
0x31e1   :  { %2335 = vsyncpa [#allocation5 + $0x1], 1 }
0x31e2   :  { %2336 = vsyncpa [#allocation8], 1 }
0x31e3   :  { %2338 = vsyncpa [#allocation8 + $0x1], 1 }
0x31e4   :  { %2339 = vsyncpa [#allocation11], 1 }
0x31e5   :  { %2341 = vsyncpa [#allocation11 + $0x1], 1 }
0x31e6   :  { %2342 = vsyncpa [#allocation14], 1 }
0x31e7   :  { %2344 = vsyncpa [#allocation14 + $0x1], 1 }
0x31e8   :  { %2345 = vsyncpa [#allocation17], 1 }
0x31e9   :  { %2347 = vsyncpa [#allocation17 + $0x1], 1 }
0x31ea   :  { %2348 = vsyncpa [#allocation6], 1 }
0x31eb   :  { %2350 = vsyncpa [#allocation6 + $0x1], 1 }
0x31ec   :  { %2351 = vsyncpa [#allocation20], 1 }
0x31ed   :  { %2353 = vsyncpa [#allocation20 + $0x1], 1 }

</bundles_post_ra>
